<compile_context>
chip_gen: v5e
topology: v5e:2x2
jax: 0.10.0
libtpu: 0.0.40
codegen_flags: <defaults>
</compile_context>

<pallas_src>
import jax
import jax.numpy as jnp
from jax.experimental import pallas as pl
from jax.experimental.pallas import tpu as pltpu

BN_EPS = 1e-5
H1, H2 = 1024, 512


def _mish(x):
    # x * tanh(softplus(x)) with one EUP transcendental:
    # tanh(log(1+t)) = ((1+t)^2 - 1) / ((1+t)^2 + 1) = n / (n + 2), n = t*(t+2).
    t = jnp.exp(x)
    n = t * (t + 2.0)
    y = x * n * pl.reciprocal(n + 2.0, approx=True)
    # For x > 20, tanh(softplus(x)) == 1 in f32; also guards exp overflow.
    return jnp.where(x > 20.0, x, y)


def _batchnorm_train(h, gamma, beta):
    # h: (B, F) f32; gamma/beta: (1, F).  Training-mode BN, one-pass variance.
    mean = jnp.mean(h, axis=0, keepdims=True)
    var = jnp.maximum(jnp.mean(h * h, axis=0, keepdims=True) - mean * mean, 0.0)
    scale = gamma * jax.lax.rsqrt(var + BN_EPS)          # (1, F)
    shift = beta - mean * scale                          # (1, F)
    return h * scale + shift                             # one mul + one add per element


def encoder_kernel(x_ref, w1_ref, w2_ref, w3_ref, bnp_ref, b3_ref, out_ref):
    x = x_ref[...].astype(jnp.float32)

    # --- Layer 1: Linear (bias cancelled by BN) -> BatchNorm1d -> Mish ---
    h1 = jnp.dot(x, w1_ref[...].astype(jnp.float32),
                 preferred_element_type=jnp.float32)
    h1 = _batchnorm_train(h1, bnp_ref[0:1, :H1], bnp_ref[1:2, :H1])
    a1 = _mish(h1)

    # --- Layer 2: Linear (bias cancelled by BN) -> BatchNorm1d -> Mish ---
    h2 = jnp.dot(a1, w2_ref[...].astype(jnp.float32),
                 preferred_element_type=jnp.float32)
    h2 = _batchnorm_train(h2, bnp_ref[0:1, H1:], bnp_ref[1:2, H1:])
    a2 = _mish(h2)

    # --- Layer 3: Linear (with bias) ---
    out = jnp.dot(a2, w3_ref[...].astype(jnp.float32),
                  preferred_element_type=jnp.float32) + b3_ref[...]
    out_ref[...] = out.astype(out_ref.dtype)


def encoder_forward(x, params):
    """x: (B, data_size) f32. params: dict from init_params (bf16 weights)."""
    B, D = x.shape
    L = params["w3"].shape[1]

    # Single-block design: whole batch + all weights resident in VMEM.
    act_bytes = B * (D + 2 * H1 + 2 * H2 + L) * 4
    w_bytes = (D * H1 + H1 * H2 + H2 * L) * 2
    assert act_bytes + w_bytes < 24 * 1024 * 1024, (
        "single-block Encoder kernel exceeds conservative VMEM budget; "
        "use a batch-tiled two-pass-BN variant for large B")

    args = (x, params["w1"], params["w2"], params["w3"],
            params["bnp"], params["b3"])

    def full_spec(shape):
        return pl.BlockSpec(shape, lambda: (0,) * len(shape))

    return pl.pallas_call(
        encoder_kernel,
        out_shape=jax.ShapeDtypeStruct((B, L), jnp.float32),
        grid=(),
        in_specs=[full_spec(a.shape) for a in args],
        out_specs=full_spec((B, L)),
    )(*args)


def init_params(key, data_size, latent_dim):
    """Synthetic parameters matching the module's shapes.

    - Layer-1/2 linear biases are omitted: mathematically dead under
      training-mode BatchNorm (batch-mean subtraction cancels them).
    - Weights stored in bf16 (HBM->VMEM DMA is the dominant cost at small B).
    - BN affine params packed: bnp[0] = [gamma1 | gamma2], bnp[1] = [beta1 | beta2].
    """
    ks = jax.random.split(key, 4)

    def lin_w(k, fan_in, fan_out):
        bound = 1.0 / jnp.sqrt(fan_in)
        return jax.random.uniform(k, (fan_in, fan_out), jnp.float32, -bound, bound)

    w1 = lin_w(ks[0], data_size, H1)
    w2 = lin_w(ks[1], H1, H2)
    kw3, kb3 = jax.random.split(ks[2])
    bound3 = 1.0 / jnp.sqrt(H2)
    w3 = jax.random.uniform(kw3, (H2, latent_dim), jnp.float32, -bound3, bound3)
    b3 = jax.random.uniform(kb3, (1, latent_dim), jnp.float32, -bound3, bound3)

    kg, kb = jax.random.split(ks[3])
    gamma = 1.0 + 0.1 * jax.random.normal(kg, (1, H1 + H2), jnp.float32)
    beta = 0.1 * jax.random.normal(kb, (1, H1 + H2), jnp.float32)
    bnp = jnp.concatenate([gamma, beta], axis=0)

    return {
        "w1": w1.astype(jnp.bfloat16),
        "w2": w2.astype(jnp.bfloat16),
        "w3": w3.astype(jnp.bfloat16),
        "bnp": bnp,
        "b3": b3,
    }


def encoder_reference(x, params):
    """Pure-JAX f32 reference (standard BN/Mish formulations) on the same weights."""
    w1 = params["w1"].astype(jnp.float32)
    w2 = params["w2"].astype(jnp.float32)
    w3 = params["w3"].astype(jnp.float32)
    g1, g2 = params["bnp"][0:1, :H1], params["bnp"][0:1, H1:]
    be1, be2 = params["bnp"][1:2, :H1], params["bnp"][1:2, H1:]

    def bn(h, g, b):
        m = jnp.mean(h, axis=0, keepdims=True)
        v = jnp.mean((h - m) ** 2, axis=0, keepdims=True)
        return (h - m) / jnp.sqrt(v + BN_EPS) * g + b

    def mish(v):
        sp = jnp.where(v > 20.0, v, jnp.log1p(jnp.exp(jnp.minimum(v, 20.0))))
        return v * jnp.tanh(sp)

    h = mish(bn(x @ w1, g1, be1))
    h = mish(bn(h @ w2, g2, be2))
    return h @ w3 + params["b3"]


if __name__ == "__main__":
    key = jax.random.PRNGKey(0)
    kx, kp = jax.random.split(key)

    B = 8            # batch (BatchNorm1d needs B > 1)
    DATA_SIZE = 64   # data_size is dataset-dependent in the original script
    LATENT_DIM = 256

    x = jax.random.normal(kx, (B, DATA_SIZE), jnp.float32)
    params = init_params(kp, DATA_SIZE, LATENT_DIM)

    out = encoder_forward(x, params)
    out = jax.block_until_ready(out)

    ref = encoder_reference(x, params)
    assert out.shape == (B, LATENT_DIM)
    err = float(jnp.max(jnp.abs(out - ref)))
    # Tolerance covers the approx EUP reciprocal in Mish and one-pass BN variance.
    assert jnp.allclose(out, ref, atol=1e-2, rtol=1e-2), f"mismatch vs reference, max|diff|={err}"

    print("KERNEL_OK")
</pallas_src>

<mosaic_0001>
module attributes {stable_mosaic.version = 11 : i64} {
  func.func @encoder_kernel(%arg0: memref<8x64xf32, #tpu.memory_space<vmem>>, %arg1: memref<64x1024xbf16, #tpu.memory_space<vmem>>, %arg2: memref<1024x512xbf16, #tpu.memory_space<vmem>>, %arg3: memref<512x256xbf16, #tpu.memory_space<vmem>>, %arg4: memref<2x1536xf32, #tpu.memory_space<vmem>>, %arg5: memref<1x256xf32, #tpu.memory_space<vmem>>, %arg6: memref<8x256xf32, #tpu.memory_space<vmem>>) attributes {dimension_semantics = [], scalar_prefetch = 0 : i64, scratch_operands = 0 : i64, tpu.core_type = #tpu.core_type<tc>} {
    %c0 = arith.constant 0 : index
    %c0_0 = arith.constant 0 : index
    %0 = vector.load %arg0[%c0, %c0_0] : memref<8x64xf32, #tpu.memory_space<vmem>>, vector<8x64xf32>
    %c0_1 = arith.constant 0 : index
    %c0_2 = arith.constant 0 : index
    %1 = vector.load %arg1[%c0_1, %c0_2] : memref<64x1024xbf16, #tpu.memory_space<vmem>>, vector<64x1024xbf16>
    %2 = arith.extf %1 : vector<64x1024xbf16> to vector<64x1024xf32>
    %cst = arith.constant dense<0.000000e+00> : vector<8x1024xf32>
    %3 = tpu.matmul %0, %2, %cst {dimension_numbers = #tpu.dot_dimension_numbers<[1], [0], [0], [1], [0, 0, 1, 1], [], []>} : vector<8x64xf32>, vector<64x1024xf32>, vector<8x1024xf32> -> vector<8x1024xf32>
    %c0_3 = arith.constant 0 : index
    %c0_4 = arith.constant 0 : index
    %4 = vector.load %arg4[%c0_3, %c0_4] : memref<2x1536xf32, #tpu.memory_space<vmem>>, vector<1x1024xf32>
    %c1 = arith.constant 1 : index
    %c0_5 = arith.constant 0 : index
    %5 = vector.load %arg4[%c1, %c0_5] : memref<2x1536xf32, #tpu.memory_space<vmem>>, vector<1x1024xf32>
    %cst_6 = arith.constant dense<0.000000e+00> : vector<1024xf32>
    %6 = vector.multi_reduction <add>, %3, %cst_6 [0] : vector<8x1024xf32> to vector<1024xf32>
    %7 = vector.shape_cast %6 : vector<1024xf32> to vector<1x1024xf32>
    %cst_7 = arith.constant 8.000000e+00 : f32
    %8 = vector.broadcast %cst_7 : f32 to vector<1x1024xf32>
    %9 = arith.divf %7, %8 : vector<1x1024xf32>
    %10 = arith.mulf %3, %3 : vector<8x1024xf32>
    %cst_8 = arith.constant dense<0.000000e+00> : vector<1024xf32>
    %11 = vector.multi_reduction <add>, %10, %cst_8 [0] : vector<8x1024xf32> to vector<1024xf32>
    %12 = vector.shape_cast %11 : vector<1024xf32> to vector<1x1024xf32>
    %cst_9 = arith.constant 8.000000e+00 : f32
    %13 = vector.broadcast %cst_9 : f32 to vector<1x1024xf32>
    %14 = arith.divf %12, %13 : vector<1x1024xf32>
    %15 = arith.mulf %9, %9 : vector<1x1024xf32>
    %16 = arith.subf %14, %15 : vector<1x1024xf32>
    %cst_10 = arith.constant 0.000000e+00 : f32
    %17 = vector.broadcast %cst_10 : f32 to vector<1x1024xf32>
    %18 = arith.maximumf %16, %17 : vector<1x1024xf32>
    %cst_11 = arith.constant 9.99999974E-6 : f32
    %19 = vector.broadcast %cst_11 : f32 to vector<1x1024xf32>
    %20 = arith.addf %18, %19 : vector<1x1024xf32>
    %21 = math.rsqrt %20 : vector<1x1024xf32>
    %22 = arith.mulf %4, %21 : vector<1x1024xf32>
    %23 = arith.mulf %9, %22 : vector<1x1024xf32>
    %24 = arith.subf %5, %23 : vector<1x1024xf32>
    %25 = vector.broadcast %22 : vector<1x1024xf32> to vector<8x1024xf32>
    %26 = arith.mulf %3, %25 : vector<8x1024xf32>
    %27 = vector.broadcast %24 : vector<1x1024xf32> to vector<8x1024xf32>
    %28 = arith.addf %26, %27 : vector<8x1024xf32>
    %29 = math.exp %28 : vector<8x1024xf32>
    %cst_12 = arith.constant 2.000000e+00 : f32
    %30 = vector.broadcast %cst_12 : f32 to vector<8x1024xf32>
    %31 = arith.addf %29, %30 : vector<8x1024xf32>
    %32 = arith.mulf %29, %31 : vector<8x1024xf32>
    %33 = arith.mulf %28, %32 : vector<8x1024xf32>
    %cst_13 = arith.constant 2.000000e+00 : f32
    %34 = vector.broadcast %cst_13 : f32 to vector<8x1024xf32>
    %35 = arith.addf %32, %34 : vector<8x1024xf32>
    %36 = tpu.reciprocal %35 {approx = true} : vector<8x1024xf32> -> vector<8x1024xf32>
    %37 = arith.mulf %33, %36 : vector<8x1024xf32>
    %cst_14 = arith.constant 2.000000e+01 : f32
    %38 = vector.broadcast %cst_14 : f32 to vector<8x1024xf32>
    %39 = arith.cmpf ogt, %28, %38 : vector<8x1024xf32>
    %40 = arith.select %39, %28, %37 : vector<8x1024xi1>, vector<8x1024xf32>
    %c0_15 = arith.constant 0 : index
    %c0_16 = arith.constant 0 : index
    %41 = vector.load %arg2[%c0_15, %c0_16] : memref<1024x512xbf16, #tpu.memory_space<vmem>>, vector<1024x512xbf16>
    %42 = arith.extf %41 : vector<1024x512xbf16> to vector<1024x512xf32>
    %cst_17 = arith.constant dense<0.000000e+00> : vector<8x512xf32>
    %43 = tpu.matmul %40, %42, %cst_17 {dimension_numbers = #tpu.dot_dimension_numbers<[1], [0], [0], [1], [0, 0, 1, 1], [], []>} : vector<8x1024xf32>, vector<1024x512xf32>, vector<8x512xf32> -> vector<8x512xf32>
    %c0_18 = arith.constant 0 : index
    %c1024 = arith.constant 1024 : index
    %44 = vector.load %arg4[%c0_18, %c1024] : memref<2x1536xf32, #tpu.memory_space<vmem>>, vector<1x512xf32>
    %c1_19 = arith.constant 1 : index
    %c1024_20 = arith.constant 1024 : index
    %45 = vector.load %arg4[%c1_19, %c1024_20] : memref<2x1536xf32, #tpu.memory_space<vmem>>, vector<1x512xf32>
    %cst_21 = arith.constant dense<0.000000e+00> : vector<512xf32>
    %46 = vector.multi_reduction <add>, %43, %cst_21 [0] : vector<8x512xf32> to vector<512xf32>
    %47 = vector.shape_cast %46 : vector<512xf32> to vector<1x512xf32>
    %cst_22 = arith.constant 8.000000e+00 : f32
    %48 = vector.broadcast %cst_22 : f32 to vector<1x512xf32>
    %49 = arith.divf %47, %48 : vector<1x512xf32>
    %50 = arith.mulf %43, %43 : vector<8x512xf32>
    %cst_23 = arith.constant dense<0.000000e+00> : vector<512xf32>
    %51 = vector.multi_reduction <add>, %50, %cst_23 [0] : vector<8x512xf32> to vector<512xf32>
    %52 = vector.shape_cast %51 : vector<512xf32> to vector<1x512xf32>
    %cst_24 = arith.constant 8.000000e+00 : f32
    %53 = vector.broadcast %cst_24 : f32 to vector<1x512xf32>
    %54 = arith.divf %52, %53 : vector<1x512xf32>
    %55 = arith.mulf %49, %49 : vector<1x512xf32>
    %56 = arith.subf %54, %55 : vector<1x512xf32>
    %cst_25 = arith.constant 0.000000e+00 : f32
    %57 = vector.broadcast %cst_25 : f32 to vector<1x512xf32>
    %58 = arith.maximumf %56, %57 : vector<1x512xf32>
    %cst_26 = arith.constant 9.99999974E-6 : f32
    %59 = vector.broadcast %cst_26 : f32 to vector<1x512xf32>
    %60 = arith.addf %58, %59 : vector<1x512xf32>
    %61 = math.rsqrt %60 : vector<1x512xf32>
    %62 = arith.mulf %44, %61 : vector<1x512xf32>
    %63 = arith.mulf %49, %62 : vector<1x512xf32>
    %64 = arith.subf %45, %63 : vector<1x512xf32>
    %65 = vector.broadcast %62 : vector<1x512xf32> to vector<8x512xf32>
    %66 = arith.mulf %43, %65 : vector<8x512xf32>
    %67 = vector.broadcast %64 : vector<1x512xf32> to vector<8x512xf32>
    %68 = arith.addf %66, %67 : vector<8x512xf32>
    %69 = math.exp %68 : vector<8x512xf32>
    %cst_27 = arith.constant 2.000000e+00 : f32
    %70 = vector.broadcast %cst_27 : f32 to vector<8x512xf32>
    %71 = arith.addf %69, %70 : vector<8x512xf32>
    %72 = arith.mulf %69, %71 : vector<8x512xf32>
    %73 = arith.mulf %68, %72 : vector<8x512xf32>
    %cst_28 = arith.constant 2.000000e+00 : f32
    %74 = vector.broadcast %cst_28 : f32 to vector<8x512xf32>
    %75 = arith.addf %72, %74 : vector<8x512xf32>
    %76 = tpu.reciprocal %75 {approx = true} : vector<8x512xf32> -> vector<8x512xf32>
    %77 = arith.mulf %73, %76 : vector<8x512xf32>
    %cst_29 = arith.constant 2.000000e+01 : f32
    %78 = vector.broadcast %cst_29 : f32 to vector<8x512xf32>
    %79 = arith.cmpf ogt, %68, %78 : vector<8x512xf32>
    %80 = arith.select %79, %68, %77 : vector<8x512xi1>, vector<8x512xf32>
    %c0_30 = arith.constant 0 : index
    %c0_31 = arith.constant 0 : index
    %81 = vector.load %arg3[%c0_30, %c0_31] : memref<512x256xbf16, #tpu.memory_space<vmem>>, vector<512x256xbf16>
    %82 = arith.extf %81 : vector<512x256xbf16> to vector<512x256xf32>
    %cst_32 = arith.constant dense<0.000000e+00> : vector<8x256xf32>
    %83 = tpu.matmul %80, %82, %cst_32 {dimension_numbers = #tpu.dot_dimension_numbers<[1], [0], [0], [1], [0, 0, 1, 1], [], []>} : vector<8x512xf32>, vector<512x256xf32>, vector<8x256xf32> -> vector<8x256xf32>
    %c0_33 = arith.constant 0 : index
    %c0_34 = arith.constant 0 : index
    %84 = vector.load %arg5[%c0_33, %c0_34] : memref<1x256xf32, #tpu.memory_space<vmem>>, vector<1x256xf32>
    %85 = vector.broadcast %84 : vector<1x256xf32> to vector<8x256xf32>
    %86 = arith.addf %83, %85 : vector<8x256xf32>
    %c0_35 = arith.constant 0 : index
    %c0_36 = arith.constant 0 : index
    %87 = vector.load %arg6[%c0_35, %c0_36] : memref<8x256xf32, #tpu.memory_space<vmem>>, vector<8x256xf32>
    tpu.vector_store %arg6[%c0_35, %c0_36], %86 {strides = array<i32>} : memref<8x256xf32, #tpu.memory_space<vmem>>, vector<8x256xf32>,
    return
  }
}

</mosaic_0001>

<bundles_post_ra>
// kernel: tpu_custom_call.1
= control target key start
LH: loop header
LB: loop body
LE: loop exit
PB: predicated region body
PF: predicated region fallthrough
CT: control target
= control target key end

     0   :  { %11 = vsyncpa [#allocation3], 0  ;;  %s4912_s0 = inlined_call_operand.hbm [shape: f32[8,64], index: 0, kind: input, shape index: {}]   ;;  %s4913_s1 = inlined_call_operand.hbm [shape: bf16[64,1024], index: 1, kind: input, shape index: {}]   ;;  %s4914_s2 = inlined_call_operand.hbm [shape: bf16[1024,512], index: 2, kind: input, shape index: {}]   ;;  %s4915_s3 = inlined_call_operand.hbm [shape: bf16[512,256], index: 3, kind: input, shape index: {}]   ;;  %s4916_s4 = inlined_call_operand.hbm [shape: f32[2,1536], index: 4, kind: input, shape index: {}]   ;;  %s4917_s5 = inlined_call_operand.vmem [shape: f32[1,256], index: 5, kind: input, shape index: {}]   ;;  %s4918_s6 = inlined_call_operand.hbm [shape: f32[8,256], index: 6, kind: output, shape index: {}]  }
   0x1   :  { %12 = vsyncpa [#allocation6], 0 }
   0x2   :  { %13 = vsyncpa [#allocation9], 0  ;;  %s30_s23 = sshll.u32 %s4913_s1, 4  ;;  %s31_s23 = int_to_ptr.hbm [resolvable:$true] %s30_s23 }
   0x3   :  { %14 = vsyncpa [#allocation4], 0  ;;  %s3109_s24 = smov [#allocation5]   ;;  %s56_s28 = sshll.u32 %s4915_s3, 4  ;;  %s57_s28 = int_to_ptr.hbm [resolvable:$true] %s56_s28 }
   0x4   :  { %s32_s25 = sshll.u32 %s3109_s24, 4  ;;  %s3110_s29 = smov 512   ;;  %s33_s25 = int_to_ptr.vmem [resolvable:$true] %s32_s25 }
   0x5   :  { %s3111_s30 = smov 32   ;;  %s3112_s7 = smov [#allocation8]  }
   0x6   :  { %38 = dma.hbm_to_vmem [thread:$0]  %s31_s23, 4096, %s33_s25, [#allocation6], %s3110_s29, %s3110_s29, %s3111_s30  }
   0x7   :  { %s58_s8 = sshll.u32 %s3112_s7, 4  ;;  %s3113_s9 = smov 128   ;;  %s59_s8 = int_to_ptr.vmem [resolvable:$true] %s58_s8 }
   0x8   :  { %s3114_s10 = smov 8   ;;  %s20_s12 = sshll.u32 %s4912_s0, 4  ;;  %s21_s12 = int_to_ptr.hbm [resolvable:$true] %s20_s12 }
   0x9   :  { %64 = dma.hbm_to_vmem [thread:$0]  %s57_s28, 8192, %s59_s8, [#allocation9], %s3113_s9, %s3113_s9, %s3114_s10  }
   0xa   :  { %s3115_s13 = smov [#allocation2]   ;;  %s43_s16 = sshll.u32 %s4914_s2, 4  ;;  %s44_s16 = int_to_ptr.hbm [resolvable:$true] %s43_s16 }
   0xb   :  { %s22_s14 = sshll.u32 %s3115_s13, 4  ;;  %s3116_s17 = smov [#allocation7]   ;;  %s23_s14 = int_to_ptr.vmem [resolvable:$true] %s22_s14 }
   0xc   :  { %25 = dma.hbm_to_vmem [thread:$0]  %s21_s12, 128, %s23_s14, [#allocation3]  }
   0xd   :  { %s45_s18 = sshll.u32 %s3116_s17, 4  ;;  %s3117_s19 = smov 256   ;;  %s46_s18 = int_to_ptr.vmem [resolvable:$true] %s45_s18 }
   0xe   :  { %s3118_s20 = smov 16   ;;  %s70_s0 = sshll.u32 %s4916_s4, 4  ;;  %s71_s0 = int_to_ptr.hbm [resolvable:$true] %s70_s0 }
   0xf   :  { %51 = dma.hbm_to_vmem [thread:$0]  %s44_s16, 32768, %s46_s18, [#allocation6], %s3117_s19, %s3117_s19, %s3118_s20  }
  0x10   :  { %s3119_s23 = smov [#allocation10]  }
  0x11   :  { %s72_s24 = sshll.u32 %s3119_s23, 4  ;;  %s73_s24 = int_to_ptr.vmem [resolvable:$true] %s72_s24 }
  0x12   :  { %75 = dma.hbm_to_vmem [thread:$0]  %s71_s0, 384, %s73_s24, [#allocation9]  }
  0x13   :  { %3101 = dma.done.wait [#allocation3], 128  }
  0x14   :  { %3102 = vsyncadd [#allocation3], 4294967168 }
  0x15   :  { %3103 = dma.done.wait [#allocation6], 36864  }
  0x16   :  { %3104 = vsyncadd [#allocation6], 4294930432 }
  0x17   :  { %3105 = dma.done.wait [#allocation9], 8576  }
  0x18   :  { %3106 = vsyncadd [#allocation9], 4294958720  ;;  %v127_v0 = vld [vmem:[#allocation5 + $0xe0] sm:$0xff]  ;;  %v128_v1 = vld [vmem:[#allocation5 + $0xe8] sm:$0xff]  ;;  %vm195_vm0 = vcmask 523264   ;;  %vm616_vm14 = vcmask 1040384  }
  0x19   :  { %v123_v2 = vld [vmem:[#allocation5 + $0xc0] sm:$0xff]  ;;  %v187_v3 = vunpack.c.l.bf16 %v127_v0  ;;  %v188_v4 = vunpack.c.h.bf16 %v127_v0  ;;  %v189_v5 = vunpack.c.l.bf16 %v128_v1  ;;  %v190_v6 = vunpack.c.h.bf16 %v128_v1  ;;  %v124_v7 = vld [vmem:[#allocation5 + $0xc8] sm:$0xff]  ;;  %v129_v48 = vld [vmem:[#allocation5 + $0xf0] sm:$0xff]  ;;  %s3121_s25 = smov [#allocation11]   ;;  %s2783_s28 = sshll.u32 %s4918_s6, 4  ;;  %s2784_s28 = int_to_ptr.hbm [resolvable:$true] %s2783_s28 }
  0x1a   :  { %v119_v8 = vld [vmem:[#allocation5 + $0xa0] sm:$0xff]  ;;  %v120_v9 = vld [vmem:[#allocation5 + $0xa8] sm:$0xff]  ;;  %v179_v10 = vunpack.c.l.bf16 %v123_v2  ;;  %v180_v11 = vunpack.c.h.bf16 %v123_v2  ;;  %v181_v12 = vunpack.c.l.bf16 %v124_v7  ;;  %v182_v13 = vunpack.c.h.bf16 %v124_v7  ;;  %v130_v49 = vld [vmem:[#allocation5 + $0xf8] sm:$0xff]  ;;  %s2781_s26 = sshll.u32 %s3121_s25, 4  ;;  %s2782_s26 = int_to_ptr.vmem [resolvable:$true] %s2781_s26 }
  0x1b   :  { %v115_v14 = vld [vmem:[#allocation5 + $0x80] sm:$0xff]  ;;  %207 = vmatpush.msra.mxu0 %v187_v3  ;;  %227 = vmatpush.msra.mxu1 %v188_v4  ;;  %v171_v15 = vunpack.c.l.bf16 %v119_v8  ;;  %v172_v16 = vunpack.c.h.bf16 %v119_v8  ;;  %v116_v17 = vld [vmem:[#allocation5 + $0x88] sm:$0xff]  ;;  %v173_v18 = vunpack.c.l.bf16 %v120_v9  ;;  %v174_v19 = vunpack.c.h.bf16 %v120_v9  ;;  %v3172_v50 = vld [vmem:[#allocation2] sm:$0xff] }
  0x1c   :  { %247 = vmatpush.msra.mxu2 %v189_v5  ;;  %267 = vmatpush.msra.mxu3 %v190_v6  ;;  %v111_v20 = vld [vmem:[#allocation5 + $0x60] sm:$0xff]  ;;  %v163_v21 = vunpack.c.l.bf16 %v115_v14  ;;  %v164_v22 = vunpack.c.h.bf16 %v115_v14  ;;  %v112_v23 = vld [vmem:[#allocation5 + $0x68] sm:$0xff]  ;;  %v165_v24 = vunpack.c.l.bf16 %v116_v17  ;;  %v166_v25 = vunpack.c.h.bf16 %v116_v17  ;;  %v125_v51 = vld [vmem:[#allocation5 + $0xd0] sm:$0xff] }
  0x1d   :  { %208 = vmatpush.msra.mxu0 %v179_v10  ;;  %228 = vmatpush.msra.mxu1 %v180_v11  ;;  %v107_v26 = vld [vmem:[#allocation5 + $0x40] sm:$0xff]  ;;  %v155_v27 = vunpack.c.l.bf16 %v111_v20  ;;  %v156_v28 = vunpack.c.h.bf16 %v111_v20  ;;  %v108_v29 = vld [vmem:[#allocation5 + $0x48] sm:$0xff]  ;;  %v157_v30 = vunpack.c.l.bf16 %v112_v23  ;;  %v158_v31 = vunpack.c.h.bf16 %v112_v23  ;;  %v126_v54 = vld [vmem:[#allocation5 + $0xd8] sm:$0xff] }
  0x1e   :  { %248 = vmatpush.msra.mxu2 %v181_v12  ;;  %268 = vmatpush.msra.mxu3 %v182_v13  ;;  %v103_v32 = vld [vmem:[#allocation5 + $0x20] sm:$0xff]  ;;  %v147_v33 = vunpack.c.l.bf16 %v107_v26  ;;  %v148_v34 = vunpack.c.h.bf16 %v107_v26  ;;  %v104_v35 = vld [vmem:[#allocation5 + $0x28] sm:$0xff]  ;;  %v149_v36 = vunpack.c.l.bf16 %v108_v29  ;;  %v150_v37 = vunpack.c.h.bf16 %v108_v29  ;;  %v121_v57 = vld [vmem:[#allocation5 + $0xb0] sm:$0xff] }
  0x1f   :  { %209 = vmatpush.msra.mxu0 %v171_v15  ;;  %229 = vmatpush.msra.mxu1 %v172_v16  ;;  %v99_v38 = vld [vmem:[#allocation5] sm:$0xff]  ;;  %v139_v39 = vunpack.c.l.bf16 %v103_v32  ;;  %v140_v40 = vunpack.c.h.bf16 %v103_v32  ;;  %v100_v41 = vld [vmem:[#allocation5 + $0x8] sm:$0xff]  ;;  %v141_v42 = vunpack.c.l.bf16 %v104_v35  ;;  %v142_v43 = vunpack.c.h.bf16 %v104_v35  ;;  %v122_v60 = vld [vmem:[#allocation5 + $0xb8] sm:$0xff] }
  0x20   :  { %249 = vmatpush.msra.mxu2 %v173_v18  ;;  %269 = vmatpush.msra.mxu3 %v174_v19  ;;  %v131_v44 = vunpack.c.l.bf16 %v99_v38  ;;  %v132_v45 = vunpack.c.h.bf16 %v99_v38  ;;  %v133_v46 = vunpack.c.l.bf16 %v100_v41  ;;  %v134_v47 = vunpack.c.h.bf16 %v100_v41  ;;  %v117_v63 = vld [vmem:[#allocation5 + $0x90] sm:$0xff]  ;;  %v118_v2 = vld [vmem:[#allocation5 + $0x98] sm:$0xff] }
  0x21   :  { %210 = vmatpush.msra.mxu0 %v163_v21  ;;  %230 = vmatpush.msra.mxu1 %v164_v22  ;;  %v191_v52 = vunpack.c.l.bf16 %v129_v48  ;;  %v192_v53 = vunpack.c.h.bf16 %v129_v48  ;;  %v193_v55 = vunpack.c.l.bf16 %v130_v49  ;;  %v194_v56 = vunpack.c.h.bf16 %v130_v49  ;;  %v113_v5 = vld [vmem:[#allocation5 + $0x70] sm:$0xff]  ;;  %v114_v8 = vld [vmem:[#allocation5 + $0x78] sm:$0xff] }
  0x22   :  { %250 = vmatpush.msra.mxu2 %v165_v24  ;;  %270 = vmatpush.msra.mxu3 %v166_v25  ;;  %v183_v58 = vunpack.c.l.bf16 %v125_v51  ;;  %v184_v59 = vunpack.c.h.bf16 %v125_v51  ;;  %v185_v61 = vunpack.c.l.bf16 %v126_v54  ;;  %v186_v62 = vunpack.c.h.bf16 %v126_v54  ;;  %v109_v11 = vld [vmem:[#allocation5 + $0x50] sm:$0xff]  ;;  %v110_v14 = vld [vmem:[#allocation5 + $0x58] sm:$0xff] }
  0x23   :  { %211 = vmatpush.msra.mxu0 %v155_v27  ;;  %231 = vmatpush.msra.mxu1 %v156_v28  ;;  %v175_v0 = vunpack.c.l.bf16 %v121_v57  ;;  %v176_v1 = vunpack.c.h.bf16 %v121_v57  ;;  %v177_v3 = vunpack.c.l.bf16 %v122_v60  ;;  %v178_v4 = vunpack.c.h.bf16 %v122_v60  ;;  %v105_v17 = vld [vmem:[#allocation5 + $0x30] sm:$0xff]  ;;  %v106_v20 = vld [vmem:[#allocation5 + $0x38] sm:$0xff] }
  0x24   :  { %251 = vmatpush.msra.mxu2 %v157_v30  ;;  %271 = vmatpush.msra.mxu3 %v158_v31  ;;  %v167_v6 = vunpack.c.l.bf16 %v117_v63  ;;  %v168_v7 = vunpack.c.h.bf16 %v117_v63  ;;  %v169_v9 = vunpack.c.l.bf16 %v118_v2  ;;  %v170_v10 = vunpack.c.h.bf16 %v118_v2  ;;  %v101_v23 = vld [vmem:[#allocation5 + $0x10] sm:$0xff]  ;;  %v102_v26 = vld [vmem:[#allocation5 + $0x18] sm:$0xff] }
  0x25   :  { %212 = vmatpush.msra.mxu0 %v147_v33  ;;  %232 = vmatpush.msra.mxu1 %v148_v34  ;;  %v159_v12 = vunpack.c.l.bf16 %v113_v5  ;;  %v160_v13 = vunpack.c.h.bf16 %v113_v5  ;;  %v161_v15 = vunpack.c.l.bf16 %v114_v8  ;;  %v162_v16 = vunpack.c.h.bf16 %v114_v8 }
  0x26   :  { %252 = vmatpush.msra.mxu2 %v149_v36  ;;  %272 = vmatpush.msra.mxu3 %v150_v37  ;;  %v151_v18 = vunpack.c.l.bf16 %v109_v11  ;;  %v152_v19 = vunpack.c.h.bf16 %v109_v11  ;;  %v153_v21 = vunpack.c.l.bf16 %v110_v14  ;;  %v154_v22 = vunpack.c.h.bf16 %v110_v14 }
  0x27   :  { %213 = vmatpush.msra.mxu0 %v139_v39  ;;  %233 = vmatpush.msra.mxu1 %v140_v40  ;;  %v143_v24 = vunpack.c.l.bf16 %v105_v17  ;;  %v144_v25 = vunpack.c.h.bf16 %v105_v17  ;;  %v145_v27 = vunpack.c.l.bf16 %v106_v20  ;;  %v146_v28 = vunpack.c.h.bf16 %v106_v20 }
  0x28   :  { %253 = vmatpush.msra.mxu2 %v141_v42  ;;  %273 = vmatpush.msra.mxu3 %v142_v43  ;;  %v135_v29 = vunpack.c.l.bf16 %v101_v23  ;;  %v136_v30 = vunpack.c.h.bf16 %v101_v23  ;;  %v137_v31 = vunpack.c.l.bf16 %v102_v26  ;;  %v138_v32 = vunpack.c.h.bf16 %v102_v26 }
  0x29   :  { %214 = vmatpush.msra.mxu0 %v131_v44  ;;  %234 = vmatpush.msra.mxu1 %v132_v45  ;;  %v3120_v33 = vmov 8.0   ;;  %vm618_vm15 = vcmask 1042434  }
  0x2a   :  { %254 = vmatpush.msra.mxu2 %v133_v46  ;;  %274 = vmatpush.msra.mxu3 %v134_v47  ;;  %2816 = vrcp.f32 %v3120_v33 }
  0x2b   :  { %2795 = vmatmul.msk.f32.vlgmr.msra.gmra.mxu0 %vm195_vm0, %v3172_v50  ;;  %2796 = vmatmul.msk.f32.vlgmr.msra.gmra.mxu1 %vm195_vm0, %v3172_v50 }
  0x2c   :  { %2797 = vmatmul.msk.f32.vlgmr.msra.gmra.mxu2 %vm195_vm0, %v3172_v50  ;;  %2798 = vmatmul.msk.f32.vlgmr.msra.gmra.mxu3 %vm195_vm0, %v3172_v50 }
  0x2d   :  { %287 = vmatpush.msrb.mxu0 %v191_v52  ;;  %307 = vmatpush.msrb.mxu1 %v192_v53 }
  0x2e   :  { %327 = vmatpush.msrb.mxu2 %v193_v55  ;;  %347 = vmatpush.msrb.mxu3 %v194_v56 }
  0x2f   :  { %288 = vmatpush.msrb.mxu0 %v183_v58  ;;  %308 = vmatpush.msrb.mxu1 %v184_v59 }
  0x30   :  { %328 = vmatpush.msrb.mxu2 %v185_v61  ;;  %348 = vmatpush.msrb.mxu3 %v186_v62  ;;  %v2817_v34 = vpop.eup %2816 }
  0x31   :  { %289 = vmatpush.msrb.mxu0 %v175_v0  ;;  %309 = vmatpush.msrb.mxu1 %v176_v1  ;;  %v411_v35 = vmul.f32 8.0, %v2817_v34  ;;  %vm415_vm1 = vweird.f32 %v2817_v34 }
  0x32   :  { %329 = vmatpush.msrb.mxu2 %v177_v3  ;;  %349 = vmatpush.msrb.mxu3 %v178_v4 }
  0x33   :  { %290 = vmatpush.msrb.mxu0 %v167_v6  ;;  %310 = vmatpush.msrb.mxu1 %v168_v7  ;;  %v412_v36 = vsub.f32 1.0, %v411_v35 }
  0x34   :  { %330 = vmatpush.msrb.mxu2 %v169_v9  ;;  %350 = vmatpush.msrb.mxu3 %v170_v10 }
  0x35   :  { %291 = vmatpush.msrb.mxu0 %v159_v12  ;;  %311 = vmatpush.msrb.mxu1 %v160_v13  ;;  %v413_v37 = vmul.f32 %v2817_v34, %v412_v36 }
  0x36   :  { %331 = vmatpush.msrb.mxu2 %v161_v15  ;;  %351 = vmatpush.msrb.mxu3 %v162_v16 }
  0x37   :  { %292 = vmatpush.msrb.mxu0 %v151_v18  ;;  %312 = vmatpush.msrb.mxu1 %v152_v19  ;;  %v414_v44 = vadd.f32 %v2817_v34, %v413_v37 }
  0x38   :  { %332 = vmatpush.msrb.mxu2 %v153_v21  ;;  %352 = vmatpush.msrb.mxu3 %v154_v22 }
  0x39   :  { %293 = vmatpush.msrb.mxu0 %v143_v24  ;;  %313 = vmatpush.msrb.mxu1 %v144_v25  ;;  %v3202_v53 = vsel %vm415_vm1, %v2817_v34, %v414_v44  ;;  %vm620_vm1 = vcmask 1041408  }
  0x3a   :  { %333 = vmatpush.msrb.mxu2 %v145_v27  ;;  %353 = vmatpush.msrb.mxu3 %v146_v28  ;;  %5080 = vst [vmem:[#allocation16_spill] sm:$0xff] %v3202_v53 }
  0x3b   :  { %294 = vmatpush.msrb.mxu0 %v135_v29  ;;  %314 = vmatpush.msrb.mxu1 %v136_v30 }
  0x3c   :  { %334 = vmatpush.msrb.mxu2 %v137_v31  ;;  %354 = vmatpush.msrb.mxu3 %v138_v32 }
  0x3d   :  { %2799 = vmatmul.msk.f32.vlgmr.msrb.gmra.mxu0 %vm195_vm0, %v3172_v50  ;;  %2800 = vmatmul.msk.f32.vlgmr.msrb.gmra.mxu1 %vm195_vm0, %v3172_v50 }
  0x3e   :  { %2801 = vmatmul.msk.f32.vlgmr.msrb.gmra.mxu2 %vm195_vm0, %v3172_v50  ;;  %2802 = vmatmul.msk.f32.vlgmr.msrb.gmra.mxu3 %vm195_vm0, %v3172_v50 }
  0xa8   :  { %v3190_v38 = vpop.f32.mrf.mxu0  ;;  %v3192_v39 = vpop.f32.mrf.mxu1 }
  0xa9   :  { %v362_v40 = vrot.slane %v3190_v38, 4  ;;  %v425_v41 = vmul.f32 %v3190_v38, %v3190_v38  ;;  %v368_v42 = vrot.slane %v3192_v39, 4  ;;  %v426_v43 = vmul.f32 %v3192_v39, %v3192_v39 }
  0xab   :  { %v363_v45 = vadd.f32 %v362_v40, %v3190_v38  ;;  %v433_v46 = vrot.slane %v425_v41, 4  ;;  %v369_v47 = vadd.f32 %v368_v42, %v3192_v39  ;;  %v439_v48 = vrot.slane %v426_v43, 4 }
  0xad   :  { %v364_v49 = vrot.slane %v363_v45, 2  ;;  %v434_v50 = vadd.f32 %v433_v46, %v425_v41  ;;  %v370_v51 = vrot.slane %v369_v47, 2  ;;  %v440_v52 = vadd.f32 %v439_v48, %v426_v43 }
  0xaf   :  { %v365_v54 = vadd.f32 %v364_v49, %v363_v45  ;;  %v435_v55 = vrot.slane %v434_v50, 2  ;;  %v371_v56 = vadd.f32 %v370_v51, %v369_v47  ;;  %v441_v57 = vrot.slane %v440_v52, 2  ;;  %v3204_v58 = vpop.f32.mrf.mxu2  ;;  %v3206_v59 = vpop.f32.mrf.mxu3 }
  0xb0   :  { %v374_v60 = vrot.slane %v3204_v58, 4  ;;  %v427_v61 = vmul.f32 %v3204_v58, %v3204_v58  ;;  %v380_v62 = vrot.slane %v3206_v59, 4  ;;  %v428_v63 = vmul.f32 %v3206_v59, %v3206_v59 }
  0xb1   :  { %v366_v0 = vrot.slane %v365_v54, 1  ;;  %v436_v1 = vadd.f32 %v435_v55, %v434_v50  ;;  %v372_v2 = vrot.slane %v371_v56, 1  ;;  %v442_v3 = vadd.f32 %v441_v57, %v440_v52 }
  0xb2   :  { %v375_v4 = vadd.f32 %v374_v60, %v3204_v58  ;;  %v445_v5 = vrot.slane %v427_v61, 4  ;;  %v381_v6 = vadd.f32 %v380_v62, %v3206_v59  ;;  %v451_v7 = vrot.slane %v428_v63, 4 }
  0xb3   :  { %v367_v8 = vadd.f32 %v366_v0, %v365_v54  ;;  %v437_v9 = vrot.slane %v436_v1, 1  ;;  %v373_v10 = vadd.f32 %v372_v2, %v371_v56  ;;  %v443_v11 = vrot.slane %v442_v3, 1 }
  0xb4   :  { %v376_v12 = vrot.slane %v375_v4, 2  ;;  %v446_v13 = vadd.f32 %v445_v5, %v427_v61  ;;  %v382_v14 = vrot.slane %v381_v6, 2  ;;  %v452_v15 = vadd.f32 %v451_v7, %v428_v63 }
  0xb5   :  { %v3217_v16 = vmul.f32 %v3202_v53, %v367_v8  ;;  %v438_v17 = vadd.f32 %v437_v9, %v436_v1  ;;  %v3220_v18 = vmul.f32 %v3202_v53, %v373_v10  ;;  %v444_v19 = vadd.f32 %v443_v11, %v442_v3 }
  0xb6   :  { %v377_v20 = vadd.f32 %v376_v12, %v375_v4  ;;  %v447_v21 = vrot.slane %v446_v13, 2  ;;  %v383_v22 = vadd.f32 %v382_v14, %v381_v6  ;;  %v453_v23 = vrot.slane %v452_v15, 2 }
  0xb7   :  { %v481_v24 = vmul.f32 %v438_v17, %v3202_v53  ;;  %v489_v25 = vmul.f32 %v3217_v16, %v3217_v16  ;;  %v482_v26 = vmul.f32 %v444_v19, %v3202_v53  ;;  %v490_v27 = vmul.f32 %v3220_v18, %v3220_v18 }
  0xb8   :  { %v378_v28 = vrot.slane %v377_v20, 1  ;;  %v448_v29 = vadd.f32 %v447_v21, %v446_v13  ;;  %v384_v30 = vrot.slane %v383_v22, 1  ;;  %v454_v31 = vadd.f32 %v453_v23, %v452_v15 }
  0xb9   :  { %v497_v32 = vsub.f32 %v481_v24, %v489_v25  ;;  %v498_v33 = vsub.f32 %v482_v26, %v490_v27 }
  0xba   :  { %v379_v34 = vadd.f32 %v378_v28, %v377_v20  ;;  %v449_v35 = vrot.slane %v448_v29, 1  ;;  %v385_v36 = vadd.f32 %v384_v30, %v383_v22  ;;  %v455_v37 = vrot.slane %v454_v31, 1  ;;  %v3228_v40 = vpop.f32.mrf.mxu0  ;;  %v3250_v60 = vpop.f32.mrf.mxu1 }
  0xbb   :  { %v505_v41 = vmax.f32 %v497_v32, 0.0  ;;  %v506_v42 = vmax.f32 %v498_v33, 0.0  ;;  %v386_v43 = vrot.slane %v3228_v40, 4  ;;  %v429_v44 = vmul.f32 %v3228_v40, %v3228_v40 }
  0xbc   :  { %v3234_v45 = vmul.f32 %v3202_v53, %v379_v34  ;;  %v450_v46 = vadd.f32 %v449_v35, %v448_v29  ;;  %v3237_v47 = vmul.f32 %v3202_v53, %v385_v36  ;;  %v456_v48 = vadd.f32 %v455_v37, %v454_v31 }
  0xbd   :  { %v3239_v49 = vadd.f32 1e-05, %v505_v41  ;;  %v3241_v50 = vadd.f32 1e-05, %v506_v42  ;;  %v387_v51 = vadd.f32 %v386_v43, %v3228_v40  ;;  %v457_v52 = vrot.slane %v429_v44, 4 }
  0xbe   :  { %v483_v54 = vmul.f32 %v450_v46, %v3202_v53  ;;  %v491_v55 = vmul.f32 %v3234_v45, %v3234_v45  ;;  %v484_v56 = vmul.f32 %v456_v48, %v3202_v53  ;;  %v492_v57 = vmul.f32 %v3237_v47, %v3237_v47 }
  0xbf   :  { %2818 = vrsqrt.f32 %v3239_v49  ;;  %v388_v61 = vrot.slane %v387_v51, 2  ;;  %v458_v0 = vadd.f32 %v457_v52, %v429_v44  ;;  %v392_v2 = vrot.slane %v3250_v60, 4 }
  0xc0   :  { %2820 = vrsqrt.f32 %v3241_v50  ;;  %v499_v62 = vsub.f32 %v483_v54, %v491_v55  ;;  %v500_v63 = vsub.f32 %v484_v56, %v492_v57  ;;  %v430_v3 = vmul.f32 %v3250_v60, %v3250_v60 }
  0xc1   :  { %v389_v1 = vadd.f32 %v388_v61, %v387_v51  ;;  %v3257_v4 = vpop.f32.mrf.mxu2  ;;  %v459_v7 = vrot.slane %v458_v0, 2  ;;  %v393_v10 = vadd.f32 %v392_v2, %v3250_v60  ;;  %v3287_v46 = vpop.f32.mrf.mxu3  ;;  %vm527_vm2 = vweird.f32 %v3239_v49 }
  0xc2   :  { %v507_v5 = vmax.f32 %v499_v62, 0.0  ;;  %v508_v6 = vmax.f32 %v500_v63, 0.0  ;;  %v398_v8 = vrot.slane %v3257_v4, 4  ;;  %v463_v11 = vrot.slane %v430_v3, 4 }
  0xc3   :  { %v390_v9 = vrot.slane %v389_v1, 1  ;;  %v431_v12 = vmul.f32 %v3257_v4, %v3257_v4  ;;  %v460_v15 = vadd.f32 %v459_v7, %v458_v0  ;;  %v394_v20 = vrot.slane %v393_v10, 2 }
  0xc4   :  { %v3263_v13 = vadd.f32 1e-05, %v507_v5  ;;  %v3265_v14 = vadd.f32 1e-05, %v508_v6  ;;  %v464_v21 = vadd.f32 %v463_v11, %v430_v3  ;;  %v399_v22 = vadd.f32 %v398_v8, %v3257_v4 }
  0xc5   :  { %v3267_v17 = vpop.eup %2818  ;;  %v391_v19 = vadd.f32 %v390_v9, %v389_v1  ;;  %v469_v25 = vrot.slane %v431_v12, 4  ;;  %v461_v27 = vrot.slane %v460_v15, 1  ;;  %v395_v28 = vadd.f32 %v394_v20, %v393_v10 }
  0xc6   :  { %v3270_v23 = vpop.eup %2820  ;;  %2822 = vrsqrt.f32 %v3263_v13  ;;  %v522_v29 = vmul.f32 %v3267_v17, %v3239_v49  ;;  %v465_v30 = vrot.slane %v464_v21, 2  ;;  %v400_v31 = vrot.slane %v399_v22, 2 }
  0xc7   :  { %v532_v24 = vmul.f32 %v3270_v23, %v3241_v50  ;;  %2824 = vrsqrt.f32 %v3265_v14  ;;  %v3277_v26 = vmul.f32 %v3202_v53, %v391_v19  ;;  %v462_v33 = vadd.f32 %v461_v27, %v460_v15 }
  0xc8   :  { %v396_v35 = vrot.slane %v395_v28, 1  ;;  %v466_v36 = vadd.f32 %v465_v30, %v464_v21  ;;  %v470_v37 = vadd.f32 %v469_v25, %v431_v12  ;;  %v401_v44 = vadd.f32 %v400_v31, %v399_v22 }
  0xc9   :  { %v533_v32 = vmul.f32 %v3270_v23, %v532_v24  ;;  %v493_v34 = vmul.f32 %v3277_v26, %v3277_v26  ;;  %v485_v42 = vmul.f32 %v462_v33, %v3202_v53  ;;  %v523_v54 = vmul.f32 %v3267_v17, %v522_v29 }
  0xca   :  { %v397_v43 = vadd.f32 %v396_v35, %v395_v28  ;;  %v467_v52 = vrot.slane %v466_v36, 1  ;;  %v471_v63 = vrot.slane %v470_v37, 2  ;;  %v404_v0 = vrot.slane %v3287_v46, 4 }
  0xcb   :  { %v534_v55 = vmul.f32 0.5, %v533_v32  ;;  %v501_v57 = vsub.f32 %v485_v42, %v493_v34  ;;  %v402_v5 = vrot.slane %v401_v44, 1  ;;  %v524_v8 = vmul.f32 0.5, %v523_v54 }
  0xcc   :  { %v3284_v41 = vpop.eup %2822  ;;  %v3297_v61 = vmul.f32 %v3202_v53, %v397_v43  ;;  %v468_v62 = vadd.f32 %v467_v52, %v466_v36  ;;  %v472_v12 = vadd.f32 %v471_v63, %v470_v37  ;;  %v405_v15 = vadd.f32 %v404_v0, %v3287_v46  ;;  %v856_v52 = vld [vmem:[#allocation7 + $0x1f0] sm:$0xff] }
  0xcd   :  { %v3289_v48 = vpop.eup %2824  ;;  %v542_v51 = vmul.f32 %v3284_v41, %v3263_v13  ;;  %v509_v3 = vmax.f32 %v501_v57, 0.0  ;;  %v403_v10 = vadd.f32 %v402_v5, %v401_v44  ;;  %v535_v19 = vsub.f32 1.5, %v534_v55  ;;  %v868_v5 = vld [vmem:[#allocation7 + $0x250] sm:$0xff] }
  0xce   :  { %v552_v56 = vmul.f32 %v3289_v48, %v3265_v14  ;;  %v486_v6 = vmul.f32 %v468_v62, %v3202_v53  ;;  %v494_v7 = vmul.f32 %v3297_v61, %v3297_v61  ;;  %v473_v25 = vrot.slane %v472_v12, 1  ;;  %v888_v62 = vld [vmem:[#allocation7 + $0x2f0] sm:$0xff] }
  0xcf   :  { %v543_v1 = vmul.f32 %v3284_v41, %v542_v51  ;;  %v3305_v9 = vadd.f32 1e-05, %v509_v3  ;;  %v3309_v22 = vmul.f32 %v3202_v53, %v403_v10  ;;  %v406_v27 = vrot.slane %v405_v15, 2  ;;  %v824_v51 = vld [vmem:[#allocation7 + $0xf0] sm:$0xff] }
  0xd0   :  { %v553_v2 = vmul.f32 %v3289_v48, %v552_v56  ;;  %v502_v11 = vsub.f32 %v486_v6, %v494_v7  ;;  %v525_v28 = vsub.f32 1.5, %v524_v8  ;;  %vm537_vm3 = vweird.f32 %v3241_v50  ;;  %v920_v3 = vld [vmem:[#allocation7 + $0x3f0] sm:$0xff]  ;;  %v822_v50 = vld [vmem:[#allocation7 + $0xe0] sm:$0xff] }
  0xd1   :  { %v544_v20 = vmul.f32 0.5, %v543_v1  ;;  %2826 = vrsqrt.f32 %v3305_v9  ;;  %v432_v29 = vmul.f32 %v3287_v46, %v3287_v46  ;;  %v474_v31 = vadd.f32 %v473_v25, %v472_v12  ;;  %v854_v25 = vld [vmem:[#allocation7 + $0x1e0] sm:$0xff] }
  0xd2   :  { %v554_v21 = vmul.f32 0.5, %v553_v2  ;;  %v510_v24 = vmax.f32 %v502_v11, 0.0  ;;  %v495_v32 = vmul.f32 %v3309_v22, %v3309_v22  ;;  %v407_v33 = vadd.f32 %v406_v27, %v405_v15  ;;  %v850_v56 = vld [vmem:[#allocation7 + $0x1c0] sm:$0xff] }
  0xd3   :  { %v536_v34 = vmul.f32 %v3270_v23, %v535_v19  ;;  %vm538_vm4 = vweird.f32 %v3270_v23  ;;  %v545_v35 = vsub.f32 1.5, %v544_v20  ;;  %v475_v36 = vrot.slane %v432_v29, 4 }
  0xd4   :  { %v3316_v30 = vadd.f32 1e-05, %v510_v24  ;;  %vm528_vm5 = vweird.f32 %v3267_v17  ;;  %v555_v37 = vsub.f32 1.5, %v554_v21  ;;  %v487_v42 = vmul.f32 %v474_v31, %v3202_v53  ;;  %vm3336_vm8 = vmor %vm537_vm3, %vm538_vm4  ;;  %v918_v31 = vld [vmem:[#allocation7 + $0x3e0] sm:$0xff] }
  0xd5   :  { %vm547_vm6 = vweird.f32 %v3263_v13  ;;  %vm557_vm7 = vweird.f32 %v3265_v14  ;;  %v408_v43 = vrot.slane %v407_v33, 1  ;;  %v476_v44 = vadd.f32 %v475_v36, %v432_v29  ;;  %vm3350_vm11 = vmor %vm527_vm2, %vm528_vm5  ;;  %v886_v14 = vld [vmem:[#allocation7 + $0x2e0] sm:$0xff]  ;;  %v884_v36 = vld [vmem:[#allocation7 + $0x2d0] sm:$0xff] }
  0xd6   :  { %2828 = vrsqrt.f32 %v3316_v30  ;;  %v3330_v55 = vmul.f32 %v3267_v17, %v525_v28  ;;  %vm548_vm9 = vweird.f32 %v3284_v41  ;;  %vm558_vm10 = vweird.f32 %v3289_v48  ;;  %v912_v13 = vld [vmem:[#allocation7 + $0x3b0] sm:$0xff] }
  0xd7   :  { %v3327_v54 = vpop.eup %2826  ;;  %v503_v57 = vsub.f32 %v487_v42, %v495_v32  ;;  %v540_v63 = vsel %vm3336_vm8, %v3270_v23, %v536_v34  ;;  %v546_v0 = vmul.f32 %v3284_v41, %v545_v35  ;;  %v409_v1 = vadd.f32 %v408_v43, %v407_v33  ;;  %vm3359_vm12 = vmor %vm547_vm6, %vm548_vm9  ;;  %v820_v32 = vld [vmem:[#allocation7 + $0xd0] sm:$0xff] }
  0xd8   :  { %v477_v2 = vrot.slane %v476_v44, 2  ;;  %v556_v6 = vmul.f32 %v3289_v48, %v555_v37  ;;  %v1110_v8 = vunpack.c.l.bf16 %v824_v51  ;;  %v1174_v10 = vunpack.c.l.bf16 %v856_v52  ;;  %vm3374_vm13 = vmor %vm557_vm7, %vm558_vm10  ;;  %v916_v51 = vld [vmem:[#allocation7 + $0x3d0] sm:$0xff]  ;;  %v818_v52 = vld [vmem:[#allocation7 + $0xc0] sm:$0xff] }
  0xd9   :  { %v511_v7 = vmax.f32 %v503_v57, 0.0  ;;  %v562_v49 = vmul.f32 %v3327_v54, %v3305_v9  ;;  %v3366_v11 = vmul.f32 %v3202_v53, %v409_v1  ;;  %v1238_v15 = vunpack.c.l.bf16 %v888_v62  ;;  %v914_v1 = vld [vmem:[#allocation7 + $0x3c0] sm:$0xff] }
  0xda   :  { %v478_v12 = vadd.f32 %v477_v2, %v476_v44  ;;  %1562 = vmatpush.msra.mxu0 %v1110_v8  ;;  %1582 = vmatpush.msra.mxu1 %v1174_v10  ;;  %v1302_v21 = vunpack.c.l.bf16 %v920_v3  ;;  %v1106_v24 = vunpack.c.l.bf16 %v822_v50  ;;  %v550_v27 = vsel %vm3359_vm12, %v3284_v41, %v546_v0  ;;  %v852_v41 = vld [vmem:[#allocation7 + $0x1d0] sm:$0xff]  ;;  %v882_v0 = vld [vmem:[#allocation7 + $0x2c0] sm:$0xff] }
  0xdb   :  { %v3378_v20 = vadd.f32 1e-05, %v511_v7  ;;  %1602 = vmatpush.msra.mxu2 %v1238_v15  ;;  %v530_v33 = vsel %vm3350_vm11, %v3267_v17, %v3330_v55  ;;  %v3389_v34 = vrot.slane %v540_v63, 7  ;;  %v560_v35 = vsel %vm3374_vm13, %v3289_v48, %v556_v6  ;;  %v816_v7 = vld [vmem:[#allocation7 + $0xb0] sm:$0xff] }
  0xdc   :  { %v3368_v19 = vpop.eup %2828  ;;  %v479_v29 = vrot.slane %v478_v12, 1  ;;  %1622 = vmatpush.msra.mxu3 %v1302_v21  ;;  %1563 = vmatpush.msra.mxu0 %v1106_v24  ;;  %v563_v37 = vmul.f32 %v3327_v54, %v562_v49  ;;  %v496_v43 = vmul.f32 %v3366_v11, %v3366_v11  ;;  %v1170_v44 = vunpack.c.l.bf16 %v854_v25  ;;  %v848_v8 = vld [vmem:[#allocation7 + $0x1b0] sm:$0xff] }
  0xdd   :  { %v572_v28 = vmul.f32 %v3368_v19, %v3316_v30  ;;  %2830 = vrsqrt.f32 %v3378_v20  ;;  %v3398_v57 = vrot.slane %v550_v27, 6  ;;  %v1234_v62 = vunpack.c.l.bf16 %v886_v14  ;;  %v880_v10 = vld [vmem:[#allocation7 + $0x2b0] sm:$0xff]  ;;  %v814_v27 = vld [vmem:[#allocation7 + $0xa0] sm:$0xff] }
  0xde   :  { %v480_v42 = vadd.f32 %v479_v29, %v478_v12  ;;  %v1298_v48 = vunpack.c.l.bf16 %v918_v31  ;;  %v1102_v63 = vunpack.c.l.bf16 %v820_v32  ;;  %1583 = vmatpush.msra.mxu1 %v1170_v44  ;;  %v1166_v50 = vunpack.c.l.bf16 %v852_v41  ;;  %v878_v29 = vld [vmem:[#allocation7 + $0x2a0] sm:$0xff]  ;;  %v812_v44 = vld [vmem:[#allocation7 + $0x90] sm:$0xff] }
  0xdf   :  { %v573_v2 = vmul.f32 %v3368_v19, %v572_v28  ;;  %v1230_v6 = vunpack.c.l.bf16 %v884_v36  ;;  %v3402_v23 = vrot.slane %v560_v35, 5  ;;  %1603 = vmatpush.msra.mxu2 %v1234_v62  ;;  %v1294_v49 = vunpack.c.l.bf16 %v916_v51  ;;  %v846_v28 = vld [vmem:[#allocation7 + $0x1a0] sm:$0xff]  ;;  %v844_v51 = vld [vmem:[#allocation7 + $0x190] sm:$0xff] }
  0xe0   :  { %v488_v3 = vmul.f32 %v480_v42, %v3202_v53  ;;  %1623 = vmatpush.msra.mxu3 %v1298_v48  ;;  %v1098_v12 = vunpack.c.l.bf16 %v818_v52  ;;  %v1162_v15 = vunpack.c.l.bf16 %v850_v56  ;;  %v3404_v21 = vmul.f32 0.5, %v563_v37  ;;  %1564 = vmatpush.msra.mxu0 %v1102_v63  ;;  %v910_v36 = vld [vmem:[#allocation7 + $0x3a0] sm:$0xff]  ;;  %v876_v52 = vld [vmem:[#allocation7 + $0x290] sm:$0xff] }
  0xe1   :  { %1584 = vmatpush.msra.mxu1 %v1166_v50  ;;  %v1226_v25 = vunpack.c.l.bf16 %v882_v0  ;;  %1604 = vmatpush.msra.mxu2 %v1230_v6  ;;  %v1290_v31 = vunpack.c.l.bf16 %v914_v1  ;;  %v1094_v32 = vunpack.c.l.bf16 %v816_v7  ;;  %v1158_v35 = vunpack.c.l.bf16 %v848_v8  ;;  %v908_v0 = vld [vmem:[#allocation7 + $0x390] sm:$0xff]  ;;  %v810_v6 = vld [vmem:[#allocation7 + $0x80] sm:$0xff] }
  0xe2   :  { %v504_v24 = vsub.f32 %v488_v3, %v496_v43  ;;  %1624 = vmatpush.msra.mxu3 %v1294_v49  ;;  %v1222_v41 = vunpack.c.l.bf16 %v880_v10  ;;  %vm567_vm0 = vweird.f32 %v3305_v9  ;;  %v3409_v37 = vmul.f32 0.5, %v573_v2  ;;  %1565 = vmatpush.msra.mxu0 %v1098_v12  ;;  %v842_v7 = vld [vmem:[#allocation7 + $0x180] sm:$0xff] }
  0xe3   :  { %v3406_v14 = vpop.eup %2830  ;;  %1585 = vmatpush.msra.mxu1 %v1162_v15  ;;  %1605 = vmatpush.msra.mxu2 %v1226_v25  ;;  %v1286_v56 = vunpack.c.l.bf16 %v912_v13  ;;  %v1090_v62 = vunpack.c.l.bf16 %v814_v27  ;;  %v1154_v48 = vunpack.c.l.bf16 %v846_v28  ;;  %v1218_v63 = vunpack.c.l.bf16 %v878_v29  ;;  %v874_v8 = vld [vmem:[#allocation7 + $0x280] sm:$0xff]  ;;  %v808_v13 = vld [vmem:[#allocation7 + $0x70] sm:$0xff] }
  0xe4   :  { %v582_v42 = vmul.f32 %v3406_v14, %v3378_v20  ;;  %v512_v43 = vmax.f32 %v504_v24, 0.0  ;;  %1625 = vmatpush.msra.mxu3 %v1290_v31  ;;  %v565_v1 = vsub.f32 1.5, %v3404_v21  ;;  %1566 = vmatpush.msra.mxu0 %v1094_v32  ;;  %v1282_v50 = vunpack.c.l.bf16 %v910_v36  ;;  %v906_v15 = vld [vmem:[#allocation7 + $0x380] sm:$0xff]  ;;  %v840_v21 = vld [vmem:[#allocation7 + $0x170] sm:$0xff] }
  0xe5   :  { %1586 = vmatpush.msra.mxu1 %v1158_v35  ;;  %vm568_vm2 = vweird.f32 %v3327_v54  ;;  %1606 = vmatpush.msra.mxu2 %v1222_v41  ;;  %v1086_v10 = vunpack.c.l.bf16 %v812_v44  ;;  %v1150_v49 = vunpack.c.l.bf16 %v844_v51  ;;  %v1214_v12 = vunpack.c.l.bf16 %v876_v52  ;;  %v872_v28 = vld [vmem:[#allocation7 + $0x270] sm:$0xff]  ;;  %v806_v36 = vld [vmem:[#allocation7 + $0x60] sm:$0xff] }
  0xe6   :  { %v583_v2 = vmul.f32 %v3406_v14, %v582_v42  ;;  %v3415_v3 = vadd.f32 1e-05, %v512_v43  ;;  %1626 = vmatpush.msra.mxu3 %v1286_v56  ;;  %v575_v24 = vsub.f32 1.5, %v3409_v37  ;;  %1567 = vmatpush.msra.mxu0 %v1090_v62  ;;  %v1278_v27 = vunpack.c.l.bf16 %v908_v0  ;;  %v904_v29 = vld [vmem:[#allocation7 + $0x370] sm:$0xff]  ;;  %v838_v37 = vld [vmem:[#allocation7 + $0x160] sm:$0xff]  ;;  %vm3442_vm4 = vmor %vm567_vm0, %vm568_vm2 }
  0xe7   :  { %1587 = vmatpush.msra.mxu1 %v1154_v48  ;;  %v619_v31 = vsel %vm618_vm15, %v3398_v57, %v3402_v23  ;;  %1607 = vmatpush.msra.mxu2 %v1218_v63  ;;  %v1082_v32 = vunpack.c.l.bf16 %v810_v6  ;;  %v1146_v35 = vunpack.c.l.bf16 %v842_v7  ;;  %v1210_v41 = vunpack.c.l.bf16 %v874_v8  ;;  %v870_v52 = vld [vmem:[#allocation7 + $0x260] sm:$0xff]  ;;  %v804_v48 = vld [vmem:[#allocation7 + $0x50] sm:$0xff] }
  0xe8   :  { %v3419_v25 = vmul.f32 0.5, %v583_v2  ;;  %2832 = vrsqrt.f32 %v3415_v3  ;;  %1627 = vmatpush.msra.mxu3 %v1282_v50  ;;  %v3426_v42 = vmul.f32 %v3327_v54, %v565_v1  ;;  %1568 = vmatpush.msra.mxu0 %v1086_v10  ;;  %v1274_v43 = vunpack.c.l.bf16 %v906_v15  ;;  %v902_v56 = vld [vmem:[#allocation7 + $0x360] sm:$0xff]  ;;  %v836_v63 = vld [vmem:[#allocation7 + $0x150] sm:$0xff] }
  0xe9   :  { %1588 = vmatpush.msra.mxu1 %v1150_v49  ;;  %v1078_v44 = vunpack.c.l.bf16 %v808_v13  ;;  %v1142_v51 = vunpack.c.l.bf16 %v840_v21  ;;  %vm578_vm3 = vweird.f32 %v3368_v19  ;;  %v617_v57 = vsel %vm616_vm14, %v530_v33, %v3389_v34  ;;  %1608 = vmatpush.msra.mxu2 %v1214_v12  ;;  %v900_v6 = vld [vmem:[#allocation7 + $0x350] sm:$0xff]  ;;  %v802_v7 = vld [vmem:[#allocation7 + $0x40] sm:$0xff] }
  0xea   :  { %1628 = vmatpush.msra.mxu3 %v1278_v27  ;;  %v1206_v23 = vunpack.c.l.bf16 %v872_v28  ;;  %v1270_v62 = vunpack.c.l.bf16 %v904_v29  ;;  %v576_v0 = vmul.f32 %v3368_v19, %v575_v24  ;;  %v585_v1 = vsub.f32 1.5, %v3419_v25  ;;  %1569 = vmatpush.msra.mxu0 %v1082_v32  ;;  %v834_v8 = vld [vmem:[#allocation7 + $0x140] sm:$0xff]  ;;  %v800_v27 = vld [vmem:[#allocation7 + $0x30] sm:$0xff] }
  0xeb   :  { %1589 = vmatpush.msra.mxu1 %v1146_v35  ;;  %v1074_v2 = vunpack.c.l.bf16 %v806_v36  ;;  %v1138_v50 = vunpack.c.l.bf16 %v838_v37  ;;  %vm577_vm5 = vweird.f32 %v3316_v30  ;;  %v3448_v55 = vsel %vm620_vm1, %v617_v57, %v619_v31  ;;  %1609 = vmatpush.msra.mxu2 %v1210_v41  ;;  %v866_v15 = vld [vmem:[#allocation7 + $0x240] sm:$0xff]  ;;  %v832_v28 = vld [vmem:[#allocation7 + $0x130] sm:$0xff] }
  0xec   :  { %1629 = vmatpush.msra.mxu3 %v1274_v43  ;;  %v1202_v33 = vunpack.c.l.bf16 %v870_v52  ;;  %v1266_v34 = vunpack.c.l.bf16 %v902_v56  ;;  %v570_v9 = vsel %vm3442_vm4, %v3327_v54, %v3426_v42  ;;  %vm622_vm6 = vcmask 1044484   ;;  %1570 = vmatpush.msra.mxu0 %v1078_v44  ;;  %v898_v13 = vld [vmem:[#allocation7 + $0x340] sm:$0xff]  ;;  %vm3460_vm7 = vmor %vm577_vm5, %vm578_vm3  ;;  %v864_v35 = vld [vmem:[#allocation7 + $0x230] sm:$0xff] }
  0xed   :  { %1590 = vmatpush.msra.mxu1 %v1142_v51  ;;  %v1070_v49 = vunpack.c.l.bf16 %v804_v48  ;;  %v1134_v12 = vunpack.c.l.bf16 %v836_v63  ;;  %vm588_vm8 = vweird.f32 %v3406_v14  ;;  %1610 = vmatpush.msra.mxu2 %v1206_v23  ;;  %v1198_v24 = vunpack.c.l.bf16 %v868_v5  ;;  %v896_v41 = vld [vmem:[#allocation7 + $0x330] sm:$0xff]  ;;  %v798_v43 = vld [vmem:[#allocation7 + $0x20] sm:$0xff] }
  0xee   :  { %v3450_v10 = vpop.eup %2832  ;;  %1630 = vmatpush.msra.mxu3 %v1270_v62  ;;  %v1262_v25 = vunpack.c.l.bf16 %v900_v6  ;;  %v580_v29 = vsel %vm3460_vm7, %v3368_v19, %v576_v0  ;;  %v3471_v30 = vmul.f32 %v3406_v14, %v585_v1  ;;  %1571 = vmatpush.msra.mxu0 %v1074_v2  ;;  %v1066_v31 = vunpack.c.l.bf16 %v802_v7  ;;  %v830_v44 = vld [vmem:[#allocation7 + $0x120] sm:$0xff]  ;;  %v3483_v23 = vld [vmem:[#allocation7 + $0x10] sm:$0xff] }
  0xef   :  { %v592_v54 = vmul.f32 %v3450_v10, %v3415_v3  ;;  %1591 = vmatpush.msra.mxu1 %v1138_v50  ;;  %v1130_v32 = vunpack.c.l.bf16 %v834_v8  ;;  %vm587_vm9 = vweird.f32 %v3378_v20  ;;  %1611 = vmatpush.msra.mxu2 %v1202_v33  ;;  %v1194_v37 = vunpack.c.l.bf16 %v866_v15  ;;  %v3475_v19 = vld [vmem:[#allocation7 + $0x220] sm:$0xff]  ;;  %v828_v1 = vld [vmem:[#allocation7 + $0x110] sm:$0xff] }
  0xf0   :  { %1631 = vmatpush.msra.mxu3 %v1266_v34  ;;  %v1258_v42 = vunpack.c.l.bf16 %v898_v13  ;;  %v612_v51 = vrot.slane %v570_v9, 4  ;;  %vm3479_vm10 = vmor %vm587_vm9, %vm588_vm8  ;;  %vm624_vm11 = vcmask 1046534   ;;  %1572 = vmatpush.msra.mxu0 %v1070_v49  ;;  %v1062_v20 = vunpack.c.l.bf16 %v800_v27  ;;  %v894_v57 = vld [vmem:[#allocation7 + $0x320] sm:$0xff]  ;;  %v3485_v2 = vld [vmem:[#allocation7 + $0x210] sm:$0xff] }
  0xf1   :  { %v593_v36 = vmul.f32 %v3450_v10, %v592_v54  ;;  %1592 = vmatpush.msra.mxu1 %v1134_v12  ;;  %v1126_v56 = vunpack.c.l.bf16 %v832_v28  ;;  %v613_v62 = vrot.slane %v580_v29, 3  ;;  %1612 = vmatpush.msra.mxu2 %v1198_v24  ;;  %v1190_v63 = vunpack.c.l.bf16 %v864_v35  ;;  %v3487_v50 = vld [vmem:[#allocation7 + $0x310] sm:$0xff]  ;;  %v3493_v33 = vld [vmem:[#allocation7] sm:$0xff] }
  0xf2   :  { %1632 = vmatpush.msra.mxu3 %v1262_v25  ;;  %v1254_v0 = vunpack.c.l.bf16 %v896_v41  ;;  %v590_v5 = vsel %vm3479_vm10, %v3406_v14, %v3471_v30  ;;  %vm626_vm12 = vcmask 1045508   ;;  %1573 = vmatpush.msra.mxu0 %v1066_v31  ;;  %v1058_v6 = vunpack.c.l.bf16 %v798_v43  ;;  %v3495_v34 = vld [vmem:[#allocation7 + $0x100] sm:$0xff]  ;;  %v3503_v12 = vld [vmem:[#allocation7 + $0x4f0] sm:$0xff] }
  0xf3   :  { %v594_v48 = vmul.f32 0.5, %v593_v36  ;;  %1593 = vmatpush.msra.mxu1 %v1130_v32  ;;  %v1122_v17 = vunpack.c.l.bf16 %v830_v44  ;;  %v3497_v7 = vld [vmem:[#allocation7 + $0x200] sm:$0xff]  ;;  %vm598_vm13 = vweird.f32 %v3450_v10  ;;  %1613 = vmatpush.msra.mxu2 %v1194_v37  ;;  %v1186_v9 = vunpack.c.l.bf16 %v3475_v19  ;;  %v3505_v15 = vld [vmem:[#allocation7 + $0x5f0] sm:$0xff] }
  0xf4   :  { %1633 = vmatpush.msra.mxu3 %v1258_v42  ;;  %v1250_v49 = vunpack.c.l.bf16 %v894_v57  ;;  %v3501_v14 = vld [vmem:[#allocation7 + $0x300] sm:$0xff]  ;;  %vm597_vm0 = vweird.f32 %v3415_v3  ;;  %vm628_vm2 = vcmask 1043456   ;;  %1574 = vmatpush.msra.mxu0 %v1062_v20  ;;  %v1054_v13 = vunpack.c.l.bf16 %v3483_v23  ;;  %v3509_v54 = vld [vmem:[#allocation7 + $0x6f0] sm:$0xff] }
  0xf5   :  { %v595_v8 = vsub.f32 1.5, %v594_v48  ;;  %1594 = vmatpush.msra.mxu1 %v1126_v56  ;;  %v1118_v21 = vunpack.c.l.bf16 %v828_v1  ;;  %v3511_v24 = vld [vmem:[#allocation7 + $0x7f0] sm:$0xff]  ;;  %v3513_v25 = vld [vmem:[#allocation7 + $0x4e0] sm:$0xff]  ;;  %v623_v28 = vsel %vm622_vm6, %v612_v51, %v613_v62  ;;  %1614 = vmatpush.msra.mxu2 %v1190_v63  ;;  %v1182_v29 = vunpack.c.l.bf16 %v3485_v2  ;;  %vm3529_vm3 = vmor %vm597_vm0, %vm598_vm13 }
  0xf6   :  { %1634 = vmatpush.msra.mxu3 %v1254_v0  ;;  %v1246_v30 = vunpack.c.l.bf16 %v3487_v50  ;;  %v3519_v31 = vld [vmem:[#allocation7 + $0x5e0] sm:$0xff]  ;;  %v614_v36 = vrot.slane %v590_v5, 2  ;;  %1575 = vmatpush.msra.mxu0 %v1058_v6  ;;  %v1050_v37 = vunpack.c.l.bf16 %v3493_v33  ;;  %v1114_v42 = vunpack.c.l.bf16 %v3495_v34  ;;  %v3536_v44 = vld [vmem:[#allocation7 + $0x4d0] sm:$0xff] }
  0xf7   :  { %v596_v27 = vmul.f32 %v3450_v10, %v595_v8  ;;  %v3521_v32 = vld [vmem:[#allocation7 + $0x6e0] sm:$0xff]  ;;  %1595 = vmatpush.msra.mxu1 %v1122_v17  ;;  %v1178_v43 = vunpack.c.l.bf16 %v3497_v7  ;;  %v3538_v19 = vld [vmem:[#allocation7 + $0x5d0] sm:$0xff]  ;;  %1615 = vmatpush.msra.mxu2 %v1186_v9  ;;  %v1242_v51 = vunpack.c.l.bf16 %v3501_v14  ;;  %v1366_v52 = vunpack.c.l.bf16 %v3503_v12 }
  0xf8   :  { %v3523_v35 = vld [vmem:[#allocation7 + $0x7e0] sm:$0xff]  ;;  %1635 = vmatpush.msra.mxu3 %v1250_v49  ;;  %v1430_v20 = vunpack.c.l.bf16 %v3505_v15  ;;  %v3546_v56 = vld [vmem:[#allocation7 + $0x6d0] sm:$0xff]  ;;  %1576 = vmatpush.msra.mxu0 %v1054_v13  ;;  %v1558_v63 = vunpack.c.l.bf16 %v3511_v24  ;;  %v1362_v0 = vunpack.c.l.bf16 %v3513_v25  ;;  %v1426_v5 = vunpack.c.l.bf16 %v3519_v31 }
  0xf9   :  { %v600_v3 = vsel %vm3529_vm3, %v3450_v10, %v596_v27  ;;  %v3548_v57 = vld [vmem:[#allocation7 + $0x7d0] sm:$0xff]  ;;  %v3550_v23 = vld [vmem:[#allocation7 + $0x4c0] sm:$0xff]  ;;  %1596 = vmatpush.msra.mxu1 %v1118_v21  ;;  %v1494_v10 = vunpack.c.l.bf16 %v3509_v54  ;;  %1616 = vmatpush.msra.mxu2 %v1182_v29  ;;  %v1490_v6 = vunpack.c.l.bf16 %v3521_v32  ;;  %v1554_v17 = vunpack.c.l.bf16 %v3523_v35 }
  0xfa   :  { %v359_v62 = vld [vmem:[#allocation10] ss:$2 sm:$0xff]  ;;  %v615_v48 = vrot.slane %v600_v3, 1  ;;  %1636 = vmatpush.msra.mxu3 %v1246_v30  ;;  %v1358_v33 = vunpack.c.l.bf16 %v3536_v44  ;;  %v3565_v34 = vld [vmem:[#allocation7 + $0x4b0] sm:$0xff]  ;;  %1577 = vmatpush.msra.mxu0 %v1050_v37  ;;  %v1422_v49 = vunpack.c.l.bf16 %v3538_v19  ;;  %v1486_v12 = vunpack.c.l.bf16 %v3546_v56 }
  0xfb   :  { %v3555_v1 = vld [vmem:[#allocation7 + $0x5c0] sm:$0xff]  ;;  %v3567_v7 = vld [vmem:[#allocation7 + $0x5b0] sm:$0xff]  ;;  %1597 = vmatpush.msra.mxu1 %v1114_v42  ;;  %v1550_v15 = vunpack.c.l.bf16 %v3548_v57  ;;  %1617 = vmatpush.msra.mxu2 %v1178_v43  ;;  %v1354_v27 = vunpack.c.l.bf16 %v3550_v23  ;;  %v1350_v43 = vunpack.c.l.bf16 %v3565_v34 }
  0xfc   :  { %v3557_v2 = vld [vmem:[#allocation7 + $0x6c0] sm:$0xff]  ;;  %v3569_v8 = vld [vmem:[#allocation7 + $0x6b0] sm:$0xff]  ;;  %v625_v9 = vsel %vm624_vm11, %v614_v36, %v615_v48  ;;  %1637 = vmatpush.msra.mxu3 %v1242_v51  ;;  %v1418_v29 = vunpack.c.l.bf16 %v3555_v1  ;;  %1642 = vmatpush.msrb.mxu0 %v1366_v52  ;;  %v1414_v3 = vunpack.c.l.bf16 %v3567_v7 }
  0xfd   :  { %v3559_v50 = vld [vmem:[#allocation7 + $0x7c0] sm:$0xff]  ;;  %v3575_v13 = vld [vmem:[#allocation7 + $0x7b0] sm:$0xff]  ;;  %v627_v25 = vsel %vm626_vm12, %v623_v28, %v625_v9  ;;  %v1482_v30 = vunpack.c.l.bf16 %v3557_v2  ;;  %1662 = vmatpush.msrb.mxu1 %v1430_v20  ;;  %1682 = vmatpush.msrb.mxu2 %v1494_v10  ;;  %v1478_v48 = vunpack.c.l.bf16 %v3569_v8 }
  0xfe   :  { %v3577_v21 = vld [vmem:[#allocation7 + $0x4a0] sm:$0xff]  ;;  %v3589_v37 = vld [vmem:[#allocation7 + $0x490] sm:$0xff]  ;;  %v629_v42 = vsel %vm628_vm2, %v3448_v55, %v627_v25  ;;  %v1546_v28 = vunpack.c.l.bf16 %v3559_v50  ;;  %1702 = vmatpush.msrb.mxu3 %v1558_v63  ;;  %1643 = vmatpush.msrb.mxu0 %v1362_v0 }
  0xff   :  { %v3579_v24 = vld [vmem:[#allocation7 + $0x5a0] sm:$0xff]  ;;  %v3596_v51 = vmul.f32 %v629_v42, %v359_v62  ;;  %1663 = vmatpush.msrb.mxu1 %v1426_v5  ;;  %v3605_v62 = vld [vmem:[#allocation7 + $0x590] sm:$0xff]  ;;  %1683 = vmatpush.msrb.mxu2 %v1490_v6 }
 0x100   :  { %v3585_v41 = vld [vmem:[#allocation7 + $0x6a0] sm:$0xff]  ;;  %1703 = vmatpush.msrb.mxu3 %v1554_v17  ;;  %1644 = vmatpush.msrb.mxu0 %v1358_v33  ;;  %v1406_v17 = vunpack.c.l.bf16 %v3605_v62 }
 0x101   :  { %v3587_v36 = vld [vmem:[#allocation7 + $0x7a0] sm:$0xff]  ;;  %v4928_v10 = vperm.slane %v3596_v51, 0  ;;  %v4926_v63 = vperm.slane %v3596_v51, 1  ;;  %v4925_v42 = vperm.slane %v3596_v51, 2  ;;  %v4922_v53 = vperm.slane %v3596_v51, 3  ;;  %1664 = vmatpush.msrb.mxu1 %v1422_v49  ;;  %1684 = vmatpush.msrb.mxu2 %v1486_v12  ;;  %v3639_v12 = vld [vmem:[#allocation7 + $0x790] sm:$0xff] }
 0x102   :  { %v4921_v0 = vperm.slane %v3596_v51, 4  ;;  %v4923_v5 = vperm.slane %v3596_v51, 5  ;;  %v4924_v20 = vperm.slane %v3596_v51, 6  ;;  %v4927_v25 = vperm.slane %v3596_v51, 7  ;;  %1704 = vmatpush.msrb.mxu3 %v1550_v15  ;;  %1645 = vmatpush.msrb.mxu0 %v1354_v27  ;;  %v3650_v9 = vld [vmem:[#allocation7 + $0x780] sm:$0xff] }
 0x103   :  { %v650_v52 = vmul.f32 %v4926_v63, %v3220_v18  ;;  %v651_v55 = vmul.f32 %v4925_v42, %v3234_v45  ;;  %v652_v6 = vmul.f32 %v4922_v53, %v3237_v47  ;;  %v3637_v47 = vld [vmem:[#allocation7 + $0x690] sm:$0xff]  ;;  %1665 = vmatpush.msrb.mxu1 %v1418_v29  ;;  %1685 = vmatpush.msrb.mxu2 %v1482_v30 }
 0x104   :  { %v653_v33 = vmul.f32 %v4921_v0, %v3277_v26  ;;  %v654_v49 = vmul.f32 %v4923_v5, %v3297_v61  ;;  %v655_v18 = vmul.f32 %v4924_v20, %v3309_v22  ;;  %v656_v45 = vmul.f32 %v4927_v25, %v3366_v11  ;;  %v3644_v5 = vld [vmem:[#allocation7 + $0x480] sm:$0xff]  ;;  %1705 = vmatpush.msrb.mxu3 %v1546_v28  ;;  %v3662_v30 = vld [vmem:[#allocation7 + $0x770] sm:$0xff] }
 0x105   :  { %v649_v26 = vmul.f32 %v4928_v10, %v3217_v16  ;;  %v665_v0 = vrot.slane %v650_v52, 7  ;;  %v666_v53 = vrot.slane %v651_v55, 6  ;;  %v667_v61 = vrot.slane %v652_v6, 5  ;;  %v3646_v22 = vld [vmem:[#allocation7 + $0x580] sm:$0xff]  ;;  %5099 = vst [vmem:[#allocation19_spill] sm:$0xff] %v3650_v9  ;;  %v3652_v16 = vld [vmem:[#allocation7 + $0x470] sm:$0xff]  ;;  %1646 = vmatpush.msrb.mxu0 %v1350_v43  ;;  %1666 = vmatpush.msrb.mxu1 %v1414_v3 }
 0x106   :  { %5097 = vst [vmem:[#allocation17_spill] sm:$0xff] %v3646_v22  ;;  %v3648_v20 = vld [vmem:[#allocation7 + $0x680] sm:$0xff]  ;;  %v668_v15 = vrot.slane %v653_v33, 4  ;;  %v669_v42 = vrot.slane %v654_v49, 3  ;;  %v670_v63 = vrot.slane %v655_v18, 2  ;;  %v671_v25 = vrot.slane %v656_v45, 1  ;;  %1686 = vmatpush.msrb.mxu2 %v1478_v48 }
 0x107   :  { %5098 = vst [vmem:[#allocation18_spill] sm:$0xff] %v3648_v20  ;;  %v361_v11 = vld [vmem:[#allocation10 + $0x1] ss:$2 sm:$0xff]  ;;  %v672_v27 = vsel %vm616_vm14, %v649_v26, %v665_v0  ;;  %v673_v29 = vsel %vm618_vm15, %v666_v53, %v667_v61  ;;  %v1470_v55 = vunpack.c.l.bf16 %v3637_v47  ;;  %v1534_v52 = vunpack.c.l.bf16 %v3639_v12  ;;  %v3658_v6 = vld [vmem:[#allocation7 + $0x570] sm:$0xff] }
 0x108   :  { %5100 = vst [vmem:[#allocation20_spill] sm:$0xff] %v3652_v16  ;;  %v3660_v33 = vld [vmem:[#allocation7 + $0x670] sm:$0xff]  ;;  %v674_v28 = vsel %vm620_vm1, %v672_v27, %v673_v29  ;;  %v675_v49 = vsel %vm622_vm6, %v668_v15, %v669_v42  ;;  %v676_v0 = vsel %vm624_vm11, %v670_v63, %v671_v25  ;;  %v5104_v53 = vunpack.c.l.bf16 %v3575_v13  ;;  %v3672_v3 = vld [vmem:[#allocation7 + $0x460] sm:$0xff] }
 0x109   :  { %5101 = vst [vmem:[#allocation21_spill] sm:$0xff] %v3658_v6  ;;  %v1338_v43 = vunpack.c.l.bf16 %v3644_v5  ;;  %v3674_v18 = vld [vmem:[#allocation7 + $0x560] sm:$0xff]  ;;  %v677_v26 = vsel %vm626_vm12, %v675_v49, %v676_v0  ;;  %v5107_v42 = vunpack.c.l.bf16 %v3577_v21  ;;  %v5108_v25 = vunpack.c.l.bf16 %v3579_v24  ;;  %v3688_v27 = vld [vmem:[#allocation7 + $0x450] sm:$0xff] }
 0x10a   :  { %5102 = vst [vmem:[#allocation22_spill] sm:$0xff] %v3660_v33  ;;  %1706 = vmatpush.msrb.mxu3 %v5104_v53  ;;  %v3676_v45 = vld [vmem:[#allocation7 + $0x660] sm:$0xff]  ;;  %v1402_v48 = vunpack.c.l.bf16 %v3646_v22  ;;  %v1466_v63 = vunpack.c.l.bf16 %v3648_v20  ;;  %v1530_v61 = vunpack.c.l.bf16 %v3650_v9  ;;  %v3690_v29 = vld [vmem:[#allocation7 + $0x550] sm:$0xff]  ;;  %v678_v49 = vsel %vm628_vm2, %v674_v28, %v677_v26 }
 0x10b   :  { %5103 = vst [vmem:[#allocation23_spill] sm:$0xff] %v3662_v30  ;;  %1647 = vmatpush.msrb.mxu0 %v5107_v42  ;;  %1667 = vmatpush.msrb.mxu1 %v5108_v25  ;;  %v3686_v15 = vld [vmem:[#allocation7 + $0x760] sm:$0xff]  ;;  %v5112_v0 = vunpack.c.l.bf16 %v3585_v41  ;;  %v5113_v53 = vunpack.c.l.bf16 %v3587_v36  ;;  %v1334_v42 = vunpack.c.l.bf16 %v3652_v16  ;;  %v1398_v25 = vunpack.c.l.bf16 %v3658_v6  ;;  %v3700_v9 = vld [vmem:[#allocation7 + $0x650] sm:$0xff] }
 0x10c   :  { %5105 = vst [vmem:[#allocation24_spill] sm:$0xff] %v3672_v3  ;;  %v1462_v10 = vunpack.c.l.bf16 %v3660_v33  ;;  %v3702_v20 = vld [vmem:[#allocation7 + $0x750] sm:$0xff]  ;;  %v3704_v22 = vsub.f32 %v361_v11, %v678_v49  ;;  %v5116_v28 = vunpack.c.l.bf16 %v3589_v37  ;;  %v1526_v26 = vunpack.c.l.bf16 %v3662_v30  ;;  %v3711_v16 = vld [vmem:[#allocation7 + $0x440] sm:$0xff] }
 0x10d   :  { %5106 = vst [vmem:[#allocation25_spill] sm:$0xff] %v3674_v18  ;;  %1687 = vmatpush.msrb.mxu2 %v5112_v0  ;;  %1707 = vmatpush.msrb.mxu3 %v5113_v53  ;;  %v1330_v0 = vunpack.c.l.bf16 %v3672_v3  ;;  %v1394_v53 = vunpack.c.l.bf16 %v3674_v18  ;;  %v3713_v6 = vld [vmem:[#allocation7 + $0x540] sm:$0xff]  ;;  %v1458_v33 = vunpack.c.l.bf16 %v3676_v45  ;;  %v1522_v11 = vunpack.c.l.bf16 %v3686_v15 }
 0x10e   :  { %5109 = vst [vmem:[#allocation26_spill] sm:$0xff] %v3686_v15  ;;  %1648 = vmatpush.msrb.mxu0 %v5116_v28  ;;  %1668 = vmatpush.msrb.mxu1 %v1406_v17  ;;  %v1326_v49 = vunpack.c.l.bf16 %v3688_v27  ;;  %v1390_v17 = vunpack.c.l.bf16 %v3690_v29  ;;  %v5119_v28 = vperm.slane %v3596_v51, 7  ;;  %v697_v18 = vperm.slane %v3704_v22, 7  ;;  %v3727_v15 = vld [vmem:[#allocation7 + $0x640] sm:$0xff] }
 0x10f   :  { %5110 = vst [vmem:[#allocation27_spill] sm:$0xff] %v3688_v27  ;;  %1688 = vmatpush.msrb.mxu2 %v1470_v55  ;;  %1708 = vmatpush.msrb.mxu3 %v1534_v52  ;;  %v1454_v30 = vunpack.c.l.bf16 %v3700_v9  ;;  %v1518_v55 = vunpack.c.l.bf16 %v3702_v20  ;;  %v1322_v52 = vunpack.c.l.bf16 %v3711_v16  ;;  %v1386_v27 = vunpack.c.l.bf16 %v3713_v6 }
 0x110   :  { %5111 = vst [vmem:[#allocation28_spill] sm:$0xff] %v3690_v29  ;;  %v688_v3 = vmul.f32 %v5119_v28, %v3287_v46  ;;  %1649 = vmatpush.msrb.mxu0 %v1338_v43  ;;  %1669 = vmatpush.msrb.mxu1 %v1402_v48  ;;  %v3729_v29 = vld [vmem:[#allocation7 + $0x740] sm:$0xff]  ;;  %v5121_v46 = vperm.slane %v3596_v51, 0  ;;  %v690_v43 = vperm.slane %v3704_v22, 0 }
 0x111   :  { %5114 = vst [vmem:[#allocation29_spill] sm:$0xff] %v3700_v9  ;;  %1689 = vmatpush.msrb.mxu2 %v1466_v63  ;;  %1709 = vmatpush.msrb.mxu3 %v1530_v61  ;;  %v3737_v63 = vld [vmem:[#allocation7 + $0x430] sm:$0xff]  ;;  %v5123_v61 = vperm.slane %v3596_v51, 1 }
 0x112   :  { %5115 = vst [vmem:[#allocation30_spill] sm:$0xff] %v3702_v20  ;;  %v681_v28 = vmul.f32 %v5121_v46, %v3190_v38  ;;  %v3735_v48 = vadd.f32 %v697_v18, %v688_v3  ;;  %1650 = vmatpush.msrb.mxu0 %v1334_v42  ;;  %1670 = vmatpush.msrb.mxu1 %v1398_v25  ;;  %v5124_v20 = vperm.slane %v3596_v51, 2  ;;  %v3746_v38 = vld [vmem:[#allocation7 + $0x530] sm:$0xff]  ;;  %v692_v42 = vperm.slane %v3704_v22, 2 }
 0x113   :  { %5117 = vst [vmem:[#allocation31_spill] sm:$0xff] %v3711_v16  ;;  %v691_v16 = vperm.slane %v3704_v22, 1  ;;  %1690 = vmatpush.msrb.mxu2 %v1462_v10  ;;  %1710 = vmatpush.msrb.mxu3 %v1526_v26  ;;  %v3748_v3 = vld [vmem:[#allocation7 + $0x630] sm:$0xff]  ;;  %v5127_v25 = vperm.slane %v3596_v51, 3  ;;  %v693_v46 = vperm.slane %v3704_v22, 3 }
 0x114   :  { %5118 = vst [vmem:[#allocation32_spill] sm:$0xff] %v3713_v6  ;;  %v682_v6 = vmul.f32 %v5123_v61, %v3192_v39  ;;  %v683_v9 = vmul.f32 %v5124_v20, %v3204_v58  ;;  %v3750_v18 = vadd.f32 %v690_v43, %v681_v28  ;;  %v728_v61 = vmul.f32 1.442695, %v3735_v48  ;;  %1651 = vmatpush.msrb.mxu0 %v1330_v0  ;;  %v3760_v10 = vld [vmem:[#allocation7 + $0x730] sm:$0xff]  ;;  %v3765_v43 = vld [vmem:[#allocation7 + $0x420] sm:$0xff] }
 0x115   :  { %5120 = vst [vmem:[#allocation33_spill] sm:$0xff] %v3729_v29  ;;  %v684_v39 = vmul.f32 %v5127_v25, %v3206_v59  ;;  %1671 = vmatpush.msrb.mxu1 %v1394_v53  ;;  %v1450_v58 = vunpack.c.l.bf16 %v3727_v15  ;;  %v1514_v20 = vunpack.c.l.bf16 %v3729_v29  ;;  %1691 = vmatpush.msrb.mxu2 %v1458_v33  ;;  %v1318_v28 = vunpack.c.l.bf16 %v3737_v63  ;;  %v3767_v59 = vld [vmem:[#allocation7 + $0x520] sm:$0xff] }
 0x116   :  { %5122 = vst [vmem:[#allocation34_spill] sm:$0xff] %v3737_v63  ;;  %v3762_v26 = vadd.f32 %v691_v16, %v682_v6  ;;  %1711 = vmatpush.msrb.mxu3 %v1522_v11  ;;  %v714_v25 = vmul.f32 1.442695, %v3750_v18  ;;  %v3770_v0 = vadd.f32 %v692_v42, %v683_v9  ;;  %2834 = vpow2.f32 %v728_v61  ;;  %1652 = vmatpush.msrb.mxu0 %v1326_v49  ;;  %v3776_v33 = vld [vmem:[#allocation7 + $0x620] sm:$0xff]  ;;  %v3782_v42 = vld [vmem:[#allocation7 + $0x410] sm:$0xff] }
 0x117   :  { %5125 = vst [vmem:[#allocation35_spill] sm:$0xff] %v3746_v38  ;;  %v3772_v53 = vadd.f32 %v693_v46, %v684_v39  ;;  %1672 = vmatpush.msrb.mxu1 %v1390_v17  ;;  %v1382_v16 = vunpack.c.l.bf16 %v3746_v38  ;;  %v1446_v6 = vunpack.c.l.bf16 %v3748_v3  ;;  %v3778_v11 = vld [vmem:[#allocation7 + $0x720] sm:$0xff]  ;;  %1692 = vmatpush.msrb.mxu2 %v1454_v30  ;;  %v1510_v9 = vunpack.c.l.bf16 %v3760_v10  ;;  %v3784_v39 = vld [vmem:[#allocation7 + $0x510] sm:$0xff] }
 0x118   :  { %5126 = vst [vmem:[#allocation36_spill] sm:$0xff] %v3748_v3  ;;  %v716_v63 = vmul.f32 1.442695, %v3762_v26  ;;  %1712 = vmatpush.msrb.mxu3 %v1518_v55  ;;  %2836 = vpow2.f32 %v714_v25  ;;  %v718_v49 = vmul.f32 1.442695, %v3770_v0  ;;  %1653 = vmatpush.msrb.mxu0 %v1322_v52  ;;  %v1314_v46 = vunpack.c.l.bf16 %v3765_v43  ;;  %v3790_v3 = vld [vmem:[#allocation7 + $0x610] sm:$0xff] }
 0x119   :  { %5128 = vst [vmem:[#allocation37_spill] sm:$0xff] %v3760_v10  ;;  %v720_v17 = vmul.f32 1.442695, %v3772_v53  ;;  %1673 = vmatpush.msrb.mxu1 %v1386_v27  ;;  %v1378_v61 = vunpack.c.l.bf16 %v3767_v59  ;;  %v3792_v30 = vld [vmem:[#allocation7 + $0x710] sm:$0xff]  ;;  %v3794_v55 = vld [vmem:[#allocation7 + $0x400] sm:$0xff]  ;;  %1693 = vmatpush.msrb.mxu2 %v1450_v58  ;;  %v1442_v25 = vunpack.c.l.bf16 %v3776_v33  ;;  %v1506_v10 = vunpack.c.l.bf16 %v3778_v11 }
 0x11a   :  { %5129 = vst [vmem:[#allocation38_spill] sm:$0xff] %v3765_v43  ;;  %2838 = vpow2.f32 %v716_v63  ;;  %1713 = vmatpush.msrb.mxu3 %v1514_v20  ;;  %v3798_v38 = vld [vmem:[#allocation7 + $0x500] sm:$0xff]  ;;  %1654 = vmatpush.msrb.mxu0 %v1318_v28  ;;  %v1310_v52 = vunpack.c.l.bf16 %v3782_v42  ;;  %v1438_v63 = vunpack.c.l.bf16 %v3790_v3  ;;  %v1502_v58 = vunpack.c.l.bf16 %v3792_v30 }
 0x11b   :  { %5130 = vst [vmem:[#allocation39_spill] sm:$0xff] %v3767_v59  ;;  %v3800_v27 = vld [vmem:[#allocation7 + $0x600] sm:$0xff]  ;;  %2840 = vpow2.f32 %v718_v49  ;;  %1674 = vmatpush.msrb.mxu1 %v1382_v16  ;;  %v1374_v59 = vunpack.c.l.bf16 %v3784_v39  ;;  %1694 = vmatpush.msrb.mxu2 %v1446_v6  ;;  %v1306_v20 = vunpack.c.l.bf16 %v3794_v55  ;;  %v1370_v28 = vunpack.c.l.bf16 %v3798_v38 }
 0x11c   :  { %5131 = vst [vmem:[#allocation40_spill] sm:$0xff] %v3776_v33  ;;  %v3804_v43 = vld [vmem:[#allocation7 + $0x700] sm:$0xff]  ;;  %2842 = vpow2.f32 %v720_v17  ;;  %1714 = vmatpush.msrb.mxu3 %v1510_v9  ;;  %1655 = vmatpush.msrb.mxu0 %v1314_v46  ;;  %v1434_v16 = vunpack.c.l.bf16 %v3800_v27  ;;  %v5141_v49 = vperm.slane %v3596_v51, 4  ;;  %v694_v6 = vperm.slane %v3704_v22, 4 }
 0x11d   :  { %5132 = vst [vmem:[#allocation41_spill] sm:$0xff] %v3778_v11  ;;  %v2835_v11 = vpop.eup %2834  ;;  %1675 = vmatpush.msrb.mxu1 %v1378_v61  ;;  %1695 = vmatpush.msrb.mxu2 %v1442_v25  ;;  %v1498_v17 = vunpack.c.l.bf16 %v3804_v43  ;;  %v695_v61 = vperm.slane %v3704_v22, 5  ;;  %v5143_v25 = vperm.slane %v3596_v51, 6  ;;  %vm778_vm4 = vcmp.gt.f32.partialorder %v3750_v18, 20.0  ;;  %v2894_v29 = vld [vmem:[#allocation7 + $0xe0] sm:$0xff] }
 0x11e   :  { %5133 = vst [vmem:[#allocation42_spill] sm:$0xff] %v3782_v42  ;;  %v2837_v9 = vpop.eup %2836  ;;  %1715 = vmatpush.msrb.mxu3 %v1506_v10  ;;  %1656 = vmatpush.msrb.mxu0 %v1310_v52  ;;  %vm779_vm5 = vcmp.gt.f32.partialorder %v3762_v26, 20.0  ;;  %vm780_vm6 = vcmp.gt.f32.partialorder %v3770_v0, 20.0  ;;  %vm781_vm7 = vcmp.gt.f32.partialorder %v3772_v53, 20.0  ;;  %vm785_vm9 = vcmp.gt.f32.partialorder %v3735_v48, 20.0 }
 0x11f   :  { %5134 = vst [vmem:[#allocation43_spill] sm:$0xff] %v3784_v39  ;;  %v685_v39 = vmul.f32 %v5141_v49, %v3228_v40  ;;  %1676 = vmatpush.msrb.mxu1 %v1374_v59  ;;  %v687_v10 = vmul.f32 %v5143_v25, %v3257_v4  ;;  %1696 = vmatpush.msrb.mxu2 %v1438_v63 }
 0x120   :  { %5135 = vst [vmem:[#allocation44_spill] sm:$0xff] %v3790_v3  ;;  %1716 = vmatpush.msrb.mxu3 %v1502_v58  ;;  %1657 = vmatpush.msrb.mxu0 %v1306_v20 }
 0x121   :  { %5136 = vst [vmem:[#allocation45_spill] sm:$0xff] %v3792_v30  ;;  %v730_v30 = vadd.f32 2.0, %v2837_v9  ;;  %v3821_v40 = vadd.f32 %v694_v6, %v685_v39  ;;  %1677 = vmatpush.msrb.mxu1 %v1370_v28  ;;  %1697 = vmatpush.msrb.mxu2 %v1434_v16  ;;  %v2890_v16 = vld [vmem:[#allocation7 + $0xf0] sm:$0xff] }
 0x122   :  { %5137 = vst [vmem:[#allocation46_spill] sm:$0xff] %v3794_v55  ;;  %v5142_v55 = vperm.slane %v3596_v51, 5  ;;  %1717 = vmatpush.msrb.mxu3 %v1498_v17  ;;  %v2891_v17 = vld [vmem:[#allocation7 + $0x1f0] sm:$0xff] }
 0x123   :  { %5138 = vst [vmem:[#allocation47_spill] sm:$0xff] %v3798_v38  ;;  %v696_v38 = vperm.slane %v3704_v22, 6  ;;  %v738_v22 = vmul.f32 %v2837_v9, %v730_v30  ;;  %v722_v59 = vmul.f32 1.442695, %v3821_v40  ;;  %v1111_v9 = vunpack.c.h.bf16 %v2890_v16  ;;  %v2893_v16 = vld [vmem:[#allocation7 + $0x3f0] sm:$0xff] }
 0x124   :  { %5139 = vst [vmem:[#allocation48_spill] sm:$0xff] %v3800_v27  ;;  %v686_v46 = vmul.f32 %v5142_v55, %v3250_v60  ;;  %v2839_v27 = vpop.eup %2838  ;;  %v737_v60 = vadd.f32 2.0, %v2835_v11  ;;  %v1175_v25 = vunpack.c.h.bf16 %v2891_v17  ;;  %v1303_v17 = vunpack.c.h.bf16 %v2893_v16  ;;  %v2901_v16 = vld [vmem:[#allocation7 + $0x3d0] sm:$0xff] }
 0x125   :  { %5140 = vst [vmem:[#allocation49_spill] sm:$0xff] %v3804_v43  ;;  %v2841_v49 = vpop.eup %2840  ;;  %v731_v43 = vadd.f32 2.0, %v2839_v27  ;;  %v3829_v39 = vadd.f32 %v696_v38, %v687_v10  ;;  %v754_v58 = vadd.f32 2.0, %v738_v22  ;;  %2844 = vpow2.f32 %v722_v59 }
 0x126   :  { %v3826_v3 = vadd.f32 %v695_v61, %v686_v46  ;;  %v2843_v55 = vpop.eup %2842  ;;  %v732_v52 = vadd.f32 2.0, %v2841_v49  ;;  %v3832_v20 = vmul.f32 %v2835_v11, %v737_v60  ;;  %v746_v10 = vmul.f32 %v738_v22, %v3750_v18 }
 0x127   :  { %v739_v51 = vmul.f32 %v2839_v27, %v731_v43  ;;  %v733_v4 = vadd.f32 2.0, %v2843_v55  ;;  %v726_v28 = vmul.f32 1.442695, %v3829_v39  ;;  %vm782_vm8 = vcmp.gt.f32.partialorder %v3821_v40, 20.0 }
 0x128   :  { %v724_v63 = vmul.f32 1.442695, %v3826_v3  ;;  %v740_v6 = vmul.f32 %v2841_v49, %v732_v52  ;;  %v761_v43 = vadd.f32 2.0, %v3832_v20  ;;  %v2892_v49 = vld [vmem:[#allocation7 + $0x2f0] sm:$0xff]  ;;  %vm783_vm10 = vcmp.gt.f32.partialorder %v3826_v3, 20.0 }
 0x129   :  { %v755_v46 = vadd.f32 2.0, %v739_v51  ;;  %v741_v61 = vmul.f32 %v2843_v55, %v733_v4  ;;  %v1239_v60 = vunpack.c.h.bf16 %v2892_v49  ;;  %v747_v59 = vmul.f32 %v739_v51, %v3762_v26 }
 0x12a   :  { %2846 = vpow2.f32 %v724_v63  ;;  %v756_v30 = vadd.f32 2.0, %v740_v6  ;;  %vm784_vm11 = vcmp.gt.f32.partialorder %v3829_v39, 20.0 }
 0x12b   :  { %2848 = vrcp.f32 %v754_v58  ;;  %v757_v38 = vadd.f32 2.0, %v741_v61  ;;  %v2845_v27 = vpop.eup %2844 }
 0x12c   :  { %2850 = vrcp.f32 %v755_v46  ;;  %v734_v55 = vadd.f32 2.0, %v2845_v27  ;;  %v748_v46 = vmul.f32 %v740_v6, %v3770_v0 }
 0x12d   :  { %2852 = vrcp.f32 %v756_v30 }
 0x12e   :  { %2854 = vrcp.f32 %v757_v38  ;;  %v742_v30 = vmul.f32 %v2845_v27, %v734_v55  ;;  %v749_v38 = vmul.f32 %v741_v61, %v3772_v53  ;;  %v2895_v27 = vld [vmem:[#allocation7 + $0x1e0] sm:$0xff] }
 0x12f   :  { %2856 = vpow2.f32 %v726_v28 }
 0x130   :  { %v2847_v11 = vpop.eup %2846  ;;  %2858 = vrcp.f32 %v761_v43 }
 0x131   :  { %v2849_v52 = vpop.eup %2848  ;;  %v735_v4 = vadd.f32 2.0, %v2847_v11 }
 0x132   :  { %v2851_v63 = vpop.eup %2850  ;;  %v770_v58 = vmul.f32 %v2849_v52, %v746_v10  ;;  %v1107_v10 = vunpack.c.h.bf16 %v2894_v29  ;;  %v758_v52 = vadd.f32 2.0, %v742_v30  ;;  %v2896_v29 = vld [vmem:[#allocation7 + $0x2e0] sm:$0xff] }
 0x133   :  { %v2853_v22 = vpop.eup %2852  ;;  %v771_v28 = vmul.f32 %v2851_v63, %v747_v59  ;;  %v743_v49 = vmul.f32 %v2847_v11, %v735_v4  ;;  %v1171_v11 = vunpack.c.h.bf16 %v2895_v27  ;;  %v1235_v59 = vunpack.c.h.bf16 %v2896_v29  ;;  %v2903_v27 = vld [vmem:[#allocation7 + $0x1c0] sm:$0xff] }
 0x134   :  { %v2855_v42 = vpop.eup %2854  ;;  %v3847_v51 = vsel %vm778_vm4, %v3750_v18, %v770_v58  ;;  %v772_v33 = vmul.f32 %v2853_v22, %v748_v46  ;;  %2860 = vrcp.f32 %v758_v52  ;;  %v2898_v58 = vld [vmem:[#allocation7 + $0xd0] sm:$0xff]  ;;  %v2902_v52 = vld [vmem:[#allocation7 + $0xc0] sm:$0xff] }
 0x135   :  { %5144 = vst [vmem:[#allocation50_spill] sm:$0xff] %v3847_v51  ;;  %v2857_v6 = vpop.eup %2856  ;;  %1578 = vmatmul.f32.vlgmr.msra.gmra.mxu0 %v3847_v51  ;;  %v3853_v61 = vsel %vm779_vm5, %v3762_v26, %v771_v28  ;;  %v773_v43 = vmul.f32 %v2855_v42, %v749_v38  ;;  %v759_v55 = vadd.f32 2.0, %v743_v49  ;;  %v2897_v42 = vld [vmem:[#allocation7 + $0x3e0] sm:$0xff]  ;;  %v1103_v46 = vunpack.c.h.bf16 %v2898_v58  ;;  %v2900_v22 = vld [vmem:[#allocation7 + $0x2d0] sm:$0xff] }
 0x136   :  { %5145 = vst [vmem:[#allocation51_spill] sm:$0xff] %v3853_v61  ;;  %1598 = vmatmul.f32.vlgmr.msra.gmra.mxu1 %v3853_v61  ;;  %v3859_v18 = vsel %vm780_vm6, %v3770_v0, %v772_v33  ;;  %1722 = vmatpush.msra.mxu0 %v1111_v9  ;;  %v736_v4 = vadd.f32 2.0, %v2857_v6  ;;  %v1299_v63 = vunpack.c.h.bf16 %v2897_v42  ;;  %v2859_v0 = vpop.eup %2858  ;;  %v2899_v33 = vld [vmem:[#allocation7 + $0x1d0] sm:$0xff]  ;;  %v1231_v28 = vunpack.c.h.bf16 %v2900_v22  ;;  %v2904_v29 = vld [vmem:[#allocation7 + $0x2c0] sm:$0xff] }
 0x137   :  { %5146 = vst [vmem:[#allocation52_spill] sm:$0xff] %v3859_v18  ;;  %1618 = vmatmul.f32.vlgmr.msra.gmra.mxu2 %v3859_v18  ;;  %v3865_v26 = vsel %vm781_vm7, %v3772_v53, %v773_v43  ;;  %1742 = vmatpush.msra.mxu1 %v1175_v25  ;;  %2862 = vrcp.f32 %v759_v55  ;;  %v1167_v9 = vunpack.c.h.bf16 %v2899_v33  ;;  %v1295_v53 = vunpack.c.h.bf16 %v2901_v16  ;;  %v2905_v58 = vld [vmem:[#allocation7 + $0x3c0] sm:$0xff] }
 0x138   :  { %5147 = vst [vmem:[#allocation53_spill] sm:$0xff] %v3865_v26  ;;  %1638 = vmatmul.f32.vlgmr.msra.gmra.mxu3 %v3865_v26  ;;  %1762 = vmatpush.msra.mxu2 %v1239_v60  ;;  %v744_v38 = vmul.f32 %v2857_v6, %v736_v4  ;;  %v1099_v25 = vunpack.c.h.bf16 %v2902_v52  ;;  %v753_v43 = vmul.f32 %v3832_v20, %v3735_v48  ;;  %v1163_v55 = vunpack.c.h.bf16 %v2903_v27  ;;  %v2906_v4 = vld [vmem:[#allocation7 + $0xb0] sm:$0xff]  ;;  %v2910_v52 = vld [vmem:[#allocation7 + $0xa0] sm:$0xff] }
 0x139   :  { %1782 = vmatpush.msra.mxu3 %v1303_v17  ;;  %1723 = vmatpush.msra.mxu0 %v1107_v10  ;;  %v1227_v60 = vunpack.c.h.bf16 %v2904_v29  ;;  %v1291_v6 = vunpack.c.h.bf16 %v2905_v58  ;;  %v750_v17 = vmul.f32 %v742_v30, %v3821_v40  ;;  %v1095_v33 = vunpack.c.h.bf16 %v2906_v4  ;;  %v2912_v29 = vld [vmem:[#allocation7 + $0x1a0] sm:$0xff]  ;;  %v2914_v58 = vld [vmem:[#allocation7 + $0x90] sm:$0xff] }
 0x13a   :  { %1743 = vmatpush.msra.mxu1 %v1171_v11  ;;  %1763 = vmatpush.msra.mxu2 %v1235_v59  ;;  %v760_v42 = vadd.f32 2.0, %v744_v38  ;;  %v777_v10 = vmul.f32 %v2859_v0, %v753_v43  ;;  %v2861_v22 = vpop.eup %2860  ;;  %v751_v20 = vmul.f32 %v743_v49, %v3826_v3  ;;  %v2908_v0 = vld [vmem:[#allocation7 + $0x1b0] sm:$0xff]  ;;  %v2911_v43 = vld [vmem:[#allocation7 + $0x2a0] sm:$0xff] }
 0x13b   :  { %1783 = vmatpush.msra.mxu3 %v1299_v63  ;;  %1724 = vmatpush.msra.mxu0 %v1103_v46  ;;  %v774_v59 = vmul.f32 %v2861_v22, %v750_v17  ;;  %v2907_v63 = vld [vmem:[#allocation7 + $0x2b0] sm:$0xff]  ;;  %v1219_v27 = vunpack.c.h.bf16 %v2911_v43 }
 0x13c   :  { %1744 = vmatpush.msra.mxu1 %v1167_v9  ;;  %1764 = vmatpush.msra.mxu2 %v1231_v28  ;;  %2864 = vrcp.f32 %v760_v42  ;;  %v1223_v46 = vunpack.c.h.bf16 %v2907_v63  ;;  %v1159_v9 = vunpack.c.h.bf16 %v2908_v0  ;;  %v2909_v28 = vld [vmem:[#allocation7 + $0x3b0] sm:$0xff]  ;;  %v2913_v42 = vld [vmem:[#allocation7 + $0x3a0] sm:$0xff] }
 0x13d   :  { %v2863_v11 = vpop.eup %2862  ;;  %1784 = vmatpush.msra.mxu3 %v1295_v53  ;;  %1725 = vmatpush.msra.mxu0 %v1099_v25  ;;  %v1287_v49 = vunpack.c.h.bf16 %v2909_v28  ;;  %v3876_v16 = vsel %vm782_vm8, %v3821_v40, %v774_v59  ;;  %v3879_v53 = vsel %vm785_vm9, %v3735_v48, %v777_v10  ;;  %v1091_v25 = vunpack.c.h.bf16 %v2910_v52  ;;  %v2915_v17 = vld [vmem:[#allocation7 + $0x290] sm:$0xff]  ;;  %v2918_v59 = vld [vmem:[#allocation7 + $0x80] sm:$0xff] }
 0x13e   :  { %1745 = vmatpush.msra.mxu1 %v1163_v55  ;;  %1765 = vmatpush.msra.mxu2 %v1227_v60  ;;  %v775_v30 = vmul.f32 %v2863_v11, %v751_v20  ;;  %v1155_v60 = vunpack.c.h.bf16 %v2912_v29  ;;  %v1283_v40 = vunpack.c.h.bf16 %v2913_v42  ;;  %v752_v48 = vmul.f32 %v744_v38, %v3829_v39  ;;  %v2917_v20 = vld [vmem:[#allocation7 + $0x390] sm:$0xff]  ;;  %v2919_v38 = vld [vmem:[#allocation7 + $0x180] sm:$0xff] }
 0x13f   :  { %1785 = vmatpush.msra.mxu3 %v1291_v6  ;;  %1726 = vmatpush.msra.mxu0 %v1095_v33  ;;  %v1087_v6 = vunpack.c.h.bf16 %v2914_v58  ;;  %v1215_v10 = vunpack.c.h.bf16 %v2915_v17  ;;  %v1279_v11 = vunpack.c.h.bf16 %v2917_v20  ;;  %v1083_v63 = vunpack.c.h.bf16 %v2918_v59  ;;  %v2921_v28 = vld [vmem:[#allocation7 + $0x380] sm:$0xff]  ;;  %v2922_v52 = vld [vmem:[#allocation7 + $0x70] sm:$0xff] }
 0x140   :  { %1658 = vmatmul.f32.vlgmr.msrb.gmra.mxu0 %v3876_v16  ;;  %v3883_v55 = vsel %vm783_vm10, %v3826_v3, %v775_v30  ;;  %1718 = vmatmul.f32.vlgmr.msrb.gmra.mxu3 %v3879_v53  ;;  %v2916_v3 = vld [vmem:[#allocation7 + $0x190] sm:$0xff]  ;;  %v2920_v30 = vld [vmem:[#allocation7 + $0x280] sm:$0xff] }
 0x141   :  { %1678 = vmatmul.f32.vlgmr.msrb.gmra.mxu1 %v3883_v55  ;;  %1766 = vmatpush.msra.mxu2 %v1223_v46  ;;  %v1151_v33 = vunpack.c.h.bf16 %v2916_v3  ;;  %v1147_v46 = vunpack.c.h.bf16 %v2919_v38  ;;  %v1211_v0 = vunpack.c.h.bf16 %v2920_v30  ;;  %v2923_v43 = vld [vmem:[#allocation7 + $0x170] sm:$0xff]  ;;  %v2927_v58 = vld [vmem:[#allocation7 + $0x160] sm:$0xff] }
 0x142   :  { %v2865_v4 = vpop.eup %2864  ;;  %1746 = vmatpush.msra.mxu1 %v1159_v9  ;;  %1786 = vmatpush.msra.mxu3 %v1287_v49  ;;  %v1275_v49 = vunpack.c.h.bf16 %v2921_v28  ;;  %v2924_v29 = vld [vmem:[#allocation7 + $0x270] sm:$0xff]  ;;  %v2928_v17 = vld [vmem:[#allocation7 + $0x260] sm:$0xff] }
 0x143   :  { %v776_v22 = vmul.f32 %v2865_v4, %v752_v48  ;;  %1727 = vmatpush.msra.mxu0 %v1091_v25  ;;  %1767 = vmatpush.msra.mxu2 %v1219_v27  ;;  %v1079_v25 = vunpack.c.h.bf16 %v2922_v52  ;;  %v1143_v27 = vunpack.c.h.bf16 %v2923_v43  ;;  %v2925_v42 = vld [vmem:[#allocation7 + $0x370] sm:$0xff]  ;;  %v2926_v48 = vld [vmem:[#allocation7 + $0x60] sm:$0xff] }
 0x144   :  { %1747 = vmatpush.msra.mxu1 %v1155_v60  ;;  %1787 = vmatpush.msra.mxu3 %v1283_v40  ;;  %v1207_v60 = vunpack.c.h.bf16 %v2924_v29  ;;  %v1271_v40 = vunpack.c.h.bf16 %v2925_v42  ;;  %v2929_v4 = vld [vmem:[#allocation7 + $0x360] sm:$0xff]  ;;  %v2931_v20 = vld [vmem:[#allocation7 + $0x150] sm:$0xff] }
 0x145   :  { %v3890_v9 = vsel %vm784_vm11, %v3829_v39, %v776_v22  ;;  %1728 = vmatpush.msra.mxu0 %v1087_v6  ;;  %1768 = vmatpush.msra.mxu2 %v1215_v10  ;;  %v1075_v39 = vunpack.c.h.bf16 %v2926_v48  ;;  %v1139_v6 = vunpack.c.h.bf16 %v2927_v58  ;;  %v1203_v10 = vunpack.c.h.bf16 %v2928_v17  ;;  %v2932_v59 = vld [vmem:[#allocation7 + $0x250] sm:$0xff]  ;;  %v2934_v30 = vld [vmem:[#allocation7 + $0x40] sm:$0xff] }
 0x146   :  { %1698 = vmatmul.f32.vlgmr.msrb.gmra.mxu2 %v3890_v9  ;;  %1748 = vmatpush.msra.mxu1 %v1151_v33  ;;  %v1267_v3 = vunpack.c.h.bf16 %v2929_v4  ;;  %v2930_v33 = vld [vmem:[#allocation7 + $0x50] sm:$0xff]  ;;  %v2935_v28 = vld [vmem:[#allocation7 + $0x140] sm:$0xff] }
 0x147   :  { %1788 = vmatpush.msra.mxu3 %v1279_v11  ;;  %1729 = vmatpush.msra.mxu0 %v1083_v63  ;;  %v1071_v22 = vunpack.c.h.bf16 %v2930_v33  ;;  %v1135_v11 = vunpack.c.h.bf16 %v2931_v20  ;;  %v1199_v63 = vunpack.c.h.bf16 %v2932_v59  ;;  %v2933_v38 = vld [vmem:[#allocation7 + $0x350] sm:$0xff]  ;;  %v2936_v52 = vld [vmem:[#allocation7 + $0x240] sm:$0xff] }
 0x148   :  { %1749 = vmatpush.msra.mxu1 %v1147_v46  ;;  %1769 = vmatpush.msra.mxu2 %v1211_v0  ;;  %v1263_v46 = vunpack.c.h.bf16 %v2933_v38  ;;  %v1067_v0 = vunpack.c.h.bf16 %v2934_v30  ;;  %v2937_v43 = vld [vmem:[#allocation7 + $0x340] sm:$0xff]  ;;  %v2938_v29 = vld [vmem:[#allocation7 + $0x30] sm:$0xff] }
 0x149   :  { %1789 = vmatpush.msra.mxu3 %v1275_v49  ;;  %1730 = vmatpush.msra.mxu0 %v1079_v25  ;;  %v1131_v49 = vunpack.c.h.bf16 %v2935_v28  ;;  %v1195_v25 = vunpack.c.h.bf16 %v2936_v52  ;;  %v2939_v42 = vld [vmem:[#allocation7 + $0x130] sm:$0xff]  ;;  %v2942_v17 = vld [vmem:[#allocation7 + $0x20] sm:$0xff] }
 0x14a   :  { %1750 = vmatpush.msra.mxu1 %v1143_v27  ;;  %1770 = vmatpush.msra.mxu2 %v1207_v60  ;;  %v1259_v27 = vunpack.c.h.bf16 %v2937_v43  ;;  %v1063_v60 = vunpack.c.h.bf16 %v2938_v29  ;;  %v2940_v48 = vld [vmem:[#allocation7 + $0x230] sm:$0xff]  ;;  %v2943_v4 = vld [vmem:[#allocation7 + $0x120] sm:$0xff] }
 0x14b   :  { %1790 = vmatpush.msra.mxu3 %v1271_v40  ;;  %1731 = vmatpush.msra.mxu0 %v1075_v39  ;;  %v1127_v40 = vunpack.c.h.bf16 %v2939_v42  ;;  %v1191_v39 = vunpack.c.h.bf16 %v2940_v48  ;;  %v2941_v58 = vld [vmem:[#allocation7 + $0x330] sm:$0xff]  ;;  %v2944_v33 = vld [vmem:[#allocation7 + $0x220] sm:$0xff]  ;;  %v1243_v42 = vunpack.c.h.bf16 %v3501_v14  ;;  %v1427_v14 = vunpack.c.h.bf16 %v3519_v31 }
 0x14c   :  { %1751 = vmatpush.msra.mxu1 %v1139_v6  ;;  %1771 = vmatpush.msra.mxu2 %v1203_v10  ;;  %v1255_v6 = vunpack.c.h.bf16 %v2941_v58  ;;  %v1059_v10 = vunpack.c.h.bf16 %v2942_v17  ;;  %v2945_v20 = vld [vmem:[#allocation7 + $0x320] sm:$0xff]  ;;  %v2946_v59 = vld [vmem:[#allocation7 + $0x10] sm:$0xff]  ;;  %v1355_v31 = vunpack.c.h.bf16 %v3550_v23  ;;  %v1543_v23 = vunpack.c.h.bf16 %v3575_v13 }
 0x14d   :  { %1791 = vmatpush.msra.mxu3 %v1267_v3  ;;  %1732 = vmatpush.msra.mxu0 %v1071_v22  ;;  %v1123_v3 = vunpack.c.h.bf16 %v2943_v4  ;;  %v1187_v22 = vunpack.c.h.bf16 %v2944_v33  ;;  %v2947_v38 = vld [vmem:[#allocation7 + $0x110] sm:$0xff]  ;;  %v2950_v52 = vld [vmem:[#allocation7] sm:$0xff]  ;;  %v1491_v33 = vunpack.c.h.bf16 %v3521_v32  ;;  %v1419_v32 = vunpack.c.h.bf16 %v3555_v1 }
 0x14e   :  { %1752 = vmatpush.msra.mxu1 %v1135_v11  ;;  %1772 = vmatpush.msra.mxu2 %v1199_v63  ;;  %v1251_v11 = vunpack.c.h.bf16 %v2945_v20  ;;  %v1055_v63 = vunpack.c.h.bf16 %v2946_v59  ;;  %v2948_v30 = vld [vmem:[#allocation7 + $0x210] sm:$0xff]  ;;  %v2951_v43 = vld [vmem:[#allocation7 + $0x100] sm:$0xff]  ;;  %v1423_v20 = vunpack.c.h.bf16 %v3538_v19  ;;  %v1551_v59 = vunpack.c.h.bf16 %v3548_v57 }
 0x14f   :  { %1792 = vmatpush.msra.mxu3 %v1263_v46  ;;  %1733 = vmatpush.msra.mxu0 %v1067_v0  ;;  %v1119_v46 = vunpack.c.h.bf16 %v2947_v38  ;;  %v1183_v0 = vunpack.c.h.bf16 %v2948_v30  ;;  %v2949_v28 = vld [vmem:[#allocation7 + $0x310] sm:$0xff]  ;;  %v2952_v29 = vld [vmem:[#allocation7 + $0x200] sm:$0xff]  ;;  %v1351_v19 = vunpack.c.h.bf16 %v3565_v34  ;;  %v1479_v57 = vunpack.c.h.bf16 %v3569_v8  ;;  %v5149_v38 = vld [vmem:[#allocation18_spill] sm:$0xff] }
 0x150   :  { %1753 = vmatpush.msra.mxu1 %v1131_v49  ;;  %1773 = vmatpush.msra.mxu2 %v1195_v25  ;;  %v1247_v49 = vunpack.c.h.bf16 %v2949_v28  ;;  %v1051_v25 = vunpack.c.h.bf16 %v2950_v52  ;;  %v2955_v17 = vld [vmem:[#allocation7 + $0x7f0] sm:$0xff]  ;;  %v2956_v4 = vld [vmem:[#allocation7 + $0x4e0] sm:$0xff]  ;;  %v1347_v1 = vunpack.c.h.bf16 %v3577_v21  ;;  %v1539_v34 = vunpack.c.h.bf16 %v3587_v36  ;;  %v5151_v30 = vld [vmem:[#allocation20_spill] sm:$0xff] }
 0x151   :  { %1793 = vmatpush.msra.mxu3 %v1259_v27  ;;  %1734 = vmatpush.msra.mxu0 %v1063_v60  ;;  %v1115_v27 = vunpack.c.h.bf16 %v2951_v43  ;;  %v1179_v60 = vunpack.c.h.bf16 %v2952_v29  ;;  %v1407_v8 = vunpack.c.h.bf16 %v3605_v62  ;;  %v1471_v13 = vunpack.c.h.bf16 %v3637_v47  ;;  %v5152_v47 = vld [vmem:[#allocation21_spill] sm:$0xff]  ;;  %v5153_v28 = vld [vmem:[#allocation22_spill] sm:$0xff]  ;;  %v5155_v52 = vld [vmem:[#allocation24_spill] sm:$0xff] }
 0x152   :  { %1754 = vmatpush.msra.mxu1 %v1127_v40  ;;  %1774 = vmatpush.msra.mxu2 %v1191_v39  ;;  %v2953_v40 = vld [vmem:[#allocation7 + $0x4f0] sm:$0xff]  ;;  %v1535_v21 = vunpack.c.h.bf16 %v3639_v12  ;;  %v1467_v36 = vunpack.c.h.bf16 %v5149_v38  ;;  %v1335_v62 = vunpack.c.h.bf16 %v5151_v30  ;;  %v1463_v12 = vunpack.c.h.bf16 %v5153_v28  ;;  %v5178_v30 = vld [vmem:[#allocation47_spill] sm:$0xff]  ;;  %v3957_v28 = vld [vmem:[#allocation7 + $0xf8] sm:$0xff] }
 0x153   :  { %1794 = vmatpush.msra.mxu3 %v1255_v6  ;;  %1735 = vmatpush.msra.mxu0 %v1059_v10  ;;  %v1367_v48 = vunpack.c.h.bf16 %v2953_v40  ;;  %v2954_v39 = vld [vmem:[#allocation7 + $0x5f0] sm:$0xff]  ;;  %v1495_v6 = vunpack.c.h.bf16 %v3509_v54  ;;  %v1559_v10 = vunpack.c.h.bf16 %v2955_v17  ;;  %v1555_v54 = vunpack.c.h.bf16 %v3523_v35  ;;  %v5158_v40 = vld [vmem:[#allocation27_spill] sm:$0xff] }
 0x154   :  { %1755 = vmatpush.msra.mxu1 %v1123_v3  ;;  %1775 = vmatpush.msra.mxu2 %v1187_v22  ;;  %v1431_v58 = vunpack.c.h.bf16 %v2954_v39  ;;  %v1363_v3 = vunpack.c.h.bf16 %v2956_v4  ;;  %v1359_v22 = vunpack.c.h.bf16 %v3536_v44  ;;  %v1483_v35 = vunpack.c.h.bf16 %v3557_v2  ;;  %v5156_v43 = vld [vmem:[#allocation25_spill] sm:$0xff]  ;;  %v5159_v39 = vld [vmem:[#allocation28_spill] sm:$0xff] }
 0x155   :  { %1795 = vmatpush.msra.mxu3 %v1251_v11  ;;  %1736 = vmatpush.msra.mxu0 %v1055_v63  ;;  %v1487_v11 = vunpack.c.h.bf16 %v3546_v56  ;;  %v1547_v44 = vunpack.c.h.bf16 %v3559_v50  ;;  %v1415_v56 = vunpack.c.h.bf16 %v3567_v7  ;;  %v1411_v2 = vunpack.c.h.bf16 %v3579_v24  ;;  %v5176_v38 = vld [vmem:[#allocation45_spill] sm:$0xff] }
 0x156   :  { %1756 = vmatpush.msra.mxu1 %v1119_v46  ;;  %1776 = vmatpush.msra.mxu2 %v1183_v0  ;;  %v1475_v50 = vunpack.c.h.bf16 %v3585_v41  ;;  %v1343_v7 = vunpack.c.h.bf16 %v3589_v37  ;;  %v1339_v24 = vunpack.c.h.bf16 %v3644_v5  ;;  %v5148_v41 = vld [vmem:[#allocation17_spill] sm:$0xff]  ;;  %v5150_v37 = vld [vmem:[#allocation19_spill] sm:$0xff]  ;;  %v1399_v0 = vunpack.c.h.bf16 %v5152_v47  ;;  %v5179_v47 = vld [vmem:[#allocation48_spill] sm:$0xff] }
 0x157   :  { %1796 = vmatpush.msra.mxu3 %v1247_v49  ;;  %1737 = vmatpush.msra.mxu0 %v1051_v25  ;;  %v1403_v63 = vunpack.c.h.bf16 %v5148_v41  ;;  %v1531_v46 = vunpack.c.h.bf16 %v5150_v37  ;;  %v5154_v5 = vld [vmem:[#allocation23_spill] sm:$0xff]  ;;  %v1331_v25 = vunpack.c.h.bf16 %v5155_v52  ;;  %v1459_v29 = vunpack.c.h.bf16 %v3676_v45  ;;  %v5163_v45 = vld [vmem:[#allocation32_spill] sm:$0xff]  ;;  %v5177_v37 = vld [vmem:[#allocation46_spill] sm:$0xff] }
 0x158   :  { %1757 = vmatpush.msra.mxu1 %v1115_v27  ;;  %1777 = vmatpush.msra.mxu2 %v1179_v60  ;;  %v1527_v49 = vunpack.c.h.bf16 %v5154_v5  ;;  %v1395_v27 = vunpack.c.h.bf16 %v5156_v43  ;;  %v5157_v60 = vld [vmem:[#allocation26_spill] sm:$0xff]  ;;  %v5175_v41 = vld [vmem:[#allocation44_spill] sm:$0xff] }
 0x159   :  { %1797 = vmatpush.msra.mxu3 %v1243_v42  ;;  %1738 = vmatmul.f32.vlgmr.msra.gmra.mxu0 %v3847_v51  ;;  %v1523_v42 = vunpack.c.h.bf16 %v5157_v60  ;;  %v3962_v52 = vld [vmem:[#allocation7 + $0x2f8] sm:$0xff]  ;;  %v3966_v43 = vld [vmem:[#allocation7 + $0xe8] sm:$0xff] }
 0x15a   :  { %1758 = vmatmul.f32.vlgmr.msra.gmra.mxu1 %v3853_v61  ;;  %1778 = vmatmul.f32.vlgmr.msra.gmra.mxu2 %v3859_v18  ;;  %v3971_v60 = vld [vmem:[#allocation7 + $0x2e8] sm:$0xff] }
 0x15b   :  { %1798 = vmatmul.f32.vlgmr.msra.gmra.mxu3 %v3865_v26  ;;  %1802 = vmatpush.msrb.mxu0 %v1367_v48  ;;  %v1327_v48 = vunpack.c.h.bf16 %v5158_v40  ;;  %v1240_v40 = vunpack.c.l.bf16 %v3962_v52 }
 0x15c   :  { %1822 = vmatpush.msrb.mxu1 %v1431_v58  ;;  %1842 = vmatpush.msrb.mxu2 %v1495_v6  ;;  %v1391_v58 = vunpack.c.h.bf16 %v5159_v39  ;;  %v5160_v6 = vld [vmem:[#allocation29_spill] sm:$0xff]  ;;  %v3977_v39 = vld [vmem:[#allocation7 + $0xd8] sm:$0xff] }
 0x15d   :  { %1862 = vmatpush.msrb.mxu3 %v1559_v10  ;;  %1803 = vmatpush.msrb.mxu0 %v1363_v3  ;;  %v1455_v17 = vunpack.c.h.bf16 %v5160_v6  ;;  %v5161_v10 = vld [vmem:[#allocation30_spill] sm:$0xff]  ;;  %v5162_v3 = vld [vmem:[#allocation31_spill] sm:$0xff]  ;;  %v1108_v6 = vunpack.c.l.bf16 %v3966_v43 }
 0x15e   :  { %1823 = vmatpush.msrb.mxu1 %v1427_v14  ;;  %1843 = vmatpush.msrb.mxu2 %v1491_v33  ;;  %v1519_v4 = vunpack.c.h.bf16 %v5161_v10  ;;  %v1323_v14 = vunpack.c.h.bf16 %v5162_v3  ;;  %v1387_v33 = vunpack.c.h.bf16 %v5163_v45  ;;  %v3984_v10 = vld [vmem:[#allocation7 + $0x2d8] sm:$0xff]  ;;  %v1236_v3 = vunpack.c.l.bf16 %v3971_v60  ;;  %v3992_v45 = vld [vmem:[#allocation7 + $0xc8] sm:$0xff] }
 0x15f   :  { %1863 = vmatpush.msrb.mxu3 %v1555_v54  ;;  %1804 = vmatpush.msrb.mxu0 %v1359_v22  ;;  %v1451_v54 = vunpack.c.h.bf16 %v3727_v15  ;;  %v5164_v22 = vld [vmem:[#allocation33_spill] sm:$0xff]  ;;  %v5170_v15 = vld [vmem:[#allocation39_spill] sm:$0xff] }
 0x160   :  { %1824 = vmatpush.msrb.mxu1 %v1423_v20  ;;  %1844 = vmatpush.msrb.mxu2 %v1487_v11  ;;  %v1515_v20 = vunpack.c.h.bf16 %v5164_v22  ;;  %v5165_v11 = vld [vmem:[#allocation34_spill] sm:$0xff]  ;;  %v3997_v22 = vld [vmem:[#allocation7 + $0x1c8] sm:$0xff] }
 0x161   :  { %1864 = vmatpush.msrb.mxu3 %v1551_v59  ;;  %1805 = vmatpush.msrb.mxu0 %v1355_v31  ;;  %v1319_v59 = vunpack.c.h.bf16 %v5165_v11  ;;  %v5166_v31 = vld [vmem:[#allocation35_spill] sm:$0xff] }
 0x162   :  { %1825 = vmatpush.msrb.mxu1 %v1419_v32  ;;  %1845 = vmatpush.msrb.mxu2 %v1483_v35  ;;  %v1383_v32 = vunpack.c.h.bf16 %v5166_v31  ;;  %v5167_v35 = vld [vmem:[#allocation36_spill] sm:$0xff] }
 0x163   :  { %1865 = vmatpush.msrb.mxu3 %v1547_v44  ;;  %1806 = vmatpush.msrb.mxu0 %v1351_v19  ;;  %v1447_v44 = vunpack.c.h.bf16 %v5167_v35  ;;  %v5168_v19 = vld [vmem:[#allocation37_spill] sm:$0xff]  ;;  %v4003_v31 = vld [vmem:[#allocation7 + $0x3c8] sm:$0xff] }
 0x164   :  { %1826 = vmatpush.msrb.mxu1 %v1415_v56  ;;  %1846 = vmatpush.msrb.mxu2 %v1479_v57  ;;  %v1511_v56 = vunpack.c.h.bf16 %v5168_v19  ;;  %v5169_v57 = vld [vmem:[#allocation38_spill] sm:$0xff] }
 0x165   :  { %1866 = vmatpush.msrb.mxu3 %v1543_v23  ;;  %1807 = vmatpush.msrb.mxu0 %v1347_v1  ;;  %v1315_v23 = vunpack.c.h.bf16 %v5169_v57  ;;  %v1379_v1 = vunpack.c.h.bf16 %v5170_v15  ;;  %v4009_v19 = vld [vmem:[#allocation7 + $0x1b8] sm:$0xff]  ;;  %v1164_v57 = vunpack.c.l.bf16 %v3997_v22 }
 0x166   :  { %1827 = vmatpush.msrb.mxu1 %v1411_v2  ;;  %1847 = vmatpush.msrb.mxu2 %v1475_v50  ;;  %v5171_v2 = vld [vmem:[#allocation40_spill] sm:$0xff]  ;;  %v4015_v15 = vld [vmem:[#allocation7 + $0x3b8] sm:$0xff] }
 0x167   :  { %1867 = vmatpush.msrb.mxu3 %v1539_v34  ;;  %1808 = vmatpush.msrb.mxu0 %v1343_v7  ;;  %v1443_v50 = vunpack.c.h.bf16 %v5171_v2  ;;  %v5172_v34 = vld [vmem:[#allocation41_spill] sm:$0xff]  ;;  %v1292_v2 = vunpack.c.l.bf16 %v4003_v31 }
 0x168   :  { %1828 = vmatpush.msrb.mxu1 %v1407_v8  ;;  %1848 = vmatpush.msrb.mxu2 %v1471_v13  ;;  %v1507_v7 = vunpack.c.h.bf16 %v5172_v34  ;;  %v5173_v8 = vld [vmem:[#allocation42_spill] sm:$0xff]  ;;  %v4021_v34 = vld [vmem:[#allocation7 + $0x1a8] sm:$0xff] }
 0x169   :  { %1868 = vmatpush.msrb.mxu3 %v1535_v21  ;;  %1809 = vmatpush.msrb.mxu0 %v1339_v24  ;;  %v1311_v13 = vunpack.c.h.bf16 %v5173_v8  ;;  %v5174_v21 = vld [vmem:[#allocation43_spill] sm:$0xff]  ;;  %v1160_v8 = vunpack.c.l.bf16 %v4009_v19 }
 0x16a   :  { %1829 = vmatpush.msrb.mxu1 %v1403_v63  ;;  %1849 = vmatpush.msrb.mxu2 %v1467_v36  ;;  %v1375_v24 = vunpack.c.h.bf16 %v5174_v21  ;;  %v1439_v63 = vunpack.c.h.bf16 %v5175_v41  ;;  %v1503_v36 = vunpack.c.h.bf16 %v5176_v38  ;;  %v4027_v21 = vld [vmem:[#allocation7 + $0x3a8] sm:$0xff]  ;;  %v1288_v41 = vunpack.c.l.bf16 %v4015_v15  ;;  %v4033_v38 = vld [vmem:[#allocation7 + $0x198] sm:$0xff] }
 0x16b   :  { %1869 = vmatpush.msrb.mxu3 %v1531_v46  ;;  %1810 = vmatpush.msrb.mxu0 %v1335_v62  ;;  %v1307_v46 = vunpack.c.h.bf16 %v5177_v37  ;;  %v1371_v62 = vunpack.c.h.bf16 %v5178_v30  ;;  %v1156_v37 = vunpack.c.l.bf16 %v4021_v34  ;;  %v4039_v30 = vld [vmem:[#allocation7 + $0x398] sm:$0xff] }
 0x16c   :  { %1830 = vmatpush.msrb.mxu1 %v1399_v0  ;;  %1850 = vmatpush.msrb.mxu2 %v1463_v12  ;;  %v1435_v0 = vunpack.c.h.bf16 %v5179_v47  ;;  %v5180_v12 = vld [vmem:[#allocation49_spill] sm:$0xff]  ;;  %v1284_v47 = vunpack.c.l.bf16 %v4027_v21 }
 0x16d   :  { %1870 = vmatpush.msrb.mxu3 %v1527_v49  ;;  %1811 = vmatpush.msrb.mxu0 %v1331_v25  ;;  %v1499_v5 = vunpack.c.h.bf16 %v5180_v12  ;;  %v3960_v49 = vld [vmem:[#allocation7 + $0x1f8] sm:$0xff]  ;;  %v4045_v12 = vld [vmem:[#allocation7 + $0x188] sm:$0xff] }
 0x16e   :  { %1831 = vmatpush.msrb.mxu1 %v1395_v27  ;;  %1851 = vmatpush.msrb.mxu2 %v1459_v29  ;;  %v3964_v25 = vld [vmem:[#allocation7 + $0x3f8] sm:$0xff]  ;;  %v1112_v27 = vunpack.c.l.bf16 %v3957_v28  ;;  %v3969_v29 = vld [vmem:[#allocation7 + $0x1e8] sm:$0xff] }
 0x16f   :  { %1871 = vmatpush.msrb.mxu3 %v1523_v42  ;;  %1812 = vmatpush.msrb.mxu0 %v1327_v48  ;;  %v1176_v42 = vunpack.c.l.bf16 %v3960_v49  ;;  %v3975_v48 = vld [vmem:[#allocation7 + $0x3e8] sm:$0xff] }
 0x170   :  { %1832 = vmatpush.msrb.mxu1 %v1391_v58  ;;  %1852 = vmatpush.msrb.mxu2 %v1455_v17  ;;  %v1304_v58 = vunpack.c.l.bf16 %v3964_v25  ;;  %v3982_v17 = vld [vmem:[#allocation7 + $0x1d8] sm:$0xff] }
 0x171   :  { %1872 = vmatpush.msrb.mxu3 %v1519_v4  ;;  %1813 = vmatpush.msrb.mxu0 %v1323_v14  ;;  %v1172_v4 = vunpack.c.l.bf16 %v3969_v29  ;;  %v3990_v14 = vld [vmem:[#allocation7 + $0x3d8] sm:$0xff]  ;;  %v1168_v11 = vunpack.c.l.bf16 %v3982_v17 }
 0x172   :  { %1833 = vmatpush.msrb.mxu1 %v1387_v33  ;;  %1853 = vmatpush.msrb.mxu2 %v1451_v54  ;;  %v1300_v33 = vunpack.c.l.bf16 %v3975_v48  ;;  %v1104_v54 = vunpack.c.l.bf16 %v3977_v39  ;;  %v1296_v35 = vunpack.c.l.bf16 %v3990_v14 }
 0x173   :  { %1873 = vmatpush.msrb.mxu3 %v1515_v20  ;;  %1814 = vmatpush.msrb.mxu0 %v1319_v59  ;;  %v3999_v20 = vld [vmem:[#allocation7 + $0x2c8] sm:$0xff]  ;;  %v1232_v59 = vunpack.c.l.bf16 %v3984_v10 }
 0x174   :  { %1834 = vmatpush.msrb.mxu1 %v1383_v32  ;;  %1854 = vmatpush.msrb.mxu2 %v1447_v44  ;;  %v4005_v32 = vld [vmem:[#allocation7 + $0xb8] sm:$0xff]  ;;  %v1100_v44 = vunpack.c.l.bf16 %v3992_v45 }
 0x175   :  { %1874 = vmatpush.msrb.mxu3 %v1511_v56  ;;  %1815 = vmatpush.msrb.mxu0 %v1315_v23  ;;  %v4011_v56 = vld [vmem:[#allocation7 + $0x2b8] sm:$0xff]  ;;  %v1228_v23 = vunpack.c.l.bf16 %v3999_v20 }
 0x176   :  { %1835 = vmatpush.msrb.mxu1 %v1379_v1  ;;  %1855 = vmatpush.msrb.mxu2 %v1443_v50  ;;  %v4017_v1 = vld [vmem:[#allocation7 + $0xa8] sm:$0xff]  ;;  %v1096_v50 = vunpack.c.l.bf16 %v4005_v32 }
 0x177   :  { %1875 = vmatpush.msrb.mxu3 %v1507_v7  ;;  %1816 = vmatpush.msrb.mxu0 %v1311_v13  ;;  %v4023_v7 = vld [vmem:[#allocation7 + $0x2a8] sm:$0xff]  ;;  %v1224_v13 = vunpack.c.l.bf16 %v4011_v56 }
 0x178   :  { %1836 = vmatpush.msrb.mxu1 %v1375_v24  ;;  %1856 = vmatpush.msrb.mxu2 %v1439_v63  ;;  %v4029_v24 = vld [vmem:[#allocation7 + $0x98] sm:$0xff]  ;;  %v1092_v63 = vunpack.c.l.bf16 %v4017_v1 }
 0x179   :  { %1876 = vmatpush.msrb.mxu3 %v1503_v36  ;;  %1817 = vmatpush.msrb.mxu0 %v1307_v46  ;;  %v4035_v36 = vld [vmem:[#allocation7 + $0x298] sm:$0xff]  ;;  %v1220_v46 = vunpack.c.l.bf16 %v4023_v7 }
 0x17a   :  { %1837 = vmatpush.msrb.mxu1 %v1371_v62  ;;  %1857 = vmatpush.msrb.mxu2 %v1435_v0  ;;  %v4041_v62 = vld [vmem:[#allocation7 + $0x88] sm:$0xff]  ;;  %v1088_v0 = vunpack.c.l.bf16 %v4029_v24 }
 0x17b   :  { %1877 = vmatpush.msrb.mxu3 %v1499_v5  ;;  %1818 = vmatmul.f32.vlgmr.msrb.gmra.mxu0 %v3876_v16  ;;  %v4047_v5 = vld [vmem:[#allocation7 + $0x288] sm:$0xff] }
 0x17c   :  { %1838 = vmatmul.f32.vlgmr.msrb.gmra.mxu1 %v3883_v55  ;;  %1858 = vmatmul.f32.vlgmr.msrb.gmra.mxu2 %v3890_v9 }
 0x17d   :  { %1878 = vmatmul.f32.vlgmr.msrb.gmra.mxu3 %v3879_v53  ;;  %1882 = vmatpush.msra.mxu0 %v1112_v27  ;;  %v1152_v27 = vunpack.c.l.bf16 %v4033_v38 }
 0x17e   :  { %1902 = vmatpush.msra.mxu1 %v1176_v42  ;;  %1922 = vmatpush.msra.mxu2 %v1240_v40  ;;  %v1216_v42 = vunpack.c.l.bf16 %v4035_v36  ;;  %v4051_v40 = vld [vmem:[#allocation7 + $0x388] sm:$0xff] }
 0x17f   :  { %1942 = vmatpush.msra.mxu3 %v1304_v58  ;;  %1883 = vmatpush.msra.mxu0 %v1108_v6  ;;  %v4053_v58 = vld [vmem:[#allocation7 + $0x78] sm:$0xff]  ;;  %v1280_v6 = vunpack.c.l.bf16 %v4039_v30 }
 0x180   :  { %1903 = vmatpush.msra.mxu1 %v1172_v4  ;;  %1923 = vmatpush.msra.mxu2 %v1236_v3  ;;  %v1084_v4 = vunpack.c.l.bf16 %v4041_v62  ;;  %v4057_v3 = vld [vmem:[#allocation7 + $0x178] sm:$0xff] }
 0x181   :  { %1943 = vmatpush.msra.mxu3 %v1300_v33  ;;  %1884 = vmatpush.msra.mxu0 %v1104_v54  ;;  %v4059_v33 = vld [vmem:[#allocation7 + $0x278] sm:$0xff]  ;;  %v1148_v54 = vunpack.c.l.bf16 %v4045_v12 }
 0x182   :  { %1904 = vmatpush.msra.mxu1 %v1168_v11  ;;  %1924 = vmatpush.msra.mxu2 %v1232_v59  ;;  %5181 = vst [vmem:[#allocation17_spill] sm:$0xff] %v4059_v33  ;;  %v1212_v11 = vunpack.c.l.bf16 %v4047_v5  ;;  %v4063_v59 = vld [vmem:[#allocation7 + $0x378] sm:$0xff] }
 0x183   :  { %1944 = vmatpush.msra.mxu3 %v1296_v35  ;;  %1885 = vmatpush.msra.mxu0 %v1100_v44  ;;  %5182 = vst [vmem:[#allocation18_spill] sm:$0xff] %v4063_v59  ;;  %v4065_v35 = vld [vmem:[#allocation7 + $0x68] sm:$0xff]  ;;  %v1276_v44 = vunpack.c.l.bf16 %v4051_v40 }
 0x184   :  { %1905 = vmatpush.msra.mxu1 %v1164_v57  ;;  %1925 = vmatpush.msra.mxu2 %v1228_v23  ;;  %5183 = vst [vmem:[#allocation19_spill] sm:$0xff] %v4065_v35  ;;  %v1080_v57 = vunpack.c.l.bf16 %v4053_v58  ;;  %v4069_v23 = vld [vmem:[#allocation7 + $0x168] sm:$0xff] }
 0x185   :  { %1945 = vmatpush.msra.mxu3 %v1292_v2  ;;  %1886 = vmatpush.msra.mxu0 %v1096_v50  ;;  %5184 = vst [vmem:[#allocation20_spill] sm:$0xff] %v4069_v23  ;;  %v4071_v2 = vld [vmem:[#allocation7 + $0x268] sm:$0xff]  ;;  %v1144_v50 = vunpack.c.l.bf16 %v4057_v3 }
 0x186   :  { %1906 = vmatpush.msra.mxu1 %v1160_v8  ;;  %1926 = vmatpush.msra.mxu2 %v1224_v13  ;;  %5185 = vst [vmem:[#allocation21_spill] sm:$0xff] %v4071_v2  ;;  %v1208_v8 = vunpack.c.l.bf16 %v4059_v33  ;;  %v4075_v13 = vld [vmem:[#allocation7 + $0x368] sm:$0xff] }
 0x187   :  { %1946 = vmatpush.msra.mxu3 %v1288_v41  ;;  %1887 = vmatpush.msra.mxu0 %v1092_v63  ;;  %5186 = vst [vmem:[#allocation22_spill] sm:$0xff] %v4075_v13  ;;  %v4077_v41 = vld [vmem:[#allocation7 + $0x58] sm:$0xff]  ;;  %v1272_v63 = vunpack.c.l.bf16 %v4063_v59  ;;  %v4089_v33 = vld [vmem:[#allocation7 + $0x48] sm:$0xff] }
 0x188   :  { %1907 = vmatpush.msra.mxu1 %v1156_v37  ;;  %1927 = vmatpush.msra.mxu2 %v1220_v46  ;;  %5187 = vst [vmem:[#allocation23_spill] sm:$0xff] %v4077_v41  ;;  %v1076_v37 = vunpack.c.l.bf16 %v4065_v35  ;;  %v4081_v46 = vld [vmem:[#allocation7 + $0x158] sm:$0xff]  ;;  %v4093_v35 = vld [vmem:[#allocation7 + $0x148] sm:$0xff] }
 0x189   :  { %1947 = vmatpush.msra.mxu3 %v1284_v47  ;;  %1888 = vmatpush.msra.mxu0 %v1088_v0  ;;  %5188 = vst [vmem:[#allocation24_spill] sm:$0xff] %v4081_v46  ;;  %v4083_v47 = vld [vmem:[#allocation7 + $0x258] sm:$0xff]  ;;  %v1140_v0 = vunpack.c.l.bf16 %v4069_v23  ;;  %v4095_v59 = vld [vmem:[#allocation7 + $0x248] sm:$0xff] }
 0x18a   :  { %1908 = vmatpush.msra.mxu1 %v1152_v27  ;;  %1928 = vmatpush.msra.mxu2 %v1216_v42  ;;  %5189 = vst [vmem:[#allocation25_spill] sm:$0xff] %v4083_v47  ;;  %v1204_v27 = vunpack.c.l.bf16 %v4071_v2  ;;  %v4087_v42 = vld [vmem:[#allocation7 + $0x358] sm:$0xff]  ;;  %v4099_v2 = vld [vmem:[#allocation7 + $0x348] sm:$0xff] }
 0x18b   :  { %1948 = vmatpush.msra.mxu3 %v1280_v6  ;;  %1889 = vmatpush.msra.mxu0 %v1084_v4  ;;  %5190 = vst [vmem:[#allocation26_spill] sm:$0xff] %v4087_v42  ;;  %v1268_v6 = vunpack.c.l.bf16 %v4075_v13  ;;  %v1072_v4 = vunpack.c.l.bf16 %v4077_v41  ;;  %v4101_v23 = vld [vmem:[#allocation7 + $0x38] sm:$0xff] }
 0x18c   :  { %1909 = vmatpush.msra.mxu1 %v1148_v54  ;;  %1929 = vmatpush.msra.mxu2 %v1212_v11  ;;  %5191 = vst [vmem:[#allocation27_spill] sm:$0xff] %v4089_v33  ;;  %v1136_v54 = vunpack.c.l.bf16 %v4081_v46  ;;  %v1200_v11 = vunpack.c.l.bf16 %v4083_v47  ;;  %v4105_v41 = vld [vmem:[#allocation7 + $0x138] sm:$0xff]  ;;  %v4113_v46 = vld [vmem:[#allocation7 + $0x28] sm:$0xff] }
 0x18d   :  { %1949 = vmatpush.msra.mxu3 %v1276_v44  ;;  %1890 = vmatpush.msra.mxu0 %v1080_v57  ;;  %5192 = vst [vmem:[#allocation28_spill] sm:$0xff] %v4093_v35  ;;  %v1264_v44 = vunpack.c.l.bf16 %v4087_v42  ;;  %v1068_v57 = vunpack.c.l.bf16 %v4089_v33  ;;  %v4107_v13 = vld [vmem:[#allocation7 + $0x238] sm:$0xff]  ;;  %v4117_v33 = vld [vmem:[#allocation7 + $0x128] sm:$0xff] }
 0x18e   :  { %5193 = vst [vmem:[#allocation29_spill] sm:$0xff] %v4095_v59  ;;  %1910 = vmatpush.msra.mxu1 %v1144_v50  ;;  %1930 = vmatpush.msra.mxu2 %v1208_v8  ;;  %v1132_v50 = vunpack.c.l.bf16 %v4093_v35  ;;  %v1196_v8 = vunpack.c.l.bf16 %v4095_v59  ;;  %v4111_v47 = vld [vmem:[#allocation7 + $0x338] sm:$0xff]  ;;  %v4119_v42 = vld [vmem:[#allocation7 + $0x228] sm:$0xff] }
 0x18f   :  { %5194 = vst [vmem:[#allocation30_spill] sm:$0xff] %v4099_v2  ;;  %1950 = vmatpush.msra.mxu3 %v1272_v63  ;;  %1891 = vmatpush.msra.mxu0 %v1076_v37  ;;  %v1260_v63 = vunpack.c.l.bf16 %v4099_v2  ;;  %v1064_v37 = vunpack.c.l.bf16 %v4101_v23  ;;  %v4123_v59 = vld [vmem:[#allocation7 + $0x328] sm:$0xff]  ;;  %v4125_v35 = vld [vmem:[#allocation7 + $0x18] sm:$0xff] }
 0x190   :  { %5195 = vst [vmem:[#allocation31_spill] sm:$0xff] %v4101_v23  ;;  %1911 = vmatpush.msra.mxu1 %v1140_v0  ;;  %1931 = vmatpush.msra.mxu2 %v1204_v27  ;;  %v1128_v0 = vunpack.c.l.bf16 %v4105_v41  ;;  %v1192_v27 = vunpack.c.l.bf16 %v4107_v13  ;;  %v4129_v23 = vld [vmem:[#allocation7 + $0x118] sm:$0xff] }
 0x191   :  { %5196 = vst [vmem:[#allocation32_spill] sm:$0xff] %v4105_v41  ;;  %1951 = vmatpush.msra.mxu3 %v1268_v6  ;;  %1892 = vmatpush.msra.mxu0 %v1072_v4  ;;  %v1256_v6 = vunpack.c.l.bf16 %v4111_v47  ;;  %v1060_v4 = vunpack.c.l.bf16 %v4113_v46  ;;  %v4131_v2 = vld [vmem:[#allocation7 + $0x218] sm:$0xff]  ;;  %v4137_v41 = vld [vmem:[#allocation7 + $0x8] sm:$0xff] }
 0x192   :  { %5197 = vst [vmem:[#allocation33_spill] sm:$0xff] %v4107_v13  ;;  %1912 = vmatpush.msra.mxu1 %v1136_v54  ;;  %1932 = vmatpush.msra.mxu2 %v1200_v11  ;;  %v1124_v54 = vunpack.c.l.bf16 %v4117_v33  ;;  %v1188_v11 = vunpack.c.l.bf16 %v4119_v42  ;;  %v4135_v13 = vld [vmem:[#allocation7 + $0x318] sm:$0xff] }
 0x193   :  { %5198 = vst [vmem:[#allocation34_spill] sm:$0xff] %v4111_v47  ;;  %1952 = vmatpush.msra.mxu3 %v1264_v44  ;;  %1893 = vmatpush.msra.mxu0 %v1068_v57  ;;  %v1252_v44 = vunpack.c.l.bf16 %v4123_v59  ;;  %v1056_v57 = vunpack.c.l.bf16 %v4125_v35  ;;  %v4143_v47 = vld [vmem:[#allocation7 + $0x208] sm:$0xff] }
 0x194   :  { %5199 = vst [vmem:[#allocation35_spill] sm:$0xff] %v4113_v46  ;;  %1913 = vmatpush.msra.mxu1 %v1132_v50  ;;  %1933 = vmatpush.msra.mxu2 %v1196_v8  ;;  %v4141_v46 = vld [vmem:[#allocation7 + $0x108] sm:$0xff]  ;;  %v1120_v50 = vunpack.c.l.bf16 %v4129_v23  ;;  %v1184_v8 = vunpack.c.l.bf16 %v4131_v2 }
 0x195   :  { %5200 = vst [vmem:[#allocation36_spill] sm:$0xff] %v4119_v42  ;;  %1953 = vmatpush.msra.mxu3 %v1260_v63  ;;  %1894 = vmatpush.msra.mxu0 %v1064_v37  ;;  %v4147_v42 = vld [vmem:[#allocation7 + $0x308] sm:$0xff]  ;;  %v1248_v63 = vunpack.c.l.bf16 %v4135_v13  ;;  %v1052_v37 = vunpack.c.l.bf16 %v4137_v41 }
 0x196   :  { %5201 = vst [vmem:[#allocation37_spill] sm:$0xff] %v4123_v59  ;;  %1914 = vmatpush.msra.mxu1 %v1128_v0  ;;  %1934 = vmatpush.msra.mxu2 %v1192_v27  ;;  %v1180_v59 = vunpack.c.l.bf16 %v4143_v47  ;;  %v4153_v0 = vld [vmem:[#allocation7 + $0x4f8] sm:$0xff]  ;;  %v1244_v27 = vunpack.c.l.bf16 %v4147_v42 }
 0x197   :  { %5202 = vst [vmem:[#allocation38_spill] sm:$0xff] %v4125_v35  ;;  %1954 = vmatpush.msra.mxu3 %v1256_v6  ;;  %1895 = vmatpush.msra.mxu0 %v1060_v4  ;;  %v1116_v35 = vunpack.c.l.bf16 %v4141_v46  ;;  %v4158_v6 = vld [vmem:[#allocation7 + $0x6f8] sm:$0xff] }
 0x198   :  { %5203 = vst [vmem:[#allocation39_spill] sm:$0xff] %v4131_v2  ;;  %1915 = vmatpush.msra.mxu1 %v1124_v54  ;;  %1935 = vmatpush.msra.mxu2 %v1188_v11  ;;  %v4156_v2 = vld [vmem:[#allocation7 + $0x5f8] sm:$0xff]  ;;  %v4162_v54 = vld [vmem:[#allocation7 + $0x4e8] sm:$0xff]  ;;  %v1368_v11 = vunpack.c.l.bf16 %v4153_v0 }
 0x199   :  { %5204 = vst [vmem:[#allocation40_spill] sm:$0xff] %v4141_v46  ;;  %1955 = vmatpush.msra.mxu3 %v1252_v44  ;;  %1896 = vmatpush.msra.mxu0 %v1056_v57  ;;  %v4160_v4 = vld [vmem:[#allocation7 + $0x7f8] sm:$0xff]  ;;  %v4167_v44 = vld [vmem:[#allocation7 + $0x6e8] sm:$0xff]  ;;  %v1432_v57 = vunpack.c.l.bf16 %v4156_v2 }
 0x19a   :  { %5205 = vst [vmem:[#allocation41_spill] sm:$0xff] %v4143_v47  ;;  %1916 = vmatpush.msra.mxu1 %v1120_v50  ;;  %1936 = vmatpush.msra.mxu2 %v1184_v8  ;;  %v4165_v47 = vld [vmem:[#allocation7 + $0x5e8] sm:$0xff]  ;;  %v4173_v8 = vld [vmem:[#allocation7 + $0x4d8] sm:$0xff] }
 0x19b   :  { %5206 = vst [vmem:[#allocation42_spill] sm:$0xff] %v4147_v42  ;;  %1956 = vmatpush.msra.mxu3 %v1248_v63  ;;  %1897 = vmatpush.msra.mxu0 %v1052_v37  ;;  %v1496_v42 = vunpack.c.l.bf16 %v4158_v6  ;;  %v4171_v50 = vld [vmem:[#allocation7 + $0x7e8] sm:$0xff]  ;;  %v1560_v63 = vunpack.c.l.bf16 %v4160_v4  ;;  %v1364_v37 = vunpack.c.l.bf16 %v4162_v54  ;;  %v4180_v46 = vld [vmem:[#allocation7 + $0x6d8] sm:$0xff] }
 0x19c   :  { %5207 = vst [vmem:[#allocation43_spill] sm:$0xff] %v4153_v0  ;;  %1917 = vmatpush.msra.mxu1 %v1116_v35  ;;  %1937 = vmatpush.msra.mxu2 %v1180_v59  ;;  %v4178_v0 = vld [vmem:[#allocation7 + $0x5d8] sm:$0xff]  ;;  %v1428_v59 = vunpack.c.l.bf16 %v4165_v47  ;;  %v1492_v35 = vunpack.c.l.bf16 %v4167_v44 }
 0x19d   :  { %5208 = vst [vmem:[#allocation44_spill] sm:$0xff] %v4156_v2  ;;  %1957 = vmatpush.msra.mxu3 %v1244_v27  ;;  %1898 = vmatmul.f32.vlgmr.msra.gmra.mxu0 %v3847_v51  ;;  %v4188_v27 = vld [vmem:[#allocation7 + $0x4c8] sm:$0xff]  ;;  %v4201_v2 = vld [vmem:[#allocation7 + $0x4b8] sm:$0xff] }
 0x19e   :  { %5209 = vst [vmem:[#allocation45_spill] sm:$0xff] %v4158_v6  ;;  %1918 = vmatmul.f32.vlgmr.msra.gmra.mxu1 %v3853_v61  ;;  %1938 = vmatmul.f32.vlgmr.msra.gmra.mxu2 %v3859_v18  ;;  %v4186_v6 = vld [vmem:[#allocation7 + $0x7d8] sm:$0xff]  ;;  %v4193_v51 = vld [vmem:[#allocation7 + $0x5c8] sm:$0xff] }
 0x19f   :  { %5210 = vst [vmem:[#allocation46_spill] sm:$0xff] %v4160_v4  ;;  %1958 = vmatmul.f32.vlgmr.msra.gmra.mxu3 %v3865_v26  ;;  %1962 = vmatpush.msrb.mxu0 %v1368_v11  ;;  %v1360_v4 = vunpack.c.l.bf16 %v4173_v8  ;;  %v4195_v61 = vld [vmem:[#allocation7 + $0x6c8] sm:$0xff]  ;;  %v1552_v11 = vunpack.c.l.bf16 %v4186_v6  ;;  %v4207_v26 = vld [vmem:[#allocation7 + $0x6b8] sm:$0xff] }
 0x1a0   :  { %5211 = vst [vmem:[#allocation47_spill] sm:$0xff] %v4162_v54  ;;  %v1556_v54 = vunpack.c.l.bf16 %v4171_v50  ;;  %1982 = vmatpush.msrb.mxu1 %v1432_v57  ;;  %2002 = vmatpush.msrb.mxu2 %v1496_v42  ;;  %v4199_v18 = vld [vmem:[#allocation7 + $0x7c8] sm:$0xff]  ;;  %v1420_v42 = vunpack.c.l.bf16 %v4193_v51  ;;  %v1484_v57 = vunpack.c.l.bf16 %v4195_v61 }
 0x1a1   :  { %5212 = vst [vmem:[#allocation48_spill] sm:$0xff] %v4165_v47  ;;  %v1424_v47 = vunpack.c.l.bf16 %v4178_v0  ;;  %2022 = vmatpush.msrb.mxu3 %v1560_v63  ;;  %1963 = vmatpush.msrb.mxu0 %v1364_v37  ;;  %v1548_v63 = vunpack.c.l.bf16 %v4199_v18  ;;  %v1352_v37 = vunpack.c.l.bf16 %v4201_v2 }
 0x1a2   :  { %5213 = vst [vmem:[#allocation49_spill] sm:$0xff] %v4167_v44  ;;  %v1488_v44 = vunpack.c.l.bf16 %v4180_v46  ;;  %1983 = vmatpush.msrb.mxu1 %v1428_v59  ;;  %2003 = vmatpush.msrb.mxu2 %v1492_v35  ;;  %v1480_v35 = vunpack.c.l.bf16 %v4207_v26 }
 0x1a3   :  { %5214 = vst [vmem:[#allocation54_spill] sm:$0xff] %v4171_v50  ;;  %v4205_v50 = vld [vmem:[#allocation7 + $0x5b8] sm:$0xff]  ;;  %2023 = vmatpush.msrb.mxu3 %v1556_v54  ;;  %1964 = vmatpush.msrb.mxu0 %v1360_v4 }
 0x1a4   :  { %5215 = vst [vmem:[#allocation55_spill] sm:$0xff] %v4173_v8  ;;  %v1356_v8 = vunpack.c.l.bf16 %v4188_v27  ;;  %1984 = vmatpush.msrb.mxu1 %v1424_v47  ;;  %2004 = vmatpush.msrb.mxu2 %v1488_v44  ;;  %v1416_v59 = vunpack.c.l.bf16 %v4205_v50 }
 0x1a5   :  { %5216 = vst [vmem:[#allocation56_spill] sm:$0xff] %v4178_v0  ;;  %v4213_v0 = vld [vmem:[#allocation7 + $0x4a8] sm:$0xff]  ;;  %2024 = vmatpush.msrb.mxu3 %v1552_v11 }
 0x1a6   :  { %5217 = vst [vmem:[#allocation57_spill] sm:$0xff] %v4180_v46  ;;  %v4211_v46 = vld [vmem:[#allocation7 + $0x7b8] sm:$0xff]  ;;  %1965 = vmatpush.msrb.mxu0 %v1356_v8  ;;  %v1348_v54 = vunpack.c.l.bf16 %v4213_v0  ;;  %1985 = vmatpush.msrb.mxu1 %v1420_v42 }
 0x1a7   :  { %5218 = vst [vmem:[#allocation58_spill] sm:$0xff] %v4186_v6  ;;  %v4219_v6 = vld [vmem:[#allocation7 + $0x6a8] sm:$0xff]  ;;  %v1544_v4 = vunpack.c.l.bf16 %v4211_v46  ;;  %2005 = vmatpush.msrb.mxu2 %v1484_v57  ;;  %2025 = vmatpush.msrb.mxu3 %v1548_v63 }
 0x1a8   :  { %5219 = vst [vmem:[#allocation59_spill] sm:$0xff] %v4188_v27  ;;  %v4217_v27 = vld [vmem:[#allocation7 + $0x5a8] sm:$0xff]  ;;  %v1476_v44 = vunpack.c.l.bf16 %v4219_v6  ;;  %1966 = vmatpush.msrb.mxu0 %v1352_v37  ;;  %1986 = vmatpush.msrb.mxu1 %v1416_v59 }
 0x1a9   :  { %5220 = vst [vmem:[#allocation60_spill] sm:$0xff] %v4193_v51  ;;  %v4225_v51 = vld [vmem:[#allocation7 + $0x498] sm:$0xff]  ;;  %v1412_v47 = vunpack.c.l.bf16 %v4217_v27  ;;  %2006 = vmatpush.msrb.mxu2 %v1480_v35  ;;  %2026 = vmatpush.msrb.mxu3 %v1544_v4 }
 0x1aa   :  { %5221 = vst [vmem:[#allocation61_spill] sm:$0xff] %v4195_v61  ;;  %v4223_v61 = vld [vmem:[#allocation7 + $0x7a8] sm:$0xff]  ;;  %v1344_v11 = vunpack.c.l.bf16 %v4225_v51  ;;  %1967 = vmatpush.msrb.mxu0 %v1348_v54 }
 0x1ab   :  { %5222 = vst [vmem:[#allocation62_spill] sm:$0xff] %v4199_v18  ;;  %v4231_v18 = vld [vmem:[#allocation7 + $0x698] sm:$0xff]  ;;  %v1540_v8 = vunpack.c.l.bf16 %v4223_v61  ;;  %1987 = vmatpush.msrb.mxu1 %v1412_v47  ;;  %2007 = vmatpush.msrb.mxu2 %v1476_v44 }
 0x1ac   :  { %5223 = vst [vmem:[#allocation63_spill] sm:$0xff] %v4201_v2  ;;  %v4229_v2 = vld [vmem:[#allocation7 + $0x598] sm:$0xff]  ;;  %v1472_v57 = vunpack.c.l.bf16 %v4231_v18  ;;  %1968 = vmatpush.msrb.mxu0 %v1344_v11 }
 0x1ad   :  { %5224 = vst [vmem:[#allocation64_spill] sm:$0xff] %v4205_v50  ;;  %v4237_v50 = vld [vmem:[#allocation7 + $0x488] sm:$0xff]  ;;  %v1408_v42 = vunpack.c.l.bf16 %v4229_v2  ;;  %2027 = vmatpush.msrb.mxu3 %v1540_v8 }
 0x1ae   :  { %5225 = vst [vmem:[#allocation65_spill] sm:$0xff] %v4207_v26  ;;  %v4235_v26 = vld [vmem:[#allocation7 + $0x798] sm:$0xff]  ;;  %v1340_v37 = vunpack.c.l.bf16 %v4237_v50  ;;  %2008 = vmatpush.msrb.mxu2 %v1472_v57 }
 0x1af   :  { %5226 = vst [vmem:[#allocation66_spill] sm:$0xff] %v4211_v46  ;;  %v4243_v46 = vld [vmem:[#allocation7 + $0x688] sm:$0xff]  ;;  %v1536_v63 = vunpack.c.l.bf16 %v4235_v26  ;;  %1988 = vmatpush.msrb.mxu1 %v1408_v42 }
 0x1b0   :  { %5227 = vst [vmem:[#allocation67_spill] sm:$0xff] %v4213_v0  ;;  %v4241_v0 = vld [vmem:[#allocation7 + $0x588] sm:$0xff]  ;;  %v1468_v35 = vunpack.c.l.bf16 %v4243_v46  ;;  %1969 = vmatpush.msrb.mxu0 %v1340_v37 }
 0x1b1   :  { %5228 = vst [vmem:[#allocation68_spill] sm:$0xff] %v4217_v27  ;;  %v4249_v27 = vld [vmem:[#allocation7 + $0x478] sm:$0xff]  ;;  %v1404_v59 = vunpack.c.l.bf16 %v4241_v0  ;;  %2028 = vmatpush.msrb.mxu3 %v1536_v63 }
 0x1b2   :  { %5229 = vst [vmem:[#allocation69_spill] sm:$0xff] %v4219_v6  ;;  %v4247_v6 = vld [vmem:[#allocation7 + $0x788] sm:$0xff]  ;;  %v1336_v54 = vunpack.c.l.bf16 %v4249_v27  ;;  %2009 = vmatpush.msrb.mxu2 %v1468_v35 }
 0x1b3   :  { %5230 = vst [vmem:[#allocation70_spill] sm:$0xff] %v4223_v61  ;;  %v4255_v61 = vld [vmem:[#allocation7 + $0x678] sm:$0xff]  ;;  %v1532_v4 = vunpack.c.l.bf16 %v4247_v6  ;;  %1989 = vmatpush.msrb.mxu1 %v1404_v59 }
 0x1b4   :  { %5231 = vst [vmem:[#allocation71_spill] sm:$0xff] %v4225_v51  ;;  %v4253_v51 = vld [vmem:[#allocation7 + $0x578] sm:$0xff]  ;;  %v1464_v44 = vunpack.c.l.bf16 %v4255_v61  ;;  %1970 = vmatpush.msrb.mxu0 %v1336_v54 }
 0x1b5   :  { %5232 = vst [vmem:[#allocation72_spill] sm:$0xff] %v4229_v2  ;;  %v4261_v2 = vld [vmem:[#allocation7 + $0x468] sm:$0xff]  ;;  %v1400_v47 = vunpack.c.l.bf16 %v4253_v51  ;;  %2029 = vmatpush.msrb.mxu3 %v1532_v4 }
 0x1b6   :  { %5233 = vst [vmem:[#allocation73_spill] sm:$0xff] %v4231_v18  ;;  %v4259_v18 = vld [vmem:[#allocation7 + $0x778] sm:$0xff]  ;;  %v1332_v11 = vunpack.c.l.bf16 %v4261_v2  ;;  %2010 = vmatpush.msrb.mxu2 %v1464_v44 }
 0x1b7   :  { %5234 = vst [vmem:[#allocation74_spill] sm:$0xff] %v4235_v26  ;;  %v4267_v26 = vld [vmem:[#allocation7 + $0x668] sm:$0xff]  ;;  %v1528_v8 = vunpack.c.l.bf16 %v4259_v18  ;;  %1990 = vmatpush.msrb.mxu1 %v1400_v47 }
 0x1b8   :  { %5235 = vst [vmem:[#allocation75_spill] sm:$0xff] %v4237_v50  ;;  %v4265_v50 = vld [vmem:[#allocation7 + $0x568] sm:$0xff]  ;;  %v1460_v57 = vunpack.c.l.bf16 %v4267_v26  ;;  %1971 = vmatpush.msrb.mxu0 %v1332_v11 }
 0x1b9   :  { %5236 = vst [vmem:[#allocation76_spill] sm:$0xff] %v4241_v0  ;;  %v4273_v0 = vld [vmem:[#allocation7 + $0x458] sm:$0xff]  ;;  %v1396_v42 = vunpack.c.l.bf16 %v4265_v50  ;;  %2030 = vmatpush.msrb.mxu3 %v1528_v8 }
 0x1ba   :  { %5237 = vst [vmem:[#allocation77_spill] sm:$0xff] %v4243_v46  ;;  %v4271_v46 = vld [vmem:[#allocation7 + $0x768] sm:$0xff]  ;;  %v1328_v37 = vunpack.c.l.bf16 %v4273_v0  ;;  %2011 = vmatpush.msrb.mxu2 %v1460_v57 }
 0x1bb   :  { %5238 = vst [vmem:[#allocation78_spill] sm:$0xff] %v4247_v6  ;;  %v4279_v6 = vld [vmem:[#allocation7 + $0x658] sm:$0xff]  ;;  %v1524_v63 = vunpack.c.l.bf16 %v4271_v46  ;;  %1991 = vmatpush.msrb.mxu1 %v1396_v42 }
 0x1bc   :  { %5239 = vst [vmem:[#allocation79_spill] sm:$0xff] %v4249_v27  ;;  %v4277_v27 = vld [vmem:[#allocation7 + $0x558] sm:$0xff]  ;;  %v1456_v35 = vunpack.c.l.bf16 %v4279_v6  ;;  %1972 = vmatpush.msrb.mxu0 %v1328_v37 }
 0x1bd   :  { %5240 = vst [vmem:[#allocation80_spill] sm:$0xff] %v4253_v51  ;;  %v4285_v51 = vld [vmem:[#allocation7 + $0x448] sm:$0xff]  ;;  %v1392_v59 = vunpack.c.l.bf16 %v4277_v27  ;;  %2031 = vmatpush.msrb.mxu3 %v1524_v63 }
 0x1be   :  { %5241 = vst [vmem:[#allocation81_spill] sm:$0xff] %v4255_v61  ;;  %v4283_v61 = vld [vmem:[#allocation7 + $0x758] sm:$0xff]  ;;  %v1324_v54 = vunpack.c.l.bf16 %v4285_v51  ;;  %2012 = vmatpush.msrb.mxu2 %v1456_v35 }
 0x1bf   :  { %5242 = vst [vmem:[#allocation82_spill] sm:$0xff] %v4259_v18  ;;  %v4291_v18 = vld [vmem:[#allocation7 + $0x648] sm:$0xff]  ;;  %v1520_v4 = vunpack.c.l.bf16 %v4283_v61  ;;  %1992 = vmatpush.msrb.mxu1 %v1392_v59 }
 0x1c0   :  { %5243 = vst [vmem:[#allocation83_spill] sm:$0xff] %v4261_v2  ;;  %v4289_v2 = vld [vmem:[#allocation7 + $0x548] sm:$0xff]  ;;  %v1452_v44 = vunpack.c.l.bf16 %v4291_v18  ;;  %1973 = vmatpush.msrb.mxu0 %v1324_v54 }
 0x1c1   :  { %5244 = vst [vmem:[#allocation84_spill] sm:$0xff] %v4265_v50  ;;  %v4297_v50 = vld [vmem:[#allocation7 + $0x438] sm:$0xff]  ;;  %v1388_v47 = vunpack.c.l.bf16 %v4289_v2  ;;  %2032 = vmatpush.msrb.mxu3 %v1520_v4 }
 0x1c2   :  { %5245 = vst [vmem:[#allocation85_spill] sm:$0xff] %v4267_v26  ;;  %v4295_v26 = vld [vmem:[#allocation7 + $0x748] sm:$0xff]  ;;  %v1320_v11 = vunpack.c.l.bf16 %v4297_v50  ;;  %2013 = vmatpush.msrb.mxu2 %v1452_v44 }
 0x1c3   :  { %5246 = vst [vmem:[#allocation86_spill] sm:$0xff] %v4271_v46  ;;  %v4303_v46 = vld [vmem:[#allocation7 + $0x638] sm:$0xff]  ;;  %v1516_v8 = vunpack.c.l.bf16 %v4295_v26  ;;  %1993 = vmatpush.msrb.mxu1 %v1388_v47 }
 0x1c4   :  { %5247 = vst [vmem:[#allocation87_spill] sm:$0xff] %v4273_v0  ;;  %v4301_v0 = vld [vmem:[#allocation7 + $0x538] sm:$0xff]  ;;  %v1448_v57 = vunpack.c.l.bf16 %v4303_v46  ;;  %1974 = vmatpush.msrb.mxu0 %v1320_v11 }
 0x1c5   :  { %5248 = vst [vmem:[#allocation88_spill] sm:$0xff] %v4277_v27  ;;  %v4309_v27 = vld [vmem:[#allocation7 + $0x428] sm:$0xff]  ;;  %v1384_v42 = vunpack.c.l.bf16 %v4301_v0  ;;  %2033 = vmatpush.msrb.mxu3 %v1516_v8 }
 0x1c6   :  { %5249 = vst [vmem:[#allocation89_spill] sm:$0xff] %v4279_v6  ;;  %v4307_v6 = vld [vmem:[#allocation7 + $0x738] sm:$0xff]  ;;  %v1316_v37 = vunpack.c.l.bf16 %v4309_v27  ;;  %2014 = vmatpush.msrb.mxu2 %v1448_v57  ;;  %v1113_v57 = vunpack.c.h.bf16 %v3957_v28  ;;  %v1237_v28 = vunpack.c.h.bf16 %v3971_v60  ;;  %v1165_v60 = vunpack.c.h.bf16 %v3997_v22 }
 0x1c7   :  { %5250 = vst [vmem:[#allocation90_spill] sm:$0xff] %v4283_v61  ;;  %v4315_v61 = vld [vmem:[#allocation7 + $0x628] sm:$0xff]  ;;  %v1512_v63 = vunpack.c.l.bf16 %v4307_v6  ;;  %1994 = vmatpush.msrb.mxu1 %v1384_v42  ;;  %v1093_v22 = vunpack.c.h.bf16 %v4017_v1  ;;  %v1281_v1 = vunpack.c.h.bf16 %v4039_v30 }
 0x1c8   :  { %5251 = vst [vmem:[#allocation91_spill] sm:$0xff] %v4285_v51  ;;  %v4313_v51 = vld [vmem:[#allocation7 + $0x528] sm:$0xff]  ;;  %v1444_v35 = vunpack.c.l.bf16 %v4315_v61  ;;  %1975 = vmatpush.msrb.mxu0 %v1316_v37  ;;  %v1241_v37 = vunpack.c.h.bf16 %v3962_v52  ;;  %v1169_v52 = vunpack.c.h.bf16 %v3982_v17  ;;  %v1097_v17 = vunpack.c.h.bf16 %v4005_v32 }
 0x1c9   :  { %5252 = vst [vmem:[#allocation92_spill] sm:$0xff] %v4289_v2  ;;  %v4321_v2 = vld [vmem:[#allocation7 + $0x418] sm:$0xff]  ;;  %v1380_v59 = vunpack.c.l.bf16 %v4313_v51  ;;  %2034 = vmatpush.msrb.mxu3 %v1512_v63  ;;  %v1177_v63 = vunpack.c.h.bf16 %v3960_v49  ;;  %v1105_v49 = vunpack.c.h.bf16 %v3977_v39  ;;  %v1293_v39 = vunpack.c.h.bf16 %v4003_v31 }
 0x1ca   :  { %5253 = vst [vmem:[#allocation93_spill] sm:$0xff] %v4291_v18  ;;  %v4319_v18 = vld [vmem:[#allocation7 + $0x728] sm:$0xff]  ;;  %v1312_v54 = vunpack.c.l.bf16 %v4321_v2  ;;  %2015 = vmatpush.msrb.mxu2 %v1444_v35  ;;  %v1109_v35 = vunpack.c.h.bf16 %v3966_v43  ;;  %v1297_v43 = vunpack.c.h.bf16 %v3990_v14  ;;  %v1225_v14 = vunpack.c.h.bf16 %v4011_v56 }
 0x1cb   :  { %5254 = vst [vmem:[#allocation94_spill] sm:$0xff] %v4295_v26  ;;  %v4327_v26 = vld [vmem:[#allocation7 + $0x618] sm:$0xff]  ;;  %v1508_v4 = vunpack.c.l.bf16 %v4319_v18  ;;  %1995 = vmatpush.msrb.mxu1 %v1380_v59  ;;  %v1305_v59 = vunpack.c.h.bf16 %v3964_v25  ;;  %v1233_v25 = vunpack.c.h.bf16 %v3984_v10  ;;  %v1161_v10 = vunpack.c.h.bf16 %v4009_v19 }
 0x1cc   :  { %5255 = vst [vmem:[#allocation95_spill] sm:$0xff] %v4297_v50  ;;  %v4325_v50 = vld [vmem:[#allocation7 + $0x518] sm:$0xff]  ;;  %v1440_v44 = vunpack.c.l.bf16 %v4327_v26  ;;  %1976 = vmatpush.msrb.mxu0 %v1312_v54  ;;  %v1221_v31 = vunpack.c.h.bf16 %v4023_v7  ;;  %v1285_v32 = vunpack.c.h.bf16 %v4027_v21  ;;  %v1089_v19 = vunpack.c.h.bf16 %v4029_v24 }
 0x1cd   :  { %5256 = vst [vmem:[#allocation96_spill] sm:$0xff] %v4301_v0  ;;  %v4333_v0 = vld [vmem:[#allocation7 + $0x408] sm:$0xff]  ;;  %v1376_v47 = vunpack.c.l.bf16 %v4325_v50  ;;  %2035 = vmatpush.msrb.mxu3 %v1508_v4  ;;  %v1173_v4 = vunpack.c.h.bf16 %v3969_v29  ;;  %v1101_v29 = vunpack.c.h.bf16 %v3992_v45  ;;  %v1289_v45 = vunpack.c.h.bf16 %v4015_v15 }
 0x1ce   :  { %5257 = vst [vmem:[#allocation97_spill] sm:$0xff] %v4303_v46  ;;  %v4331_v46 = vld [vmem:[#allocation7 + $0x718] sm:$0xff]  ;;  %v1308_v11 = vunpack.c.l.bf16 %v4333_v0  ;;  %2016 = vmatpush.msrb.mxu2 %v1440_v44  ;;  %v1153_v56 = vunpack.c.h.bf16 %v4033_v38  ;;  %v1217_v15 = vunpack.c.h.bf16 %v4035_v36  ;;  %v1149_v7 = vunpack.c.h.bf16 %v4045_v12 }
 0x1cf   :  { %5258 = vst [vmem:[#allocation98_spill] sm:$0xff] %v4307_v6  ;;  %v4339_v6 = vld [vmem:[#allocation7 + $0x608] sm:$0xff]  ;;  %v1504_v8 = vunpack.c.l.bf16 %v4331_v46  ;;  %1996 = vmatpush.msrb.mxu1 %v1376_v47  ;;  %v1213_v21 = vunpack.c.h.bf16 %v4047_v5  ;;  %v1277_v24 = vunpack.c.h.bf16 %v4051_v40  ;;  %v1081_v38 = vunpack.c.h.bf16 %v4053_v58  ;;  %v5265_v47 = vld [vmem:[#allocation19_spill] sm:$0xff]  ;;  %v5268_v58 = vld [vmem:[#allocation22_spill] sm:$0xff] }
 0x1d0   :  { %5259 = vst [vmem:[#allocation99_spill] sm:$0xff] %v4309_v27  ;;  %v4337_v27 = vld [vmem:[#allocation7 + $0x508] sm:$0xff]  ;;  %1977 = vmatpush.msrb.mxu0 %v1308_v11  ;;  %v1145_v36 = vunpack.c.h.bf16 %v4057_v3  ;;  %v1077_v12 = vunpack.c.h.bf16 %v5265_v47  ;;  %v1269_v11 = vunpack.c.h.bf16 %v5268_v58  ;;  %v5292_v58 = vld [vmem:[#allocation50_spill] sm:$0xff] }
 0x1d1   :  { %5260 = vst [vmem:[#allocation100_spill] sm:$0xff] %v4315_v61  ;;  %v4343_v61 = vld [vmem:[#allocation7 + $0x708] sm:$0xff]  ;;  %2036 = vmatpush.msrb.mxu3 %v1504_v8  ;;  %1978 = vmatmul.f32.vlgmr.msrb.gmra.mxu0 %v3876_v16  ;;  %v5267_v8 = vld [vmem:[#allocation21_spill] sm:$0xff] }
 0x1d2   :  { %5261 = vst [vmem:[#allocation101_spill] sm:$0xff] %v4319_v18  ;;  %v1436_v18 = vunpack.c.l.bf16 %v4339_v6  ;;  %v1500_v42 = vunpack.c.l.bf16 %v4343_v61  ;;  %2042 = vmatpush.msra.mxu0 %v1113_v57  ;;  %v5266_v5 = vld [vmem:[#allocation20_spill] sm:$0xff]  ;;  %v1205_v40 = vunpack.c.h.bf16 %v5267_v8  ;;  %v5291_v8 = vld [vmem:[#allocation45_spill] sm:$0xff] }
 0x1d3   :  { %5262 = vst [vmem:[#allocation102_spill] sm:$0xff] %v4321_v2  ;;  %v1372_v2 = vunpack.c.l.bf16 %v4337_v27  ;;  %v1141_v44 = vunpack.c.h.bf16 %v5266_v5  ;;  %v5270_v57 = vld [vmem:[#allocation24_spill] sm:$0xff] }
 0x1d4   :  { %2017 = vmatpush.msrb.mxu2 %v1436_v18  ;;  %2037 = vmatpush.msrb.mxu3 %v1500_v42  ;;  %v1301_v18 = vunpack.c.h.bf16 %v3975_v48  ;;  %v1229_v48 = vunpack.c.h.bf16 %v3999_v20  ;;  %v1157_v20 = vunpack.c.h.bf16 %v4021_v34  ;;  %v1085_v34 = vunpack.c.h.bf16 %v4041_v62  ;;  %v5264_v62 = vld [vmem:[#allocation18_spill] sm:$0xff]  ;;  %v5269_v42 = vld [vmem:[#allocation23_spill] sm:$0xff] }
 0x1d5   :  { %1997 = vmatpush.msrb.mxu1 %v1372_v2  ;;  %2018 = vmatmul.f32.vlgmr.msrb.gmra.mxu2 %v3890_v9  ;;  %v5263_v2 = vld [vmem:[#allocation17_spill] sm:$0xff]  ;;  %v1273_v54 = vunpack.c.h.bf16 %v5264_v62  ;;  %v1073_v3 = vunpack.c.h.bf16 %v5269_v42 }
 0x1d6   :  { %1998 = vmatmul.f32.vlgmr.msrb.gmra.mxu1 %v3883_v55  ;;  %2038 = vmatmul.f32.vlgmr.msrb.gmra.mxu3 %v3879_v53  ;;  %v1209_v30 = vunpack.c.h.bf16 %v5263_v2  ;;  %v1249_v2 = vunpack.c.h.bf16 %v4135_v13  ;;  %v5290_v13 = vld [vmem:[#allocation44_spill] sm:$0xff] }
 0x1d7   :  { %2062 = vmatpush.msra.mxu1 %v1177_v63  ;;  %2082 = vmatpush.msra.mxu2 %v1241_v37  ;;  %v1137_v63 = vunpack.c.h.bf16 %v5270_v57  ;;  %v5271_v37 = vld [vmem:[#allocation25_spill] sm:$0xff] }
 0x1d8   :  { %2102 = vmatpush.msra.mxu3 %v1305_v59  ;;  %2043 = vmatpush.msra.mxu0 %v1109_v35  ;;  %v1201_v59 = vunpack.c.h.bf16 %v5271_v37  ;;  %v5272_v35 = vld [vmem:[#allocation26_spill] sm:$0xff]  ;;  %v5296_v37 = vld [vmem:[#allocation52_spill] sm:$0xff] }
 0x1d9   :  { %2063 = vmatpush.msra.mxu1 %v1173_v4  ;;  %2083 = vmatpush.msra.mxu2 %v1237_v28  ;;  %v1265_v4 = vunpack.c.h.bf16 %v5272_v35  ;;  %v5273_v28 = vld [vmem:[#allocation27_spill] sm:$0xff] }
 0x1da   :  { %2103 = vmatpush.msra.mxu3 %v1301_v18  ;;  %2044 = vmatpush.msra.mxu0 %v1105_v49  ;;  %v1069_v18 = vunpack.c.h.bf16 %v5273_v28  ;;  %v5274_v49 = vld [vmem:[#allocation28_spill] sm:$0xff] }
 0x1db   :  { %2064 = vmatpush.msra.mxu1 %v1169_v52  ;;  %2084 = vmatpush.msra.mxu2 %v1233_v25  ;;  %v1133_v52 = vunpack.c.h.bf16 %v5274_v49  ;;  %v5275_v25 = vld [vmem:[#allocation29_spill] sm:$0xff]  ;;  %v5300_v49 = vld [vmem:[#allocation54_spill] sm:$0xff] }
 0x1dc   :  { %2104 = vmatpush.msra.mxu3 %v1297_v43  ;;  %2045 = vmatpush.msra.mxu0 %v1101_v29  ;;  %v1197_v43 = vunpack.c.h.bf16 %v5275_v25  ;;  %v5276_v29 = vld [vmem:[#allocation30_spill] sm:$0xff]  ;;  %v5301_v25 = vld [vmem:[#allocation55_spill] sm:$0xff] }
 0x1dd   :  { %2065 = vmatpush.msra.mxu1 %v1165_v60  ;;  %2085 = vmatpush.msra.mxu2 %v1229_v48  ;;  %v1261_v60 = vunpack.c.h.bf16 %v5276_v29  ;;  %v5277_v48 = vld [vmem:[#allocation31_spill] sm:$0xff]  ;;  %v5302_v29 = vld [vmem:[#allocation56_spill] sm:$0xff] }
 0x1de   :  { %2105 = vmatpush.msra.mxu3 %v1293_v39  ;;  %2046 = vmatpush.msra.mxu0 %v1097_v17  ;;  %v1065_v39 = vunpack.c.h.bf16 %v5277_v48  ;;  %v5278_v17 = vld [vmem:[#allocation32_spill] sm:$0xff]  ;;  %v5303_v48 = vld [vmem:[#allocation57_spill] sm:$0xff] }
 0x1df   :  { %2066 = vmatpush.msra.mxu1 %v1161_v10  ;;  %2086 = vmatpush.msra.mxu2 %v1225_v14  ;;  %v1129_v10 = vunpack.c.h.bf16 %v5278_v17  ;;  %v5279_v14 = vld [vmem:[#allocation33_spill] sm:$0xff]  ;;  %v5304_v17 = vld [vmem:[#allocation58_spill] sm:$0xff] }
 0x1e0   :  { %2106 = vmatpush.msra.mxu3 %v1289_v45  ;;  %2047 = vmatpush.msra.mxu0 %v1093_v22  ;;  %v1193_v45 = vunpack.c.h.bf16 %v5279_v14  ;;  %v5280_v22 = vld [vmem:[#allocation34_spill] sm:$0xff]  ;;  %v5305_v14 = vld [vmem:[#allocation59_spill] sm:$0xff] }
 0x1e1   :  { %2067 = vmatpush.msra.mxu1 %v1157_v20  ;;  %2087 = vmatpush.msra.mxu2 %v1221_v31  ;;  %v1257_v20 = vunpack.c.h.bf16 %v5280_v22  ;;  %v5281_v31 = vld [vmem:[#allocation35_spill] sm:$0xff]  ;;  %v5306_v22 = vld [vmem:[#allocation60_spill] sm:$0xff] }
 0x1e2   :  { %2107 = vmatpush.msra.mxu3 %v1285_v32  ;;  %2048 = vmatpush.msra.mxu0 %v1089_v19  ;;  %v1061_v32 = vunpack.c.h.bf16 %v5281_v31  ;;  %v1125_v19 = vunpack.c.h.bf16 %v4117_v33  ;;  %v1053_v33 = vunpack.c.h.bf16 %v4137_v41  ;;  %v1433_v41 = vunpack.c.h.bf16 %v5290_v13  ;;  %v5307_v31 = vld [vmem:[#allocation61_spill] sm:$0xff]  ;;  %v5318_v13 = vld [vmem:[#allocation72_spill] sm:$0xff] }
 0x1e3   :  { %2068 = vmatpush.msra.mxu1 %v1153_v56  ;;  %2088 = vmatpush.msra.mxu2 %v1217_v15  ;;  %v5282_v56 = vld [vmem:[#allocation36_spill] sm:$0xff] }
 0x1e4   :  { %2108 = vmatpush.msra.mxu3 %v1281_v1  ;;  %2049 = vmatpush.msra.mxu0 %v1085_v34  ;;  %v1189_v15 = vunpack.c.h.bf16 %v5282_v56  ;;  %v5283_v1 = vld [vmem:[#allocation37_spill] sm:$0xff] }
 0x1e5   :  { %2069 = vmatpush.msra.mxu1 %v1149_v7  ;;  %2089 = vmatpush.msra.mxu2 %v1213_v21  ;;  %v1253_v34 = vunpack.c.h.bf16 %v5283_v1  ;;  %v5284_v7 = vld [vmem:[#allocation38_spill] sm:$0xff] }
 0x1e6   :  { %2109 = vmatpush.msra.mxu3 %v1277_v24  ;;  %2050 = vmatpush.msra.mxu0 %v1081_v38  ;;  %v1057_v21 = vunpack.c.h.bf16 %v5284_v7  ;;  %v1121_v24 = vunpack.c.h.bf16 %v4129_v23  ;;  %v5285_v38 = vld [vmem:[#allocation39_spill] sm:$0xff] }
 0x1e7   :  { %2070 = vmatpush.msra.mxu1 %v1145_v36  ;;  %2090 = vmatpush.msra.mxu2 %v1209_v30  ;;  %v1185_v36 = vunpack.c.h.bf16 %v5285_v38  ;;  %v5286_v30 = vld [vmem:[#allocation40_spill] sm:$0xff]  ;;  %v5289_v23 = vld [vmem:[#allocation43_spill] sm:$0xff]  ;;  %v5312_v38 = vld [vmem:[#allocation66_spill] sm:$0xff] }
 0x1e8   :  { %2110 = vmatpush.msra.mxu3 %v1273_v54  ;;  %2051 = vmatpush.msra.mxu0 %v1077_v12  ;;  %v1117_v62 = vunpack.c.h.bf16 %v5286_v30  ;;  %v5287_v54 = vld [vmem:[#allocation41_spill] sm:$0xff]  ;;  %v5288_v12 = vld [vmem:[#allocation42_spill] sm:$0xff]  ;;  %v5314_v30 = vld [vmem:[#allocation68_spill] sm:$0xff] }
 0x1e9   :  { %2071 = vmatpush.msra.mxu1 %v1141_v44  ;;  %2091 = vmatpush.msra.mxu2 %v1205_v40  ;;  %v1181_v47 = vunpack.c.h.bf16 %v5287_v54  ;;  %v1245_v5 = vunpack.c.h.bf16 %v5288_v12  ;;  %v1369_v44 = vunpack.c.h.bf16 %v5289_v23  ;;  %v1497_v40 = vunpack.c.h.bf16 %v5291_v8  ;;  %v5315_v54 = vld [vmem:[#allocation69_spill] sm:$0xff]  ;;  %v5316_v12 = vld [vmem:[#allocation70_spill] sm:$0xff]  ;;  %v5317_v23 = vld [vmem:[#allocation71_spill] sm:$0xff] }
 0x1ea   :  { %2111 = vmatpush.msra.mxu3 %v1269_v11  ;;  %2052 = vmatpush.msra.mxu0 %v1073_v3  ;;  %v5293_v11 = vld [vmem:[#allocation46_spill] sm:$0xff]  ;;  %v5294_v3 = vld [vmem:[#allocation47_spill] sm:$0xff]  ;;  %v5319_v8 = vld [vmem:[#allocation73_spill] sm:$0xff] }
 0x1eb   :  { %2072 = vmatpush.msra.mxu1 %v1137_v63  ;;  %2092 = vmatpush.msra.mxu2 %v1201_v59  ;;  %v1561_v42 = vunpack.c.h.bf16 %v5293_v11  ;;  %v1365_v57 = vunpack.c.h.bf16 %v5294_v3  ;;  %v5295_v63 = vld [vmem:[#allocation51_spill] sm:$0xff]  ;;  %v5297_v59 = vld [vmem:[#allocation48_spill] sm:$0xff] }
 0x1ec   :  { %2112 = vmatpush.msra.mxu3 %v1265_v4  ;;  %2053 = vmatpush.msra.mxu0 %v1069_v18  ;;  %v1429_v35 = vunpack.c.h.bf16 %v5297_v59  ;;  %v5298_v4 = vld [vmem:[#allocation49_spill] sm:$0xff] }
 0x1ed   :  { %2073 = vmatpush.msra.mxu1 %v1133_v52  ;;  %2093 = vmatpush.msra.mxu2 %v1197_v43  ;;  %v1493_v28 = vunpack.c.h.bf16 %v5298_v4  ;;  %v5299_v18 = vld [vmem:[#allocation53_spill] sm:$0xff]  ;;  %v1557_v52 = vunpack.c.h.bf16 %v5300_v49  ;;  %v1361_v43 = vunpack.c.h.bf16 %v5301_v25  ;;  %v5326_v49 = vld [vmem:[#allocation80_spill] sm:$0xff] }
 0x1ee   :  { %2113 = vmatpush.msra.mxu3 %v1261_v60  ;;  %2054 = vmatpush.msra.mxu0 %v1065_v39  ;;  %v1425_v60 = vunpack.c.h.bf16 %v5302_v29  ;;  %v1489_v39 = vunpack.c.h.bf16 %v5303_v48  ;;  %v5327_v25 = vld [vmem:[#allocation81_spill] sm:$0xff]  ;;  %v5328_v29 = vld [vmem:[#allocation82_spill] sm:$0xff]  ;;  %v5329_v48 = vld [vmem:[#allocation83_spill] sm:$0xff] }
 0x1ef   :  { %2074 = vmatpush.msra.mxu1 %v1129_v10  ;;  %2094 = vmatpush.msra.mxu2 %v1193_v45  ;;  %v1553_v10 = vunpack.c.h.bf16 %v5304_v17  ;;  %v1357_v45 = vunpack.c.h.bf16 %v5305_v14  ;;  %v5330_v17 = vld [vmem:[#allocation84_spill] sm:$0xff]  ;;  %v5331_v14 = vld [vmem:[#allocation85_spill] sm:$0xff] }
 0x1f0   :  { %2114 = vmatpush.msra.mxu3 %v1257_v20  ;;  %2055 = vmatpush.msra.mxu0 %v1061_v32  ;;  %v1421_v20 = vunpack.c.h.bf16 %v5306_v22  ;;  %v1485_v32 = vunpack.c.h.bf16 %v5307_v31  ;;  %v5332_v22 = vld [vmem:[#allocation86_spill] sm:$0xff]  ;;  %v5333_v31 = vld [vmem:[#allocation87_spill] sm:$0xff] }
 0x1f1   :  { %2075 = vmatpush.msra.mxu1 %v1125_v19  ;;  %2095 = vmatpush.msra.mxu2 %v1189_v15  ;;  %v5308_v19 = vld [vmem:[#allocation62_spill] sm:$0xff]  ;;  %v5309_v15 = vld [vmem:[#allocation63_spill] sm:$0xff] }
 0x1f2   :  { %2115 = vmatpush.msra.mxu3 %v1253_v34  ;;  %2056 = vmatpush.msra.mxu0 %v1057_v21  ;;  %v1549_v56 = vunpack.c.h.bf16 %v5308_v19  ;;  %v1353_v1 = vunpack.c.h.bf16 %v5309_v15  ;;  %v5310_v34 = vld [vmem:[#allocation64_spill] sm:$0xff]  ;;  %v5311_v21 = vld [vmem:[#allocation65_spill] sm:$0xff] }
 0x1f3   :  { %2076 = vmatpush.msra.mxu1 %v1121_v24  ;;  %2096 = vmatpush.msra.mxu2 %v1185_v36  ;;  %v1417_v7 = vunpack.c.h.bf16 %v5310_v34  ;;  %v1481_v24 = vunpack.c.h.bf16 %v5311_v21  ;;  %v1545_v36 = vunpack.c.h.bf16 %v5312_v38  ;;  %v5334_v19 = vld [vmem:[#allocation88_spill] sm:$0xff]  ;;  %v5335_v15 = vld [vmem:[#allocation89_spill] sm:$0xff]  ;;  %v5336_v34 = vld [vmem:[#allocation90_spill] sm:$0xff] }
 0x1f4   :  { %2116 = vmatpush.msra.mxu3 %v1249_v2  ;;  %2057 = vmatpush.msra.mxu0 %v1053_v33  ;;  %v5313_v2 = vld [vmem:[#allocation67_spill] sm:$0xff]  ;;  %v5338_v38 = vld [vmem:[#allocation92_spill] sm:$0xff] }
 0x1f5   :  { %2077 = vmatpush.msra.mxu1 %v1117_v62  ;;  %2097 = vmatpush.msra.mxu2 %v1181_v47  ;;  %v1349_v33 = vunpack.c.h.bf16 %v5313_v2  ;;  %v1413_v62 = vunpack.c.h.bf16 %v5314_v30  ;;  %v1477_v47 = vunpack.c.h.bf16 %v5315_v54  ;;  %v5337_v21 = vld [vmem:[#allocation91_spill] sm:$0xff]  ;;  %v5339_v2 = vld [vmem:[#allocation93_spill] sm:$0xff]  ;;  %v5340_v30 = vld [vmem:[#allocation94_spill] sm:$0xff] }
 0x1f6   :  { %2117 = vmatpush.msra.mxu3 %v1245_v5  ;;  %2058 = vmatmul.f32.vlgmr.msra.gmra.mxu0 %v5292_v58  ;;  %v1541_v5 = vunpack.c.h.bf16 %v5316_v12  ;;  %v5320_v58 = vld [vmem:[#allocation74_spill] sm:$0xff]  ;;  %v5341_v54 = vld [vmem:[#allocation95_spill] sm:$0xff]  ;;  %v5342_v12 = vld [vmem:[#allocation96_spill] sm:$0xff] }
 0x1f7   :  { %2078 = vmatmul.f32.vlgmr.msra.gmra.mxu1 %v5295_v63  ;;  %2098 = vmatmul.f32.vlgmr.msra.gmra.mxu2 %v5296_v37  ;;  %v1537_v11 = vunpack.c.h.bf16 %v5320_v58  ;;  %v5323_v37 = vld [vmem:[#allocation77_spill] sm:$0xff]  ;;  %v1381_v58 = vunpack.c.h.bf16 %v4313_v51  ;;  %v1309_v51 = vunpack.c.h.bf16 %v4333_v0  ;;  %v1619_v0 = vpop.f32.mrf.mxu2 }
 0x1f8   :  { %2118 = vmatmul.f32.vlgmr.msra.gmra.mxu3 %v5299_v18  ;;  %2122 = vmatpush.msrb.mxu0 %v1369_v44  ;;  %v1345_v44 = vunpack.c.h.bf16 %v5317_v23  ;;  %v1469_v59 = vunpack.c.h.bf16 %v5323_v37  ;;  %v5343_v23 = vld [vmem:[#allocation97_spill] sm:$0xff] }
 0x1f9   :  { %2142 = vmatpush.msrb.mxu1 %v1433_v41  ;;  %2162 = vmatpush.msrb.mxu2 %v1497_v40  ;;  %v1409_v41 = vunpack.c.h.bf16 %v5318_v13  ;;  %v1473_v40 = vunpack.c.h.bf16 %v5319_v8  ;;  %v5344_v13 = vld [vmem:[#allocation98_spill] sm:$0xff]  ;;  %v5345_v8 = vld [vmem:[#allocation99_spill] sm:$0xff] }
 0x1fa   :  { %2182 = vmatpush.msrb.mxu3 %v1561_v42  ;;  %2123 = vmatpush.msrb.mxu0 %v1365_v57  ;;  %v5321_v42 = vld [vmem:[#allocation75_spill] sm:$0xff]  ;;  %v5322_v57 = vld [vmem:[#allocation76_spill] sm:$0xff] }
 0x1fb   :  { %2143 = vmatpush.msrb.mxu1 %v1429_v35  ;;  %2163 = vmatpush.msrb.mxu2 %v1493_v28  ;;  %v1341_v3 = vunpack.c.h.bf16 %v5321_v42  ;;  %v1405_v63 = vunpack.c.h.bf16 %v5322_v57  ;;  %v5324_v35 = vld [vmem:[#allocation78_spill] sm:$0xff]  ;;  %v5325_v28 = vld [vmem:[#allocation79_spill] sm:$0xff] }
 0x1fc   :  { %2183 = vmatpush.msrb.mxu3 %v1557_v52  ;;  %2124 = vmatpush.msrb.mxu0 %v1361_v43  ;;  %v1533_v4 = vunpack.c.h.bf16 %v5324_v35  ;;  %v1337_v18 = vunpack.c.h.bf16 %v5325_v28  ;;  %v1401_v52 = vunpack.c.h.bf16 %v5326_v49  ;;  %v1465_v43 = vunpack.c.h.bf16 %v5327_v25 }
 0x1fd   :  { %2144 = vmatpush.msrb.mxu1 %v1425_v60  ;;  %2164 = vmatpush.msrb.mxu2 %v1489_v39  ;;  %v1529_v60 = vunpack.c.h.bf16 %v5328_v29  ;;  %v1333_v39 = vunpack.c.h.bf16 %v5329_v48  ;;  %v1441_v35 = vunpack.c.h.bf16 %v4327_v26  ;;  %v1373_v28 = vunpack.c.h.bf16 %v4337_v27  ;;  %v1579_v26 = vpop.f32.mrf.mxu0 }
 0x1fe   :  { %2184 = vmatpush.msrb.mxu3 %v1553_v10  ;;  %2125 = vmatpush.msrb.mxu0 %v1357_v45  ;;  %v1397_v10 = vunpack.c.h.bf16 %v5330_v17  ;;  %v1461_v45 = vunpack.c.h.bf16 %v5331_v14  ;;  %v1501_v49 = vunpack.c.h.bf16 %v4343_v61 }
 0x1ff   :  { %2145 = vmatpush.msrb.mxu1 %v1421_v20  ;;  %2165 = vmatpush.msrb.mxu2 %v1485_v32  ;;  %v1525_v20 = vunpack.c.h.bf16 %v5332_v22  ;;  %v1329_v32 = vunpack.c.h.bf16 %v5333_v31  ;;  %v1699_v27 = vpop.f32.mrf.mxu2 }
 0x200   :  { %2185 = vmatpush.msrb.mxu3 %v1549_v56  ;;  %2126 = vmatpush.msrb.mxu0 %v1353_v1  ;;  %v1393_v56 = vunpack.c.h.bf16 %v5334_v19  ;;  %v1457_v1 = vunpack.c.h.bf16 %v5335_v15 }
 0x201   :  { %2146 = vmatpush.msrb.mxu1 %v1417_v7  ;;  %2166 = vmatpush.msrb.mxu2 %v1481_v24  ;;  %v1521_v7 = vunpack.c.h.bf16 %v5336_v34  ;;  %v1325_v24 = vunpack.c.h.bf16 %v5337_v21 }
 0x202   :  { %2186 = vmatpush.msrb.mxu3 %v1545_v36  ;;  %2127 = vmatpush.msrb.mxu0 %v1349_v33  ;;  %v1389_v36 = vunpack.c.h.bf16 %v5338_v38  ;;  %v1453_v33 = vunpack.c.h.bf16 %v5339_v2 }
 0x203   :  { %2147 = vmatpush.msrb.mxu1 %v1413_v62  ;;  %2167 = vmatpush.msrb.mxu2 %v1477_v47  ;;  %v1517_v62 = vunpack.c.h.bf16 %v5340_v30  ;;  %v1321_v47 = vunpack.c.h.bf16 %v5341_v54 }
 0x204   :  { %2187 = vmatpush.msrb.mxu3 %v1541_v5  ;;  %2128 = vmatpush.msrb.mxu0 %v1345_v44  ;;  %v1385_v5 = vunpack.c.h.bf16 %v5342_v12  ;;  %v1449_v44 = vunpack.c.h.bf16 %v5343_v23 }
 0x205   :  { %2148 = vmatpush.msrb.mxu1 %v1409_v41  ;;  %2168 = vmatpush.msrb.mxu2 %v1473_v40  ;;  %v1513_v41 = vunpack.c.h.bf16 %v5344_v13  ;;  %v1317_v40 = vunpack.c.h.bf16 %v5345_v8  ;;  %v1659_v61 = vpop.f32.mrf.mxu0 }
 0x206   :  { %2188 = vmatpush.msrb.mxu3 %v1537_v11  ;;  %2129 = vmatpush.msrb.mxu0 %v1341_v3  ;;  %v5346_v11 = vld [vmem:[#allocation100_spill] sm:$0xff]  ;;  %v5347_v3 = vld [vmem:[#allocation101_spill] sm:$0xff] }
 0x207   :  { %2149 = vmatpush.msrb.mxu1 %v1405_v63  ;;  %2169 = vmatpush.msrb.mxu2 %v1469_v59  ;;  %v1445_v42 = vunpack.c.h.bf16 %v5346_v11  ;;  %v1509_v57 = vunpack.c.h.bf16 %v5347_v3  ;;  %v5348_v63 = vld [vmem:[#allocation102_spill] sm:$0xff]  ;;  %v1377_v59 = vunpack.c.h.bf16 %v4325_v50  ;;  %v1779_v29 = vpop.f32.mrf.mxu2 }
 0x208   :  { %2189 = vmatpush.msrb.mxu3 %v1533_v4  ;;  %2130 = vmatpush.msrb.mxu0 %v1337_v18  ;;  %v1313_v37 = vunpack.c.h.bf16 %v5348_v63  ;;  %v1505_v4 = vunpack.c.h.bf16 %v4331_v46  ;;  %v1437_v18 = vunpack.c.h.bf16 %v4339_v6  ;;  %v1599_v46 = vpop.f32.mrf.mxu1  ;;  %v1639_v6 = vpop.f32.mrf.mxu3 }
 0x209   :  { %2150 = vmatpush.msrb.mxu1 %v1401_v52  ;;  %2170 = vmatpush.msrb.mxu2 %v1465_v43 }
 0x20a   :  { %2190 = vmatpush.msrb.mxu3 %v1529_v60  ;;  %2131 = vmatpush.msrb.mxu0 %v1333_v39 }
 0x20b   :  { %2151 = vmatpush.msrb.mxu1 %v1397_v10  ;;  %2171 = vmatpush.msrb.mxu2 %v1461_v45 }
 0x20c   :  { %2191 = vmatpush.msrb.mxu3 %v1525_v20  ;;  %2132 = vmatpush.msrb.mxu0 %v1329_v32 }
 0x20d   :  { %2152 = vmatpush.msrb.mxu1 %v1393_v56  ;;  %2172 = vmatpush.msrb.mxu2 %v1457_v1  ;;  %v1739_v25 = vpop.f32.mrf.mxu0 }
 0x20e   :  { %2192 = vmatpush.msrb.mxu3 %v1521_v7  ;;  %2133 = vmatpush.msrb.mxu0 %v1325_v24 }
 0x20f   :  { %2153 = vmatpush.msrb.mxu1 %v1389_v36  ;;  %2173 = vmatpush.msrb.mxu2 %v1453_v33  ;;  %v1859_v39 = vpop.f32.mrf.mxu2 }
 0x210   :  { %2193 = vmatpush.msrb.mxu3 %v1517_v62  ;;  %2134 = vmatpush.msrb.mxu0 %v1321_v47  ;;  %v1679_v50 = vpop.f32.mrf.mxu1  ;;  %v1719_v52 = vpop.f32.mrf.mxu3 }
 0x211   :  { %2154 = vmatpush.msrb.mxu1 %v1385_v5  ;;  %2174 = vmatpush.msrb.mxu2 %v1449_v44 }
 0x212   :  { %2194 = vmatpush.msrb.mxu3 %v1513_v41  ;;  %2135 = vmatpush.msrb.mxu0 %v1317_v40 }
 0x213   :  { %2155 = vmatpush.msrb.mxu1 %v1381_v58  ;;  %2175 = vmatpush.msrb.mxu2 %v1445_v42 }
 0x214   :  { %2195 = vmatpush.msrb.mxu3 %v1509_v57  ;;  %2136 = vmatpush.msrb.mxu0 %v1313_v37 }
 0x215   :  { %2156 = vmatpush.msrb.mxu1 %v1377_v59  ;;  %2176 = vmatpush.msrb.mxu2 %v1441_v35  ;;  %v1819_v48 = vpop.f32.mrf.mxu0 }
 0x216   :  { %2196 = vmatpush.msrb.mxu3 %v1505_v4  ;;  %2137 = vmatpush.msrb.mxu0 %v1309_v51 }
 0x217   :  { %2157 = vmatpush.msrb.mxu1 %v1373_v28  ;;  %2177 = vmatpush.msrb.mxu2 %v1437_v18 }
 0x218   :  { %2197 = vmatpush.msrb.mxu3 %v1501_v49  ;;  %2138 = vmatmul.f32.vlgmr.msrb.gmra.mxu0 %v3876_v16  ;;  %v1759_v43 = vpop.f32.mrf.mxu1  ;;  %v1799_v60 = vpop.f32.mrf.mxu3 }
 0x219   :  { %2158 = vmatmul.f32.vlgmr.msrb.gmra.mxu1 %v3883_v55  ;;  %2178 = vmatmul.f32.vlgmr.msrb.gmra.mxu2 %v3890_v9  ;;  %v1600_v55 = vadd.f32 %v1599_v46, %v1579_v26  ;;  %v1760_v45 = vadd.f32 %v1759_v43, %v1739_v25 }
 0x21a   :  { %2198 = vmatmul.f32.vlgmr.msrb.gmra.mxu3 %v3879_v53 }
 0x21b   :  { %v1620_v17 = vadd.f32 %v1619_v0, %v1600_v55  ;;  %v1780_v20 = vadd.f32 %v1779_v29, %v1760_v45 }
 0x21d   :  { %v1899_v10 = vpop.f32.mrf.mxu0  ;;  %v1640_v14 = vadd.f32 %v1639_v6, %v1620_v17  ;;  %v1800_v56 = vadd.f32 %v1799_v60, %v1780_v20 }
 0x21f   :  { %v1660_v32 = vadd.f32 %v1659_v61, %v1640_v14  ;;  %v1820_v7 = vadd.f32 %v1819_v48, %v1800_v56 }
 0x220   :  { %v1839_v16 = vpop.f32.mrf.mxu1  ;;  %v1879_v9 = vpop.f32.mrf.mxu3 }
 0x221   :  { %v1939_v22 = vpop.f32.mrf.mxu2  ;;  %v1680_v34 = vadd.f32 %v1679_v50, %v1660_v32  ;;  %v1840_v36 = vadd.f32 %v1839_v16, %v1820_v7 }
 0x223   :  { %v1700_v38 = vadd.f32 %v1699_v27, %v1680_v34  ;;  %v1860_v30 = vadd.f32 %v1859_v39, %v1840_v36 }
 0x225   :  { %v4490_v54 = vadd.f32 %v1719_v52, %v1700_v38  ;;  %v4492_v12 = vadd.f32 %v1879_v9, %v1860_v30  ;;  %v5352_v9 = vld [vmem:[#allocation16_spill] sm:$0xff] }
 0x227   :  { %5349 = vst [vmem:[#allocation17_spill] sm:$0xff] %v4490_v54  ;;  %v2206_v23 = vrot.slane %v4490_v54, 4  ;;  %v2234_v44 = vmul.f32 %v4490_v54, %v4490_v54  ;;  %v2212_v41 = vrot.slane %v4492_v12, 4  ;;  %v2235_v8 = vmul.f32 %v4492_v12, %v4492_v12 }
 0x228   :  { %v1919_v53 = vpop.f32.mrf.mxu1  ;;  %v1959_v15 = vpop.f32.mrf.mxu3  ;;  %5350 = vst [vmem:[#allocation18_spill] sm:$0xff] %v4492_v12 }
 0x229   :  { %v1920_v31 = vadd.f32 %v1919_v53, %v1899_v10  ;;  %v2207_v40 = vadd.f32 %v2206_v23, %v4490_v54  ;;  %v2238_v58 = vrot.slane %v2234_v44, 4  ;;  %v2213_v3 = vadd.f32 %v2212_v41, %v4492_v12 }
 0x22a   :  { %v2244_v57 = vrot.slane %v2235_v8, 4 }
 0x22b   :  { %v1940_v19 = vadd.f32 %v1939_v22, %v1920_v31  ;;  %v2208_v63 = vrot.slane %v2207_v40, 2  ;;  %v2239_v37 = vadd.f32 %v2238_v58, %v2234_v44  ;;  %v2214_v4 = vrot.slane %v2213_v3, 2 }
 0x22c   :  { %v2245_v51 = vadd.f32 %v2244_v57, %v2235_v8  ;;  %v4528_v57 = vld [vmem:[#allocation8 + $0x78] sm:$0xff] }
 0x22d   :  { %v1960_v21 = vadd.f32 %v1959_v15, %v1940_v19  ;;  %v2209_v28 = vadd.f32 %v2208_v63, %v2207_v40  ;;  %v2240_v18 = vrot.slane %v2239_v37, 2  ;;  %v2215_v46 = vadd.f32 %v2214_v4, %v2213_v3  ;;  %v4530_v63 = vld [vmem:[#allocation8 + $0xf8] sm:$0xff] }
 0x22e   :  { %v2246_v0 = vrot.slane %v2245_v51, 2  ;;  %v2542_v4 = vunpack.c.l.bf16 %v4530_v63 }
 0x22f   :  { %v2210_v6 = vrot.slane %v2209_v28, 1  ;;  %v2241_v61 = vadd.f32 %v2240_v18, %v2239_v37  ;;  %v2216_v52 = vrot.slane %v2215_v46, 1  ;;  %v4532_v37 = vld [vmem:[#allocation8 + $0x178] sm:$0xff] }
 0x230   :  { %v2247_v25 = vadd.f32 %v2246_v0, %v2245_v51  ;;  %v2574_v51 = vunpack.c.l.bf16 %v4532_v37  ;;  %v4548_v0 = vld [vmem:[#allocation8 + $0x170] sm:$0xff]  ;;  %2634 = vmatpush.msra.mxu1 %v2542_v4 }
 0x231   :  { %v2211_v43 = vadd.f32 %v2210_v6, %v2209_v28  ;;  %v2242_v29 = vrot.slane %v2241_v61, 1  ;;  %v2217_v16 = vadd.f32 %v2216_v52, %v2215_v46  ;;  %v4539_v28 = vld [vmem:[#allocation8 + $0x1f8] sm:$0xff]  ;;  %v4546_v46 = vld [vmem:[#allocation8 + $0xf0] sm:$0xff] }
 0x232   :  { %v2248_v39 = vrot.slane %v2247_v25, 1  ;;  %v4555_v52 = vld [vmem:[#allocation8 + $0x1f0] sm:$0xff]  ;;  %2654 = vmatpush.msra.mxu2 %v2574_v51 }
 0x233   :  { %v4509_v10 = vmul.f32 %v2211_v43, %v5352_v9  ;;  %v2243_v53 = vadd.f32 %v2242_v29, %v2241_v61  ;;  %v4512_v31 = vmul.f32 %v2217_v16, %v5352_v9  ;;  %v2572_v43 = vunpack.c.l.bf16 %v4548_v0  ;;  %v4566_v16 = vld [vmem:[#allocation8 + $0x168] sm:$0xff] }
 0x234   :  { %v2249_v32 = vadd.f32 %v2248_v39, %v2247_v25  ;;  %v2604_v29 = vunpack.c.l.bf16 %v4555_v52 }
 0x235   :  { %5353 = vst [vmem:[#allocation20_spill] sm:$0xff] %v4509_v10  ;;  %v2262_v56 = vmul.f32 %v2243_v53, %v5352_v9  ;;  %v2266_v15 = vmul.f32 %v4509_v10, %v4509_v10  ;;  %2655 = vmatpush.msra.mxu2 %v2572_v43  ;;  %v4619_v43 = vld [vmem:[#allocation8 + $0xc8] sm:$0xff] }
 0x236   :  { %5354 = vst [vmem:[#allocation21_spill] sm:$0xff] %v4512_v31  ;;  %v2263_v7 = vmul.f32 %v2249_v32, %v5352_v9  ;;  %v4578_v32 = vld [vmem:[#allocation8 + $0xe0] sm:$0xff] }
 0x24e   :  { %v1979_v1 = vpop.f32.mrf.mxu0 }
 0x24f   :  { %v1980_v24 = vadd.f32 %v1979_v1, %v1960_v21  ;;  %v2267_v21 = vmul.f32 %v4512_v31, %v4512_v31 }
 0x253   :  { %v1999_v2 = vpop.f32.mrf.mxu1 }
 0x254   :  { %v2000_v62 = vadd.f32 %v1999_v2, %v1980_v24  ;;  %v2270_v2 = vsub.f32 %v2262_v56, %v2266_v15 }
 0x258   :  { %v2019_v33 = vpop.f32.mrf.mxu2 }
 0x259   :  { %v2020_v47 = vadd.f32 %v2019_v33, %v2000_v62  ;;  %v2039_v5 = vpop.f32.mrf.mxu3 }
 0x25b   :  { %v4497_v13 = vadd.f32 %v2039_v5, %v2020_v47  ;;  %v2271_v47 = vsub.f32 %v2263_v7, %v2267_v21  ;;  %v2274_v5 = vmax.f32 %v2270_v2, 0.0  ;;  %v2536_v7 = vunpack.c.l.bf16 %v4578_v32  ;;  %v4584_v21 = vld [vmem:[#allocation8 + $0x1e0] sm:$0xff]  ;;  %v4591_v2 = vld [vmem:[#allocation8 + $0xd8] sm:$0xff] }
 0x25d   :  { %5351 = vst [vmem:[#allocation19_spill] sm:$0xff] %v4497_v13  ;;  %v2218_v11 = vrot.slane %v4497_v13, 4  ;;  %v2236_v42 = vmul.f32 %v4497_v13, %v4497_v13  ;;  %v2275_v8 = vmax.f32 %v2271_v47, 0.0 }
 0x25f   :  { %v2219_v59 = vadd.f32 %v2218_v11, %v4497_v13  ;;  %v2250_v35 = vrot.slane %v2236_v42, 4  ;;  %v4526_v11 = vadd.f32 1e-05, %v2274_v5  ;;  %v4541_v18 = vadd.f32 1e-05, %v2275_v8 }
 0x260   :  { %v2534_v5 = vunpack.c.l.bf16 %v4591_v2 }
 0x261   :  { %v2220_v49 = vrot.slane %v2219_v59, 2  ;;  %v2251_v26 = vadd.f32 %v2250_v35, %v2236_v42  ;;  %v2510_v35 = vunpack.c.l.bf16 %v4528_v57  ;;  %2866 = vrsqrt.f32 %v4526_v11 }
 0x262   :  { %2868 = vrsqrt.f32 %v4541_v18  ;;  %vm2298_vm13 = vweird.f32 %v4541_v18  ;;  %vm2288_vm9 = vweird.f32 %v4526_v11 }
 0x263   :  { %v2221_v50 = vadd.f32 %v2220_v49, %v2219_v59  ;;  %v2252_v27 = vrot.slane %v2251_v26, 2  ;;  %v2606_v49 = vunpack.c.l.bf16 %v4539_v28  ;;  %2614 = vmatpush.msra.mxu0 %v2510_v35 }
 0x265   :  { %v2222_v60 = vrot.slane %v2221_v50, 1  ;;  %v2253_v48 = vadd.f32 %v2252_v27, %v2251_v26  ;;  %v4544_v26 = vld [vmem:[#allocation8 + $0x70] sm:$0xff]  ;;  %v2540_v27 = vunpack.c.l.bf16 %v4546_v46  ;;  %2674 = vmatpush.msra.mxu3 %v2606_v49 }
 0x266   :  { %v4611_v49 = vld [vmem:[#allocation8 + $0x1d0] sm:$0xff] }
 0x267   :  { %v2223_v14 = vadd.f32 %v2222_v60, %v2221_v50  ;;  %v2254_v45 = vrot.slane %v2253_v48, 1  ;;  %v2508_v50 = vunpack.c.l.bf16 %v4544_v26  ;;  %v4562_v60 = vld [vmem:[#allocation8 + $0x68] sm:$0xff]  ;;  %2635 = vmatpush.msra.mxu1 %v2540_v27  ;;  %2675 = vmatpush.msra.mxu3 %v2604_v29 }
 0x268   :  { %v4617_v27 = vld [vmem:[#allocation8 + $0x48] sm:$0xff] }
 0x269   :  { %v4518_v1 = vmul.f32 %v2223_v14, %v5352_v9  ;;  %v2255_v34 = vadd.f32 %v2254_v45, %v2253_v48  ;;  %v4564_v48 = vld [vmem:[#allocation8 + $0xe8] sm:$0xff]  ;;  %2615 = vmatpush.msra.mxu0 %v2508_v50  ;;  %v2570_v45 = vunpack.c.l.bf16 %v4566_v16  ;;  %v2596_v50 = vunpack.c.l.bf16 %v4611_v49 }
 0x26a   :  { %v2538_v53 = vunpack.c.l.bf16 %v4564_v48  ;;  %v4571_v14 = vld [vmem:[#allocation8 + $0x1e8] sm:$0xff] }
 0x26b   :  { %5355 = vst [vmem:[#allocation22_spill] sm:$0xff] %v4518_v1  ;;  %v2264_v33 = vmul.f32 %v2255_v34, %v5352_v9  ;;  %v2268_v30 = vmul.f32 %v4518_v1, %v4518_v1  ;;  %2656 = vmatpush.msra.mxu2 %v2570_v45  ;;  %v4621_v29 = vld [vmem:[#allocation8 + $0x148] sm:$0xff] }
 0x26c   :  { %2636 = vmatpush.msra.mxu1 %v2538_v53  ;;  %v2530_v53 = vunpack.c.l.bf16 %v4619_v43  ;;  %v4625_v45 = vld [vmem:[#allocation8 + $0x1c8] sm:$0xff] }
 0x26d   :  { %v2272_v23 = vsub.f32 %v2264_v33, %v2268_v30  ;;  %v4593_v33 = vld [vmem:[#allocation8 + $0x158] sm:$0xff]  ;;  %v4682_v1 = vld [vmem:[#allocation8 + $0xa8] sm:$0xff] }
 0x26e   :  { %2637 = vmatpush.msra.mxu1 %v2536_v7  ;;  %v4633_v7 = vld [vmem:[#allocation8 + $0xc0] sm:$0xff]  ;;  %5361 = vst [vmem:[#allocation28_spill] sm:$0xff] %v4682_v1 }
 0x26f   :  { %v2276_v42 = vmax.f32 %v2272_v23, 0.0  ;;  %v4597_v23 = vld [vmem:[#allocation8 + $0x1d8] sm:$0xff] }
 0x270   :  { %v2598_v8 = vunpack.c.l.bf16 %v4597_v23  ;;  %2638 = vmatpush.msra.mxu1 %v2534_v5  ;;  %v4642_v5 = vld [vmem:[#allocation8 + $0x1c0] sm:$0xff] }
 0x271   :  { %v4558_v25 = vadd.f32 1e-05, %v2276_v42  ;;  %v4607_v42 = vld [vmem:[#allocation8 + $0x150] sm:$0xff] }
 0x273   :  { %v2059_v55 = vpop.f32.mrf.mxu0  ;;  %2870 = vrsqrt.f32 %v4558_v25  ;;  %vm2308_vm4 = vweird.f32 %v4558_v25 }
 0x274   :  { %v2079_v17 = vpop.f32.mrf.mxu1 }
 0x275   :  { %v2080_v20 = vadd.f32 %v2079_v17, %v2059_v55  ;;  %v2506_v17 = vunpack.c.l.bf16 %v4562_v60 }
 0x277   :  { %2616 = vmatpush.msra.mxu0 %v2506_v17  ;;  %v2498_v17 = vunpack.c.l.bf16 %v4617_v27 }
 0x27a   :  { %v2099_v22 = vpop.f32.mrf.mxu2 }
 0x27b   :  { %v2100_v19 = vadd.f32 %v2099_v22, %v2080_v20  ;;  %v2119_v24 = vpop.f32.mrf.mxu3  ;;  %v2602_v22 = vunpack.c.l.bf16 %v4571_v14  ;;  %v4576_v20 = vld [vmem:[#allocation8 + $0x60] sm:$0xff] }
 0x27c   :  { %v2504_v34 = vunpack.c.l.bf16 %v4576_v20 }
 0x27d   :  { %v2120_v38 = vadd.f32 %v2119_v24, %v2100_v19  ;;  %v4580_v19 = vld [vmem:[#allocation8 + $0x160] sm:$0xff]  ;;  %2676 = vmatpush.msra.mxu3 %v2602_v22 }
 0x27e   :  { %v2568_v24 = vunpack.c.l.bf16 %v4580_v19  ;;  %2617 = vmatpush.msra.mxu0 %v2504_v34  ;;  %v4631_v34 = vld [vmem:[#allocation8 + $0x40] sm:$0xff] }
 0x280   :  { %2657 = vmatpush.msra.mxu2 %v2568_v24  ;;  %v4635_v24 = vld [vmem:[#allocation8 + $0x140] sm:$0xff] }
 0x295   :  { %v2139_v36 = vpop.f32.mrf.mxu0 }
 0x296   :  { %v2140_v62 = vadd.f32 %v2139_v36, %v2120_v38  ;;  %v2159_v44 = vpop.f32.mrf.mxu1  ;;  %v2600_v38 = vunpack.c.l.bf16 %v4584_v21  ;;  %v4589_v36 = vld [vmem:[#allocation8 + $0x58] sm:$0xff] }
 0x297   :  { %v2502_v47 = vunpack.c.l.bf16 %v4589_v36 }
 0x298   :  { %v2160_v41 = vadd.f32 %v2159_v44, %v2140_v62  ;;  %v4599_v44 = vpop.eup %2866  ;;  %2677 = vmatpush.msra.mxu3 %v2600_v38 }
 0x299   :  { %2618 = vmatpush.msra.mxu0 %v2502_v47  ;;  %v2528_v47 = vunpack.c.l.bf16 %v4633_v7  ;;  %vm2289_vm2 = vweird.f32 %v4599_v44 }
 0x29a   :  { %2678 = vmatpush.msra.mxu3 %v2598_v8  ;;  %v2560_v8 = vunpack.c.l.bf16 %v4635_v24  ;;  %vm2290_vm10 = vmor %vm2288_vm9, %vm2289_vm2 }
 0x29c   :  { %v2179_v40 = vpop.f32.mrf.mxu2  ;;  %2679 = vmatpush.msra.mxu3 %v2596_v50 }
 0x29d   :  { %v2180_v58 = vadd.f32 %v2179_v40, %v2160_v41  ;;  %v2199_v3 = vpop.f32.mrf.mxu3  ;;  %v2566_v41 = vunpack.c.l.bf16 %v4593_v33  ;;  %v4603_v40 = vld [vmem:[#allocation8 + $0x50] sm:$0xff] }
 0x29e   :  { %v2500_v4 = vunpack.c.l.bf16 %v4603_v40 }
 0x29f   :  { %v4534_v59 = vadd.f32 %v2199_v3, %v2180_v58  ;;  %v4605_v58 = vld [vmem:[#allocation8 + $0xd0] sm:$0xff]  ;;  %2658 = vmatpush.msra.mxu2 %v2566_v41 }
 0x2a0   :  { %v2532_v51 = vunpack.c.l.bf16 %v4605_v58  ;;  %2619 = vmatpush.msra.mxu0 %v2500_v4  ;;  %v4648_v4 = vld [vmem:[#allocation8 + $0x38] sm:$0xff] }
 0x2a1   :  { %5356 = vst [vmem:[#allocation23_spill] sm:$0xff] %v4534_v59  ;;  %v2224_v6 = vrot.slane %v4534_v59, 4  ;;  %v2237_v61 = vmul.f32 %v4534_v59, %v4534_v59 }
 0x2a2   :  { %2639 = vmatpush.msra.mxu1 %v2532_v51  ;;  %2620 = vmatpush.msra.mxu0 %v2498_v17  ;;  %v4652_v51 = vld [vmem:[#allocation8 + $0x138] sm:$0xff] }
 0x2a3   :  { %v2225_v39 = vadd.f32 %v2224_v6, %v4534_v59  ;;  %v2256_v55 = vrot.slane %v2237_v61, 4  ;;  %v4613_v6 = vpop.eup %2868  ;;  %v4659_v17 = vld [vmem:[#allocation8 + $0x1b8] sm:$0xff] }
 0x2a4   :  { %v4627_v22 = vpop.eup %2870  ;;  %2640 = vmatpush.msra.mxu1 %v2530_v53  ;;  %v2293_v41 = vmul.f32 %v4613_v6, %v4541_v18  ;;  %v2283_v53 = vmul.f32 %v4599_v44, %v4526_v11  ;;  %vm2299_vm12 = vweird.f32 %v4613_v6  ;;  %v2203_v11 = vld [vmem:[#allocation10 + $0x10] ss:$2 sm:$0xf] }
 0x2a5   :  { %v2226_v56 = vrot.slane %v2225_v39, 2  ;;  %v2257_v15 = vadd.f32 %v2256_v55, %v2237_v61  ;;  %v2564_v61 = vunpack.c.l.bf16 %v4607_v42  ;;  %vm2309_vm0 = vweird.f32 %v4627_v22  ;;  %vm4786_vm3 = vmor %vm2298_vm13, %vm2299_vm12 }
 0x2a6   :  { %2641 = vmatpush.msra.mxu1 %v2528_v47  ;;  %v4671_v47 = vld [vmem:[#allocation8 + $0x130] sm:$0xff]  ;;  %v2294_v59 = vmul.f32 %v4613_v6, %v2293_v41  ;;  %v4689_v41 = vld [vmem:[#allocation8 + $0x1a8] sm:$0xff]  ;;  %vm4800_vm5 = vmor %vm2308_vm4, %vm2309_vm0 }
 0x2a7   :  { %v2227_v30 = vadd.f32 %v2226_v56, %v2225_v39  ;;  %v2258_v62 = vrot.slane %v2257_v15, 2  ;;  %2659 = vmatpush.msra.mxu2 %v2564_v61  ;;  %v2562_v56 = vunpack.c.l.bf16 %v4621_v29  ;;  %5358 = vst [vmem:[#allocation25_spill] sm:$0xff] %v4671_v47 }
 0x2a8   :  { %5363 = vst [vmem:[#allocation30_spill] sm:$0xff] %v4689_v41 }
 0x2a9   :  { %v2228_v3 = vrot.slane %v2227_v30, 1  ;;  %v2259_v35 = vadd.f32 %v2258_v62, %v2257_v15  ;;  %v2594_v15 = vunpack.c.l.bf16 %v4625_v45  ;;  %v2496_v62 = vunpack.c.l.bf16 %v4631_v34  ;;  %2660 = vmatpush.msra.mxu2 %v2562_v56 }
 0x2aa   :  { %v2303_v56 = vmul.f32 %v4627_v22, %v4558_v25  ;;  %v2569_v25 = vunpack.c.h.bf16 %v4580_v19  ;;  %v2567_v19 = vunpack.c.h.bf16 %v4593_v33  ;;  %v2565_v33 = vunpack.c.h.bf16 %v4607_v42 }
 0x2ab   :  { %v2229_v39 = vadd.f32 %v2228_v3, %v2227_v30  ;;  %v2260_v55 = vrot.slane %v2259_v35, 1  ;;  %2680 = vmatpush.msra.mxu3 %v2594_v15  ;;  %v2592_v3 = vunpack.c.l.bf16 %v4642_v5  ;;  %2621 = vmatpush.msra.mxu0 %v2496_v62  ;;  %v2590_v15 = vunpack.c.l.bf16 %v4659_v17  ;;  %v4669_v62 = vld [vmem:[#allocation8 + $0xb0] sm:$0xff] }
 0x2ac   :  { %2661 = vmatpush.msra.mxu2 %v2560_v8  ;;  %v2524_v54 = vunpack.c.l.bf16 %v4669_v62  ;;  %v2556_v8 = vunpack.c.l.bf16 %v4671_v47  ;;  %v4694_v47 = vld [vmem:[#allocation8 + $0x20] sm:$0xff]  ;;  %v2563_v42 = vunpack.c.h.bf16 %v4621_v29  ;;  %v2593_v29 = vunpack.c.h.bf16 %v4642_v5 }
 0x2ad   :  { %v4638_v38 = vmul.f32 %v2229_v39, %v5352_v9  ;;  %v2261_v30 = vadd.f32 %v2260_v55, %v2259_v35  ;;  %v4650_v35 = vld [vmem:[#allocation8 + $0xb8] sm:$0xff]  ;;  %v2494_v39 = vunpack.c.l.bf16 %v4648_v4  ;;  %2681 = vmatpush.msra.mxu3 %v2592_v3  ;;  %v4676_v3 = vld [vmem:[#allocation8 + $0x1b0] sm:$0xff]  ;;  %5364 = vst [vmem:[#allocation31_spill] sm:$0xff] %v4694_v47  ;;  %v2525_v5 = vunpack.c.h.bf16 %v4669_v62 }
 0x2ae   :  { %v2526_v55 = vunpack.c.l.bf16 %v4650_v35  ;;  %5359 = vst [vmem:[#allocation26_spill] sm:$0xff] %v4676_v3  ;;  %v2588_v10 = vunpack.c.l.bf16 %v4676_v3  ;;  %v2586_v3 = vunpack.c.l.bf16 %v4689_v41 }
 0x2af   :  { %5357 = vst [vmem:[#allocation24_spill] sm:$0xff] %v4638_v38  ;;  %v2265_v61 = vmul.f32 %v2261_v30, %v5352_v9  ;;  %v2269_v50 = vmul.f32 %v4638_v38, %v4638_v38  ;;  %v2558_v9 = vunpack.c.l.bf16 %v4652_v51  ;;  %v4667_v30 = vld [vmem:[#allocation8 + $0x30] sm:$0xff]  ;;  %2622 = vmatpush.msra.mxu0 %v2494_v39  ;;  %2682 = vmatpush.msra.mxu3 %v2590_v15  ;;  %v4680_v38 = vld [vmem:[#allocation8 + $0x28] sm:$0xff]  ;;  %v5394_v62 = vld [vmem:[#allocation30_spill] sm:$0xff] }
 0x2b0   :  { %2642 = vmatpush.msra.mxu1 %v2526_v55  ;;  %v2492_v12 = vunpack.c.l.bf16 %v4667_v30  ;;  %5360 = vst [vmem:[#allocation27_spill] sm:$0xff] %v4680_v38  ;;  %v2490_v39 = vunpack.c.l.bf16 %v4680_v38  ;;  %v2522_v55 = vunpack.c.l.bf16 %v4682_v1  ;;  %v2304_v15 = vmul.f32 %v4627_v22, %v2303_v56  ;;  %v4708_v1 = vld [vmem:[#allocation8 + $0x18] sm:$0xff] }
 0x2b1   :  { %v2273_v13 = vsub.f32 %v2265_v61, %v2269_v50  ;;  %2662 = vmatpush.msra.mxu2 %v2558_v9  ;;  %v4684_v61 = vld [vmem:[#allocation8 + $0x128] sm:$0xff]  ;;  %v2284_v9 = vmul.f32 %v4599_v44, %v2283_v53  ;;  %2683 = vmatpush.msra.mxu3 %v2588_v10  ;;  %v2295_v10 = vmul.f32 0.5, %v2294_v59  ;;  %5368 = vst [vmem:[#allocation35_spill] sm:$0xff] %v4708_v1  ;;  %v4710_v38 = vld [vmem:[#allocation8 + $0x98] sm:$0xff] }
 0x2b2   :  { %5362 = vst [vmem:[#allocation29_spill] sm:$0xff] %v4684_v61  ;;  %2623 = vmatpush.msra.mxu0 %v2492_v12  ;;  %2643 = vmatpush.msra.mxu1 %v2524_v54  ;;  %v2554_v31 = vunpack.c.l.bf16 %v4684_v61  ;;  %v4696_v12 = vld [vmem:[#allocation8 + $0xa0] sm:$0xff]  ;;  %v2488_v61 = vunpack.c.l.bf16 %v4694_v47  ;;  %v4721_v59 = vmul.f32 0.5, %v2304_v15  ;;  %v4741_v47 = vld [vmem:[#allocation8 + $0x108] sm:$0xff] }
 0x2b3   :  { %v2277_v50 = vmax.f32 %v2273_v13, 0.0  ;;  %2663 = vmatpush.msra.mxu2 %v2556_v8  ;;  %5365 = vst [vmem:[#allocation32_spill] sm:$0xff] %v4696_v12  ;;  %v4698_v54 = vld [vmem:[#allocation8 + $0x120] sm:$0xff]  ;;  %v2520_v53 = vunpack.c.l.bf16 %v4696_v12  ;;  %2684 = vmatpush.msra.mxu3 %v2586_v3  ;;  %v4725_v12 = vld [vmem:[#allocation8 + $0x10] sm:$0xff] }
 0x2b4   :  { %5366 = vst [vmem:[#allocation33_spill] sm:$0xff] %v4698_v54  ;;  %2624 = vmatpush.msra.mxu0 %v2490_v39  ;;  %2644 = vmatpush.msra.mxu1 %v2522_v55  ;;  %v2552_v56 = vunpack.c.l.bf16 %v4698_v54  ;;  %v4705_v8 = vld [vmem:[#allocation8 + $0x1a0] sm:$0xff]  ;;  %v2486_v39 = vunpack.c.l.bf16 %v4708_v1  ;;  %v2518_v55 = vunpack.c.l.bf16 %v4710_v38  ;;  %v4717_v54 = vld [vmem:[#allocation8 + $0x198] sm:$0xff]  ;;  %v4739_v1 = vld [vmem:[#allocation8 + $0x88] sm:$0xff] }
 0x2b5   :  { %v4700_v13 = vadd.f32 1e-05, %v2277_v50  ;;  %5367 = vst [vmem:[#allocation34_spill] sm:$0xff] %v4705_v8  ;;  %2664 = vmatpush.msra.mxu2 %v2554_v31  ;;  %v2584_v41 = vunpack.c.l.bf16 %v4705_v8  ;;  %v4712_v50 = vld [vmem:[#allocation8 + $0x118] sm:$0xff]  ;;  %v4719_v31 = vmul.f32 0.5, %v2284_v9  ;;  %v2582_v8 = vunpack.c.l.bf16 %v4717_v54 }
 0x2b6   :  { %5369 = vst [vmem:[#allocation36_spill] sm:$0xff] %v4710_v38  ;;  %2625 = vmatpush.msra.mxu0 %v2488_v61  ;;  %2645 = vmatpush.msra.mxu1 %v2520_v53  ;;  %v2550_v3 = vunpack.c.l.bf16 %v4712_v50  ;;  %v4727_v61 = vld [vmem:[#allocation8 + $0x90] sm:$0xff]  ;;  %v2484_v38 = vunpack.c.l.bf16 %v4725_v12 }
 0x2b7   :  { %5370 = vst [vmem:[#allocation37_spill] sm:$0xff] %v4712_v50  ;;  %2872 = vrsqrt.f32 %v4700_v13  ;;  %2665 = vmatpush.msra.mxu2 %v2552_v56  ;;  %2685 = vmatpush.msra.mxu3 %v2584_v41  ;;  %v4729_v53 = vld [vmem:[#allocation8 + $0x110] sm:$0xff]  ;;  %v2516_v9 = vunpack.c.l.bf16 %v4727_v61  ;;  %v2296_v41 = vsub.f32 1.5, %v2295_v10  ;;  %v4737_v50 = vld [vmem:[#allocation8 + $0x8] sm:$0xff]  ;;  %v2306_v10 = vsub.f32 1.5, %v4721_v59 }
 0x2b8   :  { %5371 = vst [vmem:[#allocation38_spill] sm:$0xff] %v4717_v54  ;;  %2626 = vmatpush.msra.mxu0 %v2486_v39  ;;  %2646 = vmatpush.msra.mxu1 %v2518_v55  ;;  %v2548_v15 = vunpack.c.l.bf16 %v4729_v53  ;;  %v4734_v56 = vld [vmem:[#allocation8 + $0x190] sm:$0xff]  ;;  %v2482_v39 = vunpack.c.l.bf16 %v4737_v50  ;;  %v2514_v55 = vunpack.c.l.bf16 %v4739_v1  ;;  %vm2318_vm7 = vweird.f32 %v4700_v13 }
 0x2b9   :  { %5372 = vst [vmem:[#allocation39_spill] sm:$0xff] %v4727_v61  ;;  %2666 = vmatpush.msra.mxu2 %v2550_v3  ;;  %2686 = vmatpush.msra.mxu3 %v2582_v8  ;;  %v2580_v54 = vunpack.c.l.bf16 %v4734_v56  ;;  %v4746_v61 = vld [vmem:[#allocation8 + $0x188] sm:$0xff]  ;;  %v2286_v8 = vsub.f32 1.5, %v4719_v31 }
 0x2ba   :  { %5373 = vst [vmem:[#allocation40_spill] sm:$0xff] %v4729_v53  ;;  %2627 = vmatpush.msra.mxu0 %v2484_v38  ;;  %2647 = vmatpush.msra.mxu1 %v2516_v9  ;;  %v2546_v53 = vunpack.c.l.bf16 %v4741_v47  ;;  %v2578_v3 = vunpack.c.l.bf16 %v4746_v61  ;;  %v4752_v38 = vld [vmem:[#allocation8] sm:$0xff] }
 0x2bb   :  { %5374 = vst [vmem:[#allocation41_spill] sm:$0xff] %v4734_v56  ;;  %2667 = vmatpush.msra.mxu2 %v2548_v15  ;;  %2687 = vmatpush.msra.mxu3 %v2580_v54  ;;  %v4754_v9 = vld [vmem:[#allocation8 + $0x80] sm:$0xff]  ;;  %v2480_v31 = vunpack.c.l.bf16 %v4752_v38  ;;  %v2511_v54 = vunpack.c.h.bf16 %v4528_v57  ;;  %v2541_v57 = vunpack.c.h.bf16 %v4546_v46  ;;  %v2571_v46 = vunpack.c.h.bf16 %v4566_v16 }
 0x2bc   :  { %5375 = vst [vmem:[#allocation42_spill] sm:$0xff] %v4737_v50  ;;  %v4756_v50 = vld [vmem:[#allocation8 + $0x100] sm:$0xff]  ;;  %2628 = vmatpush.msra.mxu0 %v2482_v39  ;;  %2648 = vmatpush.msra.mxu1 %v2514_v55  ;;  %v2543_v55 = vunpack.c.h.bf16 %v4530_v63  ;;  %v2605_v63 = vunpack.c.h.bf16 %v4555_v52 }
 0x2bd   :  { %5376 = vst [vmem:[#allocation43_spill] sm:$0xff] %v4739_v1  ;;  %v4758_v1 = vpop.eup %2872  ;;  %v2544_v59 = vunpack.c.l.bf16 %v4756_v50  ;;  %v4763_v15 = vld [vmem:[#allocation8 + $0x180] sm:$0xff]  ;;  %2668 = vmatpush.msra.mxu2 %v2546_v53  ;;  %2688 = vmatpush.msra.mxu3 %v2578_v3  ;;  %v2573_v53 = vunpack.c.h.bf16 %v4548_v0  ;;  %v2603_v0 = vunpack.c.h.bf16 %v4571_v14  ;;  %v2601_v14 = vunpack.c.h.bf16 %v4584_v21 }
 0x2be   :  { %5377 = vst [vmem:[#allocation44_spill] sm:$0xff] %v4741_v47  ;;  %v2512_v47 = vunpack.c.l.bf16 %v4754_v9  ;;  %v2313_v56 = vmul.f32 %v4758_v1, %v4700_v13  ;;  %v2576_v39 = vunpack.c.l.bf16 %v4763_v15  ;;  %2629 = vmatpush.msra.mxu0 %v2480_v31  ;;  %vm2319_vm6 = vweird.f32 %v4758_v1 }
 0x2bf   :  { %5378 = vst [vmem:[#allocation45_spill] sm:$0xff] %v4746_v61  ;;  %v2297_v61 = vmul.f32 %v4613_v6, %v2296_v41  ;;  %2669 = vmatpush.msra.mxu2 %v2544_v59  ;;  %v2599_v21 = vunpack.c.h.bf16 %v4597_v23  ;;  %vm2320_vm8 = vmor %vm2318_vm7, %vm2319_vm6  ;;  %v2597_v23 = vunpack.c.h.bf16 %v4611_v49  ;;  %v2595_v49 = vunpack.c.h.bf16 %v4625_v45 }
 0x2c0   :  { %5379 = vst [vmem:[#allocation50_spill] sm:$0xff] %v4752_v38  ;;  %2649 = vmatpush.msra.mxu1 %v2512_v47  ;;  %v2509_v38 = vunpack.c.h.bf16 %v4544_v26  ;;  %v2314_v41 = vmul.f32 %v4758_v1, %v2313_v56  ;;  %2689 = vmatpush.msra.mxu3 %v2576_v39  ;;  %v2307_v47 = vmul.f32 %v4627_v22, %v2306_v10  ;;  %v2495_v45 = vunpack.c.h.bf16 %v4648_v4  ;;  %v5386_v4 = vld [vmem:[#allocation25_spill] sm:$0xff] }
 0x2c1   :  { %5380 = vst [vmem:[#allocation46_spill] sm:$0xff] %v4754_v9  ;;  %v2575_v9 = vunpack.c.h.bf16 %v4532_v37  ;;  %2694 = vmatpush.msrb.mxu0 %v2511_v54  ;;  %v2507_v37 = vunpack.c.h.bf16 %v4562_v60  ;;  %v2301_v52 = vsel %vm4786_vm3, %v4613_v6, %v2297_v61  ;;  %v2505_v60 = vunpack.c.h.bf16 %v4576_v20 }
 0x2c2   :  { %5381 = vst [vmem:[#allocation47_spill] sm:$0xff] %v4756_v50  ;;  %v2607_v50 = vunpack.c.h.bf16 %v4539_v28  ;;  %2714 = vmatpush.msrb.mxu1 %v2543_v55  ;;  %v2539_v28 = vunpack.c.h.bf16 %v4564_v48  ;;  %v2315_v26 = vmul.f32 0.5, %v2314_v41  ;;  %v2537_v48 = vunpack.c.h.bf16 %v4578_v32 }
 0x2c3   :  { %2734 = vmatpush.msrb.mxu2 %v2575_v9  ;;  %2695 = vmatpush.msrb.mxu0 %v2509_v38  ;;  %v2287_v6 = vmul.f32 %v4599_v44, %v2286_v8  ;;  %v2311_v20 = vsel %vm4800_vm5, %v4627_v22, %v2307_v47  ;;  %v2503_v32 = vunpack.c.h.bf16 %v4589_v36  ;;  %v2535_v61 = vunpack.c.h.bf16 %v4591_v2  ;;  %v5389_v47 = vld [vmem:[#allocation22_spill] sm:$0xff] }
 0x2c4   :  { %2754 = vmatpush.msrb.mxu3 %v2607_v50  ;;  %2715 = vmatpush.msrb.mxu1 %v2541_v57  ;;  %v2316_v16 = vsub.f32 1.5, %v2315_v26  ;;  %v2326_v22 = vrot.slane %v2301_v52, 7  ;;  %v2501_v36 = vunpack.c.h.bf16 %v4603_v40  ;;  %v2533_v2 = vunpack.c.h.bf16 %v4605_v58  ;;  %v5392_v26 = vld [vmem:[#allocation28_spill] sm:$0xff] }
 0x2c5   :  { %2735 = vmatpush.msrb.mxu2 %v2573_v53  ;;  %2696 = vmatpush.msrb.mxu0 %v2507_v37  ;;  %v2327_v8 = vrot.slane %v2311_v20, 6  ;;  %v2499_v40 = vunpack.c.h.bf16 %v4617_v27  ;;  %v2531_v58 = vunpack.c.h.bf16 %v4619_v43  ;;  %v2497_v9 = vunpack.c.h.bf16 %v4631_v34  ;;  %v5387_v53 = vld [vmem:[#allocation26_spill] sm:$0xff]  ;;  %v5390_v37 = vld [vmem:[#allocation24_spill] sm:$0xff] }
 0x2c6   :  { %2755 = vmatpush.msrb.mxu3 %v2605_v63  ;;  %2716 = vmatpush.msrb.mxu1 %v2539_v28  ;;  %v2317_v56 = vmul.f32 %v4758_v1, %v2316_v16  ;;  %v2529_v27 = vunpack.c.h.bf16 %v4633_v7  ;;  %v2527_v59 = vunpack.c.h.bf16 %v4650_v35  ;;  %v2559_v34 = vunpack.c.h.bf16 %v4652_v51  ;;  %v5388_v63 = vld [vmem:[#allocation21_spill] sm:$0xff]  ;;  %v5391_v28 = vld [vmem:[#allocation27_spill] sm:$0xff]  ;;  %v5396_v16 = vld [vmem:[#allocation20_spill] sm:$0xff] }
 0x2c7   :  { %2736 = vmatpush.msrb.mxu2 %v2571_v46  ;;  %2697 = vmatpush.msrb.mxu0 %v2505_v60  ;;  %v2591_v7 = vunpack.c.h.bf16 %v4659_v17  ;;  %v2493_v54 = vunpack.c.h.bf16 %v4667_v30  ;;  %v2557_v41 = vunpack.c.h.bf16 %v5386_v4  ;;  %v2589_v35 = vunpack.c.h.bf16 %v5387_v53 }
 0x2c8   :  { %2756 = vmatpush.msrb.mxu3 %v2603_v0  ;;  %2717 = vmatpush.msrb.mxu1 %v2537_v48  ;;  %v2321_v13 = vsel %vm2320_vm8, %v4758_v1, %v2317_v56  ;;  %v2291_v1 = vsel %vm2290_vm10, %v4599_v44, %v2287_v6  ;;  %v2561_v44 = vunpack.c.h.bf16 %v4635_v24  ;;  %v2491_v18 = vunpack.c.h.bf16 %v5391_v28  ;;  %v5393_v0 = vld [vmem:[#allocation29_spill] sm:$0xff]  ;;  %v5395_v48 = vld [vmem:[#allocation31_spill] sm:$0xff] }
 0x2c9   :  { %2737 = vmatpush.msrb.mxu2 %v2569_v25  ;;  %v2328_v10 = vrot.slane %v2321_v13, 5  ;;  %2698 = vmatpush.msrb.mxu0 %v2503_v32  ;;  %v2329_v3 = vsel %vm616_vm14, %v2291_v1, %v2326_v22  ;;  %v2523_v46 = vunpack.c.h.bf16 %v5392_v26  ;;  %v2555_v52 = vunpack.c.h.bf16 %v5393_v0  ;;  %v2205_v32 = vld [vmem:[#allocation10 + $0x11] ss:$2 sm:$0xf] }
 0x2ca   :  { %2757 = vmatpush.msrb.mxu3 %v2601_v14  ;;  %2718 = vmatpush.msrb.mxu1 %v2535_v61  ;;  %v2587_v60 = vunpack.c.h.bf16 %v5394_v62  ;;  %v2489_v50 = vunpack.c.h.bf16 %v5395_v48  ;;  %v5397_v61 = vld [vmem:[#allocation32_spill] sm:$0xff]  ;;  %v5414_v28 = vld [vmem:[#allocation45_spill] sm:$0xff]  ;;  %v5415_v62 = vld [vmem:[#allocation50_spill] sm:$0xff] }
 0x2cb   :  { %2738 = vmatpush.msrb.mxu2 %v2567_v19  ;;  %v2330_v38 = vsel %vm618_vm15, %v2327_v8, %v2328_v10  ;;  %2699 = vmatpush.msrb.mxu0 %v2501_v36  ;;  %v2521_v56 = vunpack.c.h.bf16 %v5397_v61  ;;  %v5398_v19 = vld [vmem:[#allocation33_spill] sm:$0xff]  ;;  %v5416_v48 = vld [vmem:[#allocation46_spill] sm:$0xff] }
 0x2cc   :  { %2758 = vmatpush.msrb.mxu3 %v2599_v21  ;;  %2719 = vmatpush.msrb.mxu1 %v2533_v2  ;;  %v2331_v43 = vsel %vm620_vm1, %v2329_v3, %v2330_v38  ;;  %v2553_v21 = vunpack.c.h.bf16 %v5398_v19  ;;  %v5399_v2 = vld [vmem:[#allocation34_spill] sm:$0xff]  ;;  %v5401_v10 = vld [vmem:[#allocation17_spill] sm:$0xff]  ;;  %v5404_v3 = vld [vmem:[#allocation35_spill] sm:$0xff] }
 0x2cd   :  { %2739 = vmatpush.msrb.mxu2 %v2565_v33  ;;  %v2333_v31 = vmul.f32 %v2331_v43, %v2203_v11  ;;  %2700 = vmatpush.msrb.mxu0 %v2499_v40  ;;  %v2585_v13 = vunpack.c.h.bf16 %v5399_v2  ;;  %v5402_v11 = vld [vmem:[#allocation18_spill] sm:$0xff]  ;;  %v2487_v38 = vunpack.c.h.bf16 %v5404_v3  ;;  %v5406_v43 = vld [vmem:[#allocation37_spill] sm:$0xff] }
 0x2ce   :  { %2759 = vmatpush.msrb.mxu3 %v2597_v23  ;;  %2720 = vmatpush.msrb.mxu1 %v2531_v58  ;;  %v5400_v23 = vld [vmem:[#allocation23_spill] sm:$0xff] }
 0x2cf   :  { %2740 = vmatpush.msrb.mxu2 %v2563_v42  ;;  %v2335_v39 = vperm.slane %v2333_v31, 0  ;;  %v2336_v55 = vperm.slane %v2333_v31, 1  ;;  %v2337_v24 = vperm.slane %v2333_v31, 2  ;;  %v2338_v57 = vperm.slane %v2333_v31, 3  ;;  %2701 = vmatpush.msrb.mxu0 %v2497_v9  ;;  %v5403_v42 = vld [vmem:[#allocation19_spill] sm:$0xff]  ;;  %v5405_v9 = vld [vmem:[#allocation36_spill] sm:$0xff] }
 0x2d0   :  { %2760 = vmatpush.msrb.mxu3 %v2595_v49  ;;  %2721 = vmatpush.msrb.mxu1 %v2529_v27  ;;  %v2519_v27 = vunpack.c.h.bf16 %v5405_v9 }
 0x2d1   :  { %2741 = vmatpush.msrb.mxu2 %v2561_v44  ;;  %v2344_v51 = vmul.f32 %v2336_v55, %v5388_v63  ;;  %v2345_v17 = vmul.f32 %v2337_v24, %v5389_v47  ;;  %v2346_v30 = vmul.f32 %v2338_v57, %v5390_v37  ;;  %2702 = vmatpush.msrb.mxu0 %v2495_v45  ;;  %v2551_v44 = vunpack.c.h.bf16 %v5406_v43  ;;  %v5413_v37 = vld [vmem:[#allocation44_spill] sm:$0xff] }
 0x2d2   :  { %2761 = vmatpush.msrb.mxu3 %v2593_v29  ;;  %2722 = vmatpush.msrb.mxu1 %v2527_v59  ;;  %v2343_v25 = vmul.f32 %v2335_v39, %v5396_v16  ;;  %v2362_v8 = vmul.f32 %v2338_v57, %v5400_v23  ;;  %v2359_v40 = vmul.f32 %v2335_v39, %v5401_v10  ;;  %v5407_v29 = vld [vmem:[#allocation38_spill] sm:$0xff]  ;;  %v5408_v39 = vld [vmem:[#allocation39_spill] sm:$0xff] }
 0x2d3   :  { %2742 = vmatpush.msrb.mxu2 %v2559_v34  ;;  %v2351_v14 = vrot.slane %v2344_v51, 7  ;;  %v2352_v6 = vrot.slane %v2345_v17, 6  ;;  %v2353_v20 = vrot.slane %v2346_v30, 5  ;;  %2703 = vmatpush.msrb.mxu0 %v2493_v54  ;;  %v2360_v1 = vmul.f32 %v2336_v55, %v5402_v11  ;;  %v5411_v51 = vld [vmem:[#allocation42_spill] sm:$0xff]  ;;  %v5417_v16 = vld [vmem:[#allocation47_spill] sm:$0xff] }
 0x2d4   :  { %2762 = vmatpush.msrb.mxu3 %v2591_v7  ;;  %2723 = vmatpush.msrb.mxu1 %v2525_v5  ;;  %v2361_v49 = vmul.f32 %v2337_v24, %v5403_v42  ;;  %v2583_v31 = vunpack.c.h.bf16 %v5407_v29  ;;  %v2485_v54 = vunpack.c.h.bf16 %v4725_v12  ;;  %v2517_v55 = vunpack.c.h.bf16 %v5408_v39  ;;  %v5409_v24 = vld [vmem:[#allocation40_spill] sm:$0xff]  ;;  %v5410_v5 = vld [vmem:[#allocation41_spill] sm:$0xff]  ;;  %v5412_v12 = vld [vmem:[#allocation43_spill] sm:$0xff] }
 0x2d5   :  { %2743 = vmatpush.msrb.mxu2 %v2557_v41  ;;  %v2354_v22 = vsel %vm616_vm14, %v2343_v25, %v2351_v14  ;;  %v2355_v36 = vsel %vm618_vm15, %v2352_v6, %v2353_v20  ;;  %2704 = vmatpush.msrb.mxu0 %v2491_v18  ;;  %v2549_v57 = vunpack.c.h.bf16 %v5409_v24  ;;  %v2581_v4 = vunpack.c.h.bf16 %v5410_v5 }
 0x2d6   :  { %2763 = vmatpush.msrb.mxu3 %v2589_v35  ;;  %v2356_v33 = vsel %vm620_vm1, %v2354_v22, %v2355_v36  ;;  %2724 = vmatpush.msrb.mxu1 %v2523_v46  ;;  %v2483_v47 = vunpack.c.h.bf16 %v5411_v51  ;;  %v2515_v17 = vunpack.c.h.bf16 %v5412_v12  ;;  %v2547_v30 = vunpack.c.h.bf16 %v5413_v37 }
 0x2d7   :  { %2744 = vmatpush.msrb.mxu2 %v2555_v52  ;;  %v2358_v58 = vsub.f32 %v2205_v32, %v2356_v33  ;;  %2705 = vmatpush.msrb.mxu0 %v2489_v50  ;;  %v2579_v18 = vunpack.c.h.bf16 %v5414_v28  ;;  %v2513_v50 = vunpack.c.h.bf16 %v5416_v48  ;;  %v2545_v25 = vunpack.c.h.bf16 %v5417_v16 }
 0x2d8   :  { %2764 = vmatpush.msrb.mxu3 %v2587_v60  ;;  %2725 = vmatpush.msrb.mxu1 %v2521_v56  ;;  %v2481_v60 = vunpack.c.h.bf16 %v5415_v62  ;;  %v2577_v14 = vunpack.c.h.bf16 %v4763_v15 }
 0x2d9   :  { %2745 = vmatpush.msrb.mxu2 %v2553_v21  ;;  %v2367_v45 = vperm.slane %v2358_v58, 3  ;;  %v2364_v59 = vperm.slane %v2358_v58, 0  ;;  %v2365_v34 = vperm.slane %v2358_v58, 1  ;;  %v2366_v7 = vperm.slane %v2358_v58, 2  ;;  %2706 = vmatpush.msrb.mxu0 %v2487_v38 }
 0x2da   :  { %2765 = vmatpush.msrb.mxu3 %v2585_v13  ;;  %2726 = vmatpush.msrb.mxu1 %v2519_v27 }
 0x2db   :  { %v4874_v41 = vadd.f32 %v2367_v45, %v2362_v8  ;;  %v4876_v53 = vadd.f32 %v2364_v59, %v2359_v40  ;;  %v4878_v35 = vadd.f32 %v2365_v34, %v2360_v1  ;;  %v4880_v63 = vadd.f32 %v2366_v7, %v2361_v49  ;;  %2746 = vmatpush.msrb.mxu2 %v2551_v44  ;;  %v2608_v34 = vld [vmem:[%s4917_s5] sm:$0x3] }
 0x2dc   :  { %2766 = vmatpush.msrb.mxu3 %v2583_v31  ;;  %2707 = vmatpush.msrb.mxu0 %v2485_v54  ;;  %v2610_v7 = vperm.slane %v2608_v34, 0 }
 0x2dd   :  { %v2376_v26 = vmul.f32 1.442695, %v4876_v53  ;;  %2727 = vmatpush.msrb.mxu1 %v2517_v55  ;;  %2747 = vmatpush.msrb.mxu2 %v2549_v57  ;;  %v2382_v46 = vmul.f32 1.442695, %v4874_v41  ;;  %v2378_v0 = vmul.f32 1.442695, %v4878_v35 }
 0x2de   :  { %v2380_v52 = vmul.f32 1.442695, %v4880_v63  ;;  %2767 = vmatpush.msrb.mxu3 %v2581_v4  ;;  %2708 = vmatpush.msrb.mxu0 %v2483_v47  ;;  %vm2408_vm14 = vcmp.gt.f32.partialorder %v4876_v53, 20.0  ;;  %vm2409_vm15 = vcmp.gt.f32.partialorder %v4878_v35, 20.0  ;;  %vm2410_vm1 = vcmp.gt.f32.partialorder %v4880_v63, 20.0 }
 0x2df   :  { %2874 = vpow2.f32 %v2376_v26  ;;  %2728 = vmatpush.msrb.mxu1 %v2515_v17  ;;  %2748 = vmatpush.msrb.mxu2 %v2547_v30  ;;  %vm2411_vm11 = vcmp.gt.f32.partialorder %v4874_v41, 20.0  ;;  %v2611_v57 = vperm.slane %v2608_v34, 1 }
 0x2e0   :  { %2876 = vpow2.f32 %v2378_v0  ;;  %2768 = vmatpush.msrb.mxu3 %v2579_v18  ;;  %2709 = vmatpush.msrb.mxu0 %v2481_v60 }
 0x2e1   :  { %2878 = vpow2.f32 %v2380_v52  ;;  %2729 = vmatpush.msrb.mxu1 %v2513_v50  ;;  %2749 = vmatpush.msrb.mxu2 %v2545_v25 }
 0x2e2   :  { %2880 = vpow2.f32 %v2382_v46  ;;  %2769 = vmatpush.msrb.mxu3 %v2577_v14 }
 0x2e5   :  { %v2875_v6 = vpop.eup %2874 }
 0x2e6   :  { %v2877_v20 = vpop.eup %2876  ;;  %v2384_v32 = vadd.f32 2.0, %v2875_v6 }
 0x2e7   :  { %v2879_v61 = vpop.eup %2878  ;;  %v2385_v56 = vadd.f32 2.0, %v2877_v20 }
 0x2e8   :  { %v2881_v19 = vpop.eup %2880  ;;  %v2388_v21 = vmul.f32 %v2875_v6, %v2384_v32  ;;  %v2386_v22 = vadd.f32 2.0, %v2879_v61 }
 0x2e9   :  { %v2389_v36 = vmul.f32 %v2877_v20, %v2385_v56  ;;  %v2387_v2 = vadd.f32 2.0, %v2881_v19 }
 0x2ea   :  { %v2396_v13 = vadd.f32 2.0, %v2388_v21  ;;  %v2390_v33 = vmul.f32 %v2879_v61, %v2386_v22  ;;  %v2392_v40 = vmul.f32 %v2388_v21, %v4876_v53 }
 0x2eb   :  { %v2397_v23 = vadd.f32 2.0, %v2389_v36  ;;  %v2391_v15 = vmul.f32 %v2881_v19, %v2387_v2  ;;  %v2393_v11 = vmul.f32 %v2389_v36, %v4878_v35 }
 0x2ec   :  { %2882 = vrcp.f32 %v2396_v13  ;;  %v2398_v8 = vadd.f32 2.0, %v2390_v33  ;;  %v2394_v49 = vmul.f32 %v2390_v33, %v4880_v63 }
 0x2ed   :  { %2884 = vrcp.f32 %v2397_v23  ;;  %v2399_v10 = vadd.f32 2.0, %v2391_v15  ;;  %v2395_v9 = vmul.f32 %v2391_v15, %v4874_v41 }
 0x2ee   :  { %2886 = vrcp.f32 %v2398_v8 }
 0x2ef   :  { %2888 = vrcp.f32 %v2399_v10 }
 0x2f2   :  { %v2883_v58 = vpop.eup %2882 }
 0x2f3   :  { %v2885_v1 = vpop.eup %2884  ;;  %v2404_v42 = vmul.f32 %v2883_v58, %v2392_v40 }
 0x2f4   :  { %v2887_v3 = vpop.eup %2886  ;;  %v2405_v38 = vmul.f32 %v2885_v1, %v2393_v11 }
 0x2f5   :  { %v2889_v27 = vpop.eup %2888  ;;  %v2412_v43 = vsel %vm2408_vm14, %v4876_v53, %v2404_v42  ;;  %v2406_v44 = vmul.f32 %v2887_v3, %v2394_v49 }
 0x2f6   :  { %2630 = vmatmul.f32.vlgmr.msra.gmra.mxu0 %v2412_v43  ;;  %v2413_v29 = vsel %vm2409_vm15, %v4878_v35, %v2405_v38  ;;  %v2407_v31 = vmul.f32 %v2889_v27, %v2395_v9 }
 0x2f7   :  { %2650 = vmatmul.f32.vlgmr.msra.gmra.mxu1 %v2413_v29  ;;  %v2414_v45 = vsel %vm2410_vm1, %v4880_v63, %v2406_v44 }
 0x2f8   :  { %2670 = vmatmul.f32.vlgmr.msra.gmra.mxu2 %v2414_v45  ;;  %v2415_v59 = vsel %vm2411_vm11, %v4874_v41, %v2407_v31 }
 0x2f9   :  { %2690 = vmatmul.f32.vlgmr.msra.gmra.mxu3 %v2415_v59 }
 0x2fe   :  { %2710 = vmatmul.f32.vlgmr.msrb.gmra.mxu0 %v2412_v43 }
 0x2ff   :  { %2730 = vmatmul.f32.vlgmr.msrb.gmra.mxu1 %v2413_v29 }
 0x300   :  { %2750 = vmatmul.f32.vlgmr.msrb.gmra.mxu2 %v2414_v45 }
 0x301   :  { %2770 = vmatmul.f32.vlgmr.msrb.gmra.mxu3 %v2415_v59 }
 0x373   :  { %v2631_v54 = vpop.f32.mrf.mxu0 }
 0x374   :  { %v2632_v39 = vadd.f32 %v2631_v54, %v2610_v7  ;;  %v2651_v55 = vpop.f32.mrf.mxu1 }
 0x376   :  { %v2652_v24 = vadd.f32 %v2651_v55, %v2632_v39 }
 0x37b   :  { %v2671_v5 = vpop.f32.mrf.mxu2  ;;  %v2711_v4 = vpop.f32.mrf.mxu0 }
 0x37c   :  { %v2672_v53 = vadd.f32 %v2671_v5, %v2652_v24  ;;  %v2691_v35 = vpop.f32.mrf.mxu3  ;;  %v2712_v63 = vadd.f32 %v2711_v4, %v2611_v57  ;;  %v2731_v51 = vpop.f32.mrf.mxu1 }
 0x37e   :  { %v2692_v41 = vadd.f32 %v2691_v35, %v2672_v53  ;;  %v2732_v47 = vadd.f32 %v2731_v51, %v2712_v63 }
 0x380   :  { %2774 = vst [vmem:[#allocation11] sm:$0xff] %v2692_v41 }
 0x383   :  { %v2751_v12 = vpop.f32.mrf.mxu2 }
 0x384   :  { %v2752_v17 = vadd.f32 %v2751_v12, %v2732_v47  ;;  %v2771_v37 = vpop.f32.mrf.mxu3 }
 0x386   :  { %v2772_v30 = vadd.f32 %v2771_v37, %v2752_v17 }
 0x388   :  { %2775 = vst [vmem:[#allocation11 + $0x8] sm:$0xff] %v2772_v30 }
 0x389   :  { %2786 = dma.vmem_to_hbm [thread:$0]  %s2782_s26, 256, %s2784_s28, [#allocation4]  }
 0x38a   :  { %3107 = dma.done.wait [#allocation4], 256  }
 0x38b   :  { %3108 = vsyncadd [#allocation4], 4294967040 }
 0x38c   :  { %2791 = vsyncpa [#allocation3], 1 }
 0x38d   :  { %2792 = vsyncpa [#allocation6], 1 }
 0x38e   :  { %2793 = vsyncpa [#allocation9], 1 }
 0x38f   :  { %2794 = vsyncpa [#allocation4], 1 }

</bundles_post_ra>
